<compile_context>
chip_gen: v7x
topology: tpu7x:2x2x1
jax: 0.10.0
libtpu: 0.0.40
codegen_flags: <defaults>
</compile_context>

<pallas_src>
import functools

import jax
import jax.numpy as jnp
from jax.experimental import pallas as pl
from jax.experimental.pallas import tpu as pltpu


# -----------------------------------------------------------------------------
# In-kernel math shared by encoder / decoder cells
# -----------------------------------------------------------------------------
def _diffuse(G, U, K, H):
    """sum_k G[k] @ U[:, k*H:(k+1)*H]; U packs per-support projections along lanes."""
    acc = jnp.dot(G[0], U[:, 0:H], preferred_element_type=jnp.float32)
    for k in range(1, K):
        acc = acc + jnp.dot(G[k], U[:, k * H:(k + 1) * H],
                            preferred_element_type=jnp.float32)
    return acc


def _cell_math(G, x_c, h_f32, Wx, Whzr, Wch, bias, K, H, cdt):
    """One DCGRU cell on batch-flattened operands.

    G      : (K, B*N, B*N)  block-diag supports   (compute dtype)
    x_c    : (B*N, Din)     layer input            (compute dtype)
    h_f32  : (B*N, H)       previous hidden        (f32)
    Wx     : (Din, 3*K*H)   [z|r|c] x-projection   (compute dtype)
    Whzr   : (H, 2*K*H)     [z|r]   h-projection   (compute dtype)
    Wch    : (H, K*H)       candidate h-projection (compute dtype)
    bias   : (3, H)         [bz; br; bc]           (f32)
    """
    KH = K * H
    h_c = h_f32.astype(cdt)
    # Two wide projection matmuls instead of six narrow ones.
    Ux = jnp.dot(x_c, Wx, preferred_element_type=jnp.float32)        # (BN, 3KH)
    Uh = jnp.dot(h_c, Whzr, preferred_element_type=jnp.float32)      # (BN, 2KH)
    bz, br, bc = bias[0:1, :], bias[1:2, :], bias[2:3, :]
    Uz = (Ux[:, 0:KH] + Uh[:, 0:KH]).astype(cdt)
    Ur = (Ux[:, KH:2 * KH] + Uh[:, KH:2 * KH]).astype(cdt)
    z = jax.nn.sigmoid(_diffuse(G, Uz, K, H) + bz)                   # update gate (f32)
    r = jax.nn.sigmoid(_diffuse(G, Ur, K, H) + br)                   # reset gate  (f32)
    rh = (r * h_f32).astype(cdt)
    Uc = (Ux[:, 2 * KH:3 * KH]
          + jnp.dot(rh, Wch, preferred_element_type=jnp.float32)).astype(cdt)
    c = jnp.tanh(_diffuse(G, Uc, K, H) + bc)
    return (1.0 - z) * h_f32 + z * c                                 # f32


# -----------------------------------------------------------------------------
# Fused encoder kernel: grid over time, all layers per step, h carried in scratch
# -----------------------------------------------------------------------------
def _encoder_kernel(*refs, L, K, H, cdt):
    x_ref, g_ref = refs[0], refs[1]
    w_refs = refs[2:2 + 4 * L]
    h_out_ref = refs[2 + 4 * L]          # (L, BN, H) f32 output (written on last step)
    h_s = refs[3 + 4 * L]                # (L, BN, H) f32 VMEM scratch carry
    t = pl.program_id(0)

    @pl.when(t == 0)
    def _init():
        h_s[...] = jnp.zeros(h_s.shape, h_s.dtype)

    G = g_ref[...]                       # (K, BN, BN) compute dtype, VMEM-resident
    x_in = x_ref[0]                      # (BN, Din)   compute dtype, streamed per t
    for l in range(L):
        Wx = w_refs[4 * l][...]
        Whzr = w_refs[4 * l + 1][...]
        Wch = w_refs[4 * l + 2][...]
        bias = w_refs[4 * l + 3][...]
        h_new = _cell_math(G, x_in, h_s[l], Wx, Whzr, Wch, bias, K, H, cdt)
        h_s[l] = h_new
        x_in = h_new.astype(cdt)         # feeds the next layer at this time step

    @pl.when(t == pl.num_programs(0) - 1)
    def _emit():
        h_out_ref[...] = h_s[...]


# -----------------------------------------------------------------------------
# Fused decoder kernel: grid over horizon, all layers + projection + fc head
# -----------------------------------------------------------------------------
def _decoder_kernel(*refs, L, K, H, cdt):
    g_ref, h0_ref = refs[0], refs[1]
    w_refs = refs[2:2 + 4 * L]
    pw_ref, pb_ref, fcw_ref, fcb_ref = refs[2 + 4 * L:6 + 4 * L]
    f_ref = refs[6 + 4 * L]              # (1, BN, D) output block for this step
    h_s = refs[7 + 4 * L]                # (L, BN, H) f32 scratch carry
    x_s = refs[8 + 4 * L]                # (BN, C)    f32 scratch: deco_input carry
    t = pl.program_id(0)

    @pl.when(t == 0)
    def _init():
        h_s[...] = h0_ref[...]
        x_s[...] = jnp.zeros(x_s.shape, x_s.dtype)

    G = g_ref[...]
    x_in = x_s[...].astype(cdt)
    for l in range(L):
        Wx = w_refs[4 * l][...]
        Whzr = w_refs[4 * l + 1][...]
        Wch = w_refs[4 * l + 2][...]
        bias = w_refs[4 * l + 3][...]
        h_new = _cell_math(G, x_in, h_s[l], Wx, Whzr, Wch, bias, K, H, cdt)
        h_s[l] = h_new
        x_in = h_new.astype(cdt)

    # out_projector + Conv1d(k=1) head (epilogue, fused)
    y = jnp.dot(x_in, pw_ref[...], preferred_element_type=jnp.float32) + pb_ref[...]
    x_s[...] = y                                     # projected output feeds next step
    f = jnp.dot(y.astype(cdt), fcw_ref[0], preferred_element_type=jnp.float32) + fcb_ref[0]
    f_ref[0] = f


# -----------------------------------------------------------------------------
# pallas_call wrappers
# -----------------------------------------------------------------------------
def _const_spec(arr):
    nd = arr.ndim
    return pl.BlockSpec(arr.shape, lambda t, _nd=nd: (0,) * _nd)


def _cell_w_args_specs(cells):
    args, specs = [], []
    for cell in cells:
        for name in ("Wx", "Whzr", "Wch", "bias"):
            w = cell[name]
            args.append(w)
            specs.append(_const_spec(w))
    return args, specs


def encoder_fused(G_blk, xs, cells, H, compute_dtype):
    """xs: (T, B*N, C) in compute dtype -> final hidden per layer (L, B*N, H) f32."""
    T, BN, Cin = xs.shape
    K = G_blk.shape[0]
    L = len(cells)
    w_args, w_specs = _cell_w_args_specs(cells)
    grid_spec = pltpu.PrefetchScalarGridSpec(
        num_scalar_prefetch=0,
        grid=(T,),
        in_specs=[pl.BlockSpec((1, BN, Cin), lambda t: (t, 0, 0)),
                  _const_spec(G_blk)] + w_specs,
        out_specs=pl.BlockSpec((L, BN, H), lambda t: (0, 0, 0)),
        scratch_shapes=[pltpu.VMEM((L, BN, H), jnp.float32)],
    )
    return pl.pallas_call(
        functools.partial(_encoder_kernel, L=L, K=K, H=H, cdt=compute_dtype),
        grid_spec=grid_spec,
        out_shape=jax.ShapeDtypeStruct((L, BN, H), jnp.float32),
        compiler_params=pltpu.CompilerParams(dimension_semantics=("arbitrary",)),
    )(xs, G_blk, *w_args)


def decoder_fused(G_blk, h_enc, cells, proj_W, proj_b, fc_W, fc_b, compute_dtype):
    """h_enc: (L, B*N, H) f32 -> fc outputs per horizon step (Th, B*N, D) f32."""
    L, BN, H = h_enc.shape
    K = G_blk.shape[0]
    Th, Cin, Dout = fc_W.shape
    w_args, w_specs = _cell_w_args_specs(cells)
    in_specs = ([_const_spec(G_blk), _const_spec(h_enc)] + w_specs +
                [_const_spec(proj_W), _const_spec(proj_b),
                 pl.BlockSpec((1, Cin, Dout), lambda t: (t, 0, 0)),
                 pl.BlockSpec((1, 1, Dout), lambda t: (t, 0, 0))])
    grid_spec = pltpu.PrefetchScalarGridSpec(
        num_scalar_prefetch=0,
        grid=(Th,),
        in_specs=in_specs,
        out_specs=pl.BlockSpec((1, BN, Dout), lambda t: (t, 0, 0)),
        scratch_shapes=[pltpu.VMEM((L, BN, H), jnp.float32),
                        pltpu.VMEM((BN, Cin), jnp.float32)],
    )
    return pl.pallas_call(
        functools.partial(_decoder_kernel, L=L, K=K, H=H, cdt=compute_dtype),
        grid_spec=grid_spec,
        out_shape=jax.ShapeDtypeStruct((Th, BN, Dout), jnp.float32),
        compiler_params=pltpu.CompilerParams(dimension_semantics=("arbitrary",)),
    )(G_blk, h_enc, *w_args, proj_W, proj_b, fc_W, fc_b)


# -----------------------------------------------------------------------------
# Model glue
# -----------------------------------------------------------------------------
def _block_diag_supports(P, B):
    """(K, N, N) -> (K, B*N, B*N) = kron(I_B, P[k]) for each k."""
    K, N, _ = P.shape
    eye = jnp.eye(B, dtype=P.dtype)
    blk = eye[None, :, None, :, None] * P[:, None, :, None, :]
    return blk.reshape(K, B * N, B * N)


def dcrnn_forward(params, P, x_seq, *, out_horizon, compute_dtype=jnp.float32):
    """x_seq: (B, T, N, C) -> (B, out_horizon, N, output_dim)."""
    B, T, N, C = x_seq.shape
    H = params["enc"][0]["Whzr"].shape[0]
    Dout = params["fc_W"].shape[-1]

    G_blk = _block_diag_supports(P, B).astype(compute_dtype)
    xs = jnp.transpose(x_seq, (1, 0, 2, 3)).reshape(T, B * N, C).astype(compute_dtype)

    # ---- fused encoder (one pallas_call over all T steps and L layers) ----
    h_enc = encoder_fused(G_blk, xs, params["enc"], H, compute_dtype)   # (L, BN, H) f32

    # ---- fused decoder (one pallas_call over the whole horizon) ----
    f = decoder_fused(G_blk, h_enc, params["dec"], params["proj_W"], params["proj_b"],
                      params["fc_W"], params["fc_b"], compute_dtype)    # (Th, BN, D) f32

    return jnp.transpose(f.reshape(out_horizon, B, N, Dout), (1, 0, 2, 3))


# -----------------------------------------------------------------------------
# Pure-JAX reference (semantics mirror of the PyTorch module) for checking
# -----------------------------------------------------------------------------
def gcn_ref(P, x, W, b):
    K = P.shape[0]
    supports = [jnp.einsum("ij,bjp->bip", P[k], x) for k in range(K)]
    cat = jnp.concatenate(supports, axis=-1)
    Wflat = W.reshape(-1, W.shape[-1])
    return jnp.einsum("bip,pq->biq", cat, Wflat) + b


def dcgru_cell_ref(P, x_t, h, cell):
    H = h.shape[-1]
    zr = gcn_ref(P, jnp.concatenate([x_t, h], -1), cell["W_gate"], cell["b_gate"])
    z = jax.nn.sigmoid(zr[..., :H])
    r = jax.nn.sigmoid(zr[..., H:])
    c = jnp.tanh(gcn_ref(P, jnp.concatenate([x_t, r * h], -1),
                         cell["W_cand"], cell["b_cand"]))
    return (1.0 - z) * h + z * c


def dcrnn_forward_ref(params, P, x_seq):
    B, T, N, C = x_seq.shape
    L = len(params["enc"])
    H = params["enc"][0]["W_cand"].shape[-1]
    in_seq = [x_seq[:, t] for t in range(T)]
    enc_h = []
    for l in range(L):
        h = jnp.zeros((B, N, H), x_seq.dtype)
        out_seq = []
        for t in range(T):
            h = dcgru_cell_ref(P, in_seq[t], h, params["enc"][l])
            out_seq.append(h)
        in_seq = out_seq
        enc_h.append(h)
    h_lst = enc_h
    deco_input = jnp.zeros((B, N, C), x_seq.dtype)
    outs = []
    for t in range(params["out_horizon"]):
        x_in = deco_input
        new_h = []
        for l in range(L):
            h_l = dcgru_cell_ref(P, x_in, h_lst[l], params["dec"][l])
            new_h.append(h_l)
            x_in = h_l
        h_lst = new_h
        output = x_in @ params["proj_W"] + params["proj_b"]
        deco_input = output
        outs.append(output @ params["fc_W"][t] + params["fc_b"][t])
    return jnp.stack(outs, axis=1)


# -----------------------------------------------------------------------------
# Parameter construction & repacking into lane-dense slabs for the fused kernels
# -----------------------------------------------------------------------------
def init_cell(key, K, din_tot, hid):
    k1, k2 = jax.random.split(key)
    std_g = (2.0 / (K * din_tot + 2 * hid)) ** 0.5     # xavier-normal std
    std_c = (2.0 / (K * din_tot + hid)) ** 0.5
    return {
        "W_gate": std_g * jax.random.normal(k1, (K, din_tot, 2 * hid), jnp.float32),
        "b_gate": jnp.zeros((2 * hid,), jnp.float32),
        "W_cand": std_c * jax.random.normal(k2, (K, din_tot, hid), jnp.float32),
        "b_cand": jnp.zeros((hid,), jnp.float32),
    }


def compute_cheby_poly(adj_list, K):
    """Mirror of DCRNN.compute_cheby_poly: for each adjacency, T_0..T_{K-1} of p = adj.T."""
    P_k = []
    for adj in adj_list:
        p = adj.T.astype(jnp.float32)
        T = [jnp.eye(p.shape[0], dtype=jnp.float32), p]
        for _ in range(2, K):
            T.append(2.0 * (p @ T[-1]) - T[-2])
        P_k += T
    return jnp.stack(P_k, axis=0)


def build_params(key, K_total, input_dim, output_dim, hidden_dim, num_layers, out_horizon):
    keys = jax.random.split(key, 2 * num_layers + 2 + out_horizon)
    enc, dec = [], []
    for l in range(num_layers):
        din = input_dim if l == 0 else hidden_dim
        enc.append(init_cell(keys[l], K_total, din + hidden_dim, hidden_dim))
    for l in range(num_layers):
        din = input_dim if l == 0 else hidden_dim          # decoder out_dim == input_dim
        dec.append(init_cell(keys[num_layers + l], K_total, din + hidden_dim, hidden_dim))
    kp = keys[2 * num_layers]
    proj_W = (2.0 / (hidden_dim + input_dim)) ** 0.5 * \
        jax.random.normal(kp, (hidden_dim, input_dim), jnp.float32)
    proj_b = jnp.zeros((input_dim,), jnp.float32)
    fc_W, fc_b = [], []
    for t in range(out_horizon):
        kf = keys[2 * num_layers + 1 + t]
        fc_W.append(0.3 * jax.random.normal(kf, (input_dim, output_dim), jnp.float32))
        fc_b.append(0.01 * jnp.ones((output_dim,), jnp.float32))
    return {
        "enc": enc, "dec": dec,
        "proj_W": proj_W, "proj_b": proj_b,
        "fc_W": fc_W, "fc_b": fc_b,
        "out_horizon": out_horizon,
    }


def _pack_slab(Wslab, K, hid):
    """(K, rows, hid) -> (rows, K*hid); column block k equals Wslab[k]."""
    return jnp.transpose(Wslab, (1, 0, 2)).reshape(Wslab.shape[1], K * hid)


def prepare_cell(raw, K, din, hid, dtype):
    Wg = raw["W_gate"]                                     # (K, din+hid, 2*hid)
    Wc = raw["W_cand"]                                     # (K, din+hid, hid)
    bg, bc = raw["b_gate"], raw["b_cand"]
    Wzx = _pack_slab(Wg[:, :din, :hid], K, hid)
    Wzh = _pack_slab(Wg[:, din:, :hid], K, hid)
    Wrx = _pack_slab(Wg[:, :din, hid:], K, hid)
    Wrh = _pack_slab(Wg[:, din:, hid:], K, hid)
    Wcx = _pack_slab(Wc[:, :din, :], K, hid)
    Wch = _pack_slab(Wc[:, din:, :], K, hid)
    return {
        "Wx": jnp.concatenate([Wzx, Wrx, Wcx], axis=1).astype(dtype),   # (din, 3*K*H)
        "Whzr": jnp.concatenate([Wzh, Wrh], axis=1).astype(dtype),      # (H,   2*K*H)
        "Wch": Wch.astype(dtype),                                       # (H,   K*H)
        "bias": jnp.stack([bg[:hid], bg[hid:], bc], axis=0),            # (3, H)  f32
    }


def prepare_params(raw, K, input_dim, hidden_dim, dtype):
    L = len(raw["enc"])
    enc, dec = [], []
    for l in range(L):
        din = input_dim if l == 0 else hidden_dim
        enc.append(prepare_cell(raw["enc"][l], K, din, hidden_dim, dtype))
        dec.append(prepare_cell(raw["dec"][l], K, din, hidden_dim, dtype))
    return {
        "enc": enc, "dec": dec,
        "proj_W": raw["proj_W"].astype(dtype),                               # (H, C)
        "proj_b": raw["proj_b"].reshape(1, -1),                              # (1, C) f32
        "fc_W": jnp.stack(raw["fc_W"], axis=0).astype(dtype),                # (Th, C, D)
        "fc_b": jnp.stack([b.reshape(1, -1) for b in raw["fc_b"]], axis=0),  # (Th, 1, D) f32
    }


# -----------------------------------------------------------------------------
if __name__ == "__main__":
    # Small config consistent with the module's forward.
    B, T, N, C = 2, 8, 16, 2           # batch, seq len, num_nodes, input_dim
    OUT_DIM = 1                        # output_dim
    OUT_HORIZON = 3
    HIDDEN = 32
    NUM_LAYERS = 2
    K_CHEBY = 3                        # one support matrix -> K_total = 3

    key = jax.random.PRNGKey(0)
    k_adj, k_param, k_x = jax.random.split(key, 3)

    # deterministic synthetic adjacency (row-normalized) and Chebyshev supports
    adj = jax.random.uniform(k_adj, (N, N), jnp.float32)
    adj = adj / jnp.sum(adj, axis=1, keepdims=True)
    P = compute_cheby_poly([adj], K_CHEBY)                 # (3, N, N)

    raw_params = build_params(k_param, P.shape[0], C, OUT_DIM, HIDDEN, NUM_LAYERS, OUT_HORIZON)
    x_seq = jax.random.normal(k_x, (B, T, N, C), jnp.float32)

    # pure-JAX reference of the PyTorch semantics
    ref = jax.block_until_ready(dcrnn_forward_ref(raw_params, P, x_seq))

    # run fused kernels: f32 at tight tolerance (packing/slicing check), bf16 looser
    for cdt, tol, tag in ((jnp.float32, 1e-3, "f32"), (jnp.bfloat16, 5e-2, "bf16")):
        fused_params = prepare_params(raw_params, P.shape[0], C, HIDDEN, cdt)
        fwd = jax.jit(functools.partial(dcrnn_forward,
                                        out_horizon=OUT_HORIZON, compute_dtype=cdt))
        out = jax.block_until_ready(fwd(fused_params, P, x_seq))   # (B, Th, N, D)
        assert out.shape == (B, OUT_HORIZON, N, OUT_DIM), (tag, out.shape)
        assert bool(jnp.all(jnp.isfinite(out))), tag
        max_err = float(jnp.max(jnp.abs(out - ref)))
        assert max_err < tol, f"{tag} mismatch vs reference: {max_err}"

    print("KERNEL_OK")
</pallas_src>

<mosaic_0001>
module attributes {stable_mosaic.version = 11 : i64} {
  func.func @_encoder_kernel(%arg0: i32, %arg1: memref<1x32x2xf32, #tpu.memory_space<vmem>>, %arg2: memref<3x32x32xf32, #tpu.memory_space<vmem>>, %arg3: memref<2x288xf32, #tpu.memory_space<vmem>>, %arg4: memref<32x192xf32, #tpu.memory_space<vmem>>, %arg5: memref<32x96xf32, #tpu.memory_space<vmem>>, %arg6: memref<3x32xf32, #tpu.memory_space<vmem>>, %arg7: memref<32x288xf32, #tpu.memory_space<vmem>>, %arg8: memref<32x192xf32, #tpu.memory_space<vmem>>, %arg9: memref<32x96xf32, #tpu.memory_space<vmem>>, %arg10: memref<3x32xf32, #tpu.memory_space<vmem>>, %arg11: memref<2x32x32xf32, #tpu.memory_space<vmem>>, %arg12: memref<2x32x32xf32, #tpu.memory_space<vmem>>) attributes {dimension_semantics = [#tpu.dimension_semantics<arbitrary>], iteration_bounds = array<i64: 8>, scalar_prefetch = 0 : i64, scratch_operands = 1 : i64, tpu.core_type = #tpu.core_type<tc>, window_params = [{transform_indices = @transform_0, window_bounds = array<i64: 1, 32, 2>}, {pipeline_mode = #tpu.pipeline_mode<synchronous>, transform_indices = @transform_1, window_bounds = array<i64: 3, 32, 32>}, {pipeline_mode = #tpu.pipeline_mode<synchronous>, transform_indices = @transform_2, window_bounds = array<i64: 2, 288>}, {pipeline_mode = #tpu.pipeline_mode<synchronous>, transform_indices = @transform_3, window_bounds = array<i64: 32, 192>}, {pipeline_mode = #tpu.pipeline_mode<synchronous>, transform_indices = @transform_4, window_bounds = array<i64: 32, 96>}, {pipeline_mode = #tpu.pipeline_mode<synchronous>, transform_indices = @transform_5, window_bounds = array<i64: 3, 32>}, {pipeline_mode = #tpu.pipeline_mode<synchronous>, transform_indices = @transform_6, window_bounds = array<i64: 32, 288>}, {pipeline_mode = #tpu.pipeline_mode<synchronous>, transform_indices = @transform_7, window_bounds = array<i64: 32, 192>}, {pipeline_mode = #tpu.pipeline_mode<synchronous>, transform_indices = @transform_8, window_bounds = array<i64: 32, 96>}, {pipeline_mode = #tpu.pipeline_mode<synchronous>, transform_indices = @transform_9, window_bounds = array<i64: 3, 32>}, {pipeline_mode = #tpu.pipeline_mode<synchronous>, transform_indices = @transform_10, window_bounds = array<i64: 2, 32, 32>}]} {
    %c0_i32 = arith.constant 0 : i32
    %0 = arith.cmpi eq, %arg0, %c0_i32 : i32
    %1 = arith.extui %0 : i1 to i32
    %c0_i32_0 = arith.constant 0 : i32
    %2 = arith.cmpi ne, %1, %c0_i32_0 : i32
    scf.if %2 {
      %cst_63 = arith.constant 0.000000e+00 : f32
      %185 = vector.broadcast %cst_63 : f32 to vector<2x32x32xf32>
      %c0_64 = arith.constant 0 : index
      %c0_65 = arith.constant 0 : index
      %c0_66 = arith.constant 0 : index
      %186 = vector.load %arg12[%c0_64, %c0_65, %c0_66] : memref<2x32x32xf32, #tpu.memory_space<vmem>>, vector<2x32x32xf32>
      tpu.vector_store %arg12[%c0_64, %c0_65, %c0_66], %185 {strides = array<i32>} : memref<2x32x32xf32, #tpu.memory_space<vmem>>, vector<2x32x32xf32>,
    } else {
    }
    %c0 = arith.constant 0 : index
    %c0_1 = arith.constant 0 : index
    %c0_2 = arith.constant 0 : index
    %3 = vector.load %arg2[%c0, %c0_1, %c0_2] : memref<3x32x32xf32, #tpu.memory_space<vmem>>, vector<3x32x32xf32>
    %c0_3 = arith.constant 0 : index
    %c0_4 = arith.constant 0 : index
    %c0_5 = arith.constant 0 : index
    %4 = vector.load %arg1[%c0_3, %c0_4, %c0_5] : memref<1x32x2xf32, #tpu.memory_space<vmem>>, vector<1x32x2xf32>
    %5 = vector.shape_cast %4 : vector<1x32x2xf32> to vector<32x2xf32>
    %c0_6 = arith.constant 0 : index
    %c0_7 = arith.constant 0 : index
    %6 = vector.load %arg3[%c0_6, %c0_7] : memref<2x288xf32, #tpu.memory_space<vmem>>, vector<2x288xf32>
    %c0_8 = arith.constant 0 : index
    %c0_9 = arith.constant 0 : index
    %7 = vector.load %arg4[%c0_8, %c0_9] : memref<32x192xf32, #tpu.memory_space<vmem>>, vector<32x192xf32>
    %c0_10 = arith.constant 0 : index
    %c0_11 = arith.constant 0 : index
    %8 = vector.load %arg5[%c0_10, %c0_11] : memref<32x96xf32, #tpu.memory_space<vmem>>, vector<32x96xf32>
    %c0_12 = arith.constant 0 : index
    %c0_13 = arith.constant 0 : index
    %9 = vector.load %arg6[%c0_12, %c0_13] : memref<3x32xf32, #tpu.memory_space<vmem>>, vector<3x32xf32>
    %c0_14 = arith.constant 0 : index
    %c0_15 = arith.constant 0 : index
    %c0_16 = arith.constant 0 : index
    %10 = vector.load %arg12[%c0_14, %c0_15, %c0_16] : memref<2x32x32xf32, #tpu.memory_space<vmem>>, vector<1x32x32xf32>
    %11 = vector.shape_cast %10 : vector<1x32x32xf32> to vector<32x32xf32>
    %cst = arith.constant dense<0.000000e+00> : vector<32x288xf32>
    %12 = tpu.matmul %5, %6, %cst {dimension_numbers = #tpu.dot_dimension_numbers<[1], [0], [0], [1], [0, 0, 1, 1], [], []>} : vector<32x2xf32>, vector<2x288xf32>, vector<32x288xf32> -> vector<32x288xf32>
    %cst_17 = arith.constant dense<0.000000e+00> : vector<32x192xf32>
    %13 = tpu.matmul %11, %7, %cst_17 {dimension_numbers = #tpu.dot_dimension_numbers<[1], [0], [0], [1], [0, 0, 1, 1], [], []>} : vector<32x32xf32>, vector<32x192xf32>, vector<32x192xf32> -> vector<32x192xf32>
    %14 = vector.extract_strided_slice %9 {offsets = [0, 0], sizes = [1, 32], strides = [1, 1]} : vector<3x32xf32> to vector<1x32xf32>
    %15 = vector.extract_strided_slice %9 {offsets = [1, 0], sizes = [1, 32], strides = [1, 1]} : vector<3x32xf32> to vector<1x32xf32>
    %16 = vector.extract_strided_slice %9 {offsets = [2, 0], sizes = [1, 32], strides = [1, 1]} : vector<3x32xf32> to vector<1x32xf32>
    %17 = vector.extract_strided_slice %12 {offsets = [0, 0], sizes = [32, 96], strides = [1, 1]} : vector<32x288xf32> to vector<32x96xf32>
    %18 = vector.extract_strided_slice %13 {offsets = [0, 0], sizes = [32, 96], strides = [1, 1]} : vector<32x192xf32> to vector<32x96xf32>
    %19 = arith.addf %17, %18 : vector<32x96xf32>
    %20 = vector.extract_strided_slice %12 {offsets = [0, 96], sizes = [32, 96], strides = [1, 1]} : vector<32x288xf32> to vector<32x96xf32>
    %21 = vector.extract_strided_slice %13 {offsets = [0, 96], sizes = [32, 96], strides = [1, 1]} : vector<32x192xf32> to vector<32x96xf32>
    %22 = arith.addf %20, %21 : vector<32x96xf32>
    %23 = vector.extract_strided_slice %3 {offsets = [0, 0, 0], sizes = [1, 32, 32], strides = [1, 1, 1]} : vector<3x32x32xf32> to vector<1x32x32xf32>
    %24 = vector.shape_cast %23 : vector<1x32x32xf32> to vector<32x32xf32>
    %25 = vector.extract_strided_slice %19 {offsets = [0, 0], sizes = [32, 32], strides = [1, 1]} : vector<32x96xf32> to vector<32x32xf32>
    %cst_18 = arith.constant dense<0.000000e+00> : vector<32x32xf32>
    %26 = tpu.matmul %24, %25, %cst_18 {dimension_numbers = #tpu.dot_dimension_numbers<[1], [0], [0], [1], [0, 0, 1, 1], [], []>} : vector<32x32xf32>, vector<32x32xf32>, vector<32x32xf32> -> vector<32x32xf32>
    %27 = vector.extract_strided_slice %3 {offsets = [1, 0, 0], sizes = [1, 32, 32], strides = [1, 1, 1]} : vector<3x32x32xf32> to vector<1x32x32xf32>
    %28 = vector.shape_cast %27 : vector<1x32x32xf32> to vector<32x32xf32>
    %29 = vector.extract_strided_slice %19 {offsets = [0, 32], sizes = [32, 32], strides = [1, 1]} : vector<32x96xf32> to vector<32x32xf32>
    %cst_19 = arith.constant dense<0.000000e+00> : vector<32x32xf32>
    %30 = tpu.matmul %28, %29, %cst_19 {dimension_numbers = #tpu.dot_dimension_numbers<[1], [0], [0], [1], [0, 0, 1, 1], [], []>} : vector<32x32xf32>, vector<32x32xf32>, vector<32x32xf32> -> vector<32x32xf32>
    %31 = arith.addf %26, %30 : vector<32x32xf32>
    %32 = vector.extract_strided_slice %3 {offsets = [2, 0, 0], sizes = [1, 32, 32], strides = [1, 1, 1]} : vector<3x32x32xf32> to vector<1x32x32xf32>
    %33 = vector.shape_cast %32 : vector<1x32x32xf32> to vector<32x32xf32>
    %34 = vector.extract_strided_slice %19 {offsets = [0, 64], sizes = [32, 32], strides = [1, 1]} : vector<32x96xf32> to vector<32x32xf32>
    %cst_20 = arith.constant dense<0.000000e+00> : vector<32x32xf32>
    %35 = tpu.matmul %33, %34, %cst_20 {dimension_numbers = #tpu.dot_dimension_numbers<[1], [0], [0], [1], [0, 0, 1, 1], [], []>} : vector<32x32xf32>, vector<32x32xf32>, vector<32x32xf32> -> vector<32x32xf32>
    %36 = arith.addf %31, %35 : vector<32x32xf32>
    %37 = vector.broadcast %14 : vector<1x32xf32> to vector<32x32xf32>
    %38 = arith.addf %36, %37 : vector<32x32xf32>
    %39 = arith.negf %38 : vector<32x32xf32>
    %40 = math.exp %39 : vector<32x32xf32>
    %cst_21 = arith.constant 1.000000e+00 : f32
    %41 = vector.broadcast %cst_21 : f32 to vector<32x32xf32>
    %42 = arith.addf %41, %40 : vector<32x32xf32>
    %43 = arith.divf %41, %42 : vector<32x32xf32>
    %44 = vector.extract_strided_slice %3 {offsets = [0, 0, 0], sizes = [1, 32, 32], strides = [1, 1, 1]} : vector<3x32x32xf32> to vector<1x32x32xf32>
    %45 = vector.shape_cast %44 : vector<1x32x32xf32> to vector<32x32xf32>
    %46 = vector.extract_strided_slice %22 {offsets = [0, 0], sizes = [32, 32], strides = [1, 1]} : vector<32x96xf32> to vector<32x32xf32>
    %cst_22 = arith.constant dense<0.000000e+00> : vector<32x32xf32>
    %47 = tpu.matmul %45, %46, %cst_22 {dimension_numbers = #tpu.dot_dimension_numbers<[1], [0], [0], [1], [0, 0, 1, 1], [], []>} : vector<32x32xf32>, vector<32x32xf32>, vector<32x32xf32> -> vector<32x32xf32>
    %48 = vector.extract_strided_slice %3 {offsets = [1, 0, 0], sizes = [1, 32, 32], strides = [1, 1, 1]} : vector<3x32x32xf32> to vector<1x32x32xf32>
    %49 = vector.shape_cast %48 : vector<1x32x32xf32> to vector<32x32xf32>
    %50 = vector.extract_strided_slice %22 {offsets = [0, 32], sizes = [32, 32], strides = [1, 1]} : vector<32x96xf32> to vector<32x32xf32>
    %cst_23 = arith.constant dense<0.000000e+00> : vector<32x32xf32>
    %51 = tpu.matmul %49, %50, %cst_23 {dimension_numbers = #tpu.dot_dimension_numbers<[1], [0], [0], [1], [0, 0, 1, 1], [], []>} : vector<32x32xf32>, vector<32x32xf32>, vector<32x32xf32> -> vector<32x32xf32>
    %52 = arith.addf %47, %51 : vector<32x32xf32>
    %53 = vector.extract_strided_slice %3 {offsets = [2, 0, 0], sizes = [1, 32, 32], strides = [1, 1, 1]} : vector<3x32x32xf32> to vector<1x32x32xf32>
    %54 = vector.shape_cast %53 : vector<1x32x32xf32> to vector<32x32xf32>
    %55 = vector.extract_strided_slice %22 {offsets = [0, 64], sizes = [32, 32], strides = [1, 1]} : vector<32x96xf32> to vector<32x32xf32>
    %cst_24 = arith.constant dense<0.000000e+00> : vector<32x32xf32>
    %56 = tpu.matmul %54, %55, %cst_24 {dimension_numbers = #tpu.dot_dimension_numbers<[1], [0], [0], [1], [0, 0, 1, 1], [], []>} : vector<32x32xf32>, vector<32x32xf32>, vector<32x32xf32> -> vector<32x32xf32>
    %57 = arith.addf %52, %56 : vector<32x32xf32>
    %58 = vector.broadcast %15 : vector<1x32xf32> to vector<32x32xf32>
    %59 = arith.addf %57, %58 : vector<32x32xf32>
    %60 = arith.negf %59 : vector<32x32xf32>
    %61 = math.exp %60 : vector<32x32xf32>
    %cst_25 = arith.constant 1.000000e+00 : f32
    %62 = vector.broadcast %cst_25 : f32 to vector<32x32xf32>
    %63 = arith.addf %62, %61 : vector<32x32xf32>
    %64 = arith.divf %62, %63 : vector<32x32xf32>
    %65 = arith.mulf %64, %11 : vector<32x32xf32>
    %66 = vector.extract_strided_slice %12 {offsets = [0, 192], sizes = [32, 96], strides = [1, 1]} : vector<32x288xf32> to vector<32x96xf32>
    %cst_26 = arith.constant dense<0.000000e+00> : vector<32x96xf32>
    %67 = tpu.matmul %65, %8, %cst_26 {dimension_numbers = #tpu.dot_dimension_numbers<[1], [0], [0], [1], [0, 0, 1, 1], [], []>} : vector<32x32xf32>, vector<32x96xf32>, vector<32x96xf32> -> vector<32x96xf32>
    %68 = arith.addf %66, %67 : vector<32x96xf32>
    %69 = vector.extract_strided_slice %3 {offsets = [0, 0, 0], sizes = [1, 32, 32], strides = [1, 1, 1]} : vector<3x32x32xf32> to vector<1x32x32xf32>
    %70 = vector.shape_cast %69 : vector<1x32x32xf32> to vector<32x32xf32>
    %71 = vector.extract_strided_slice %68 {offsets = [0, 0], sizes = [32, 32], strides = [1, 1]} : vector<32x96xf32> to vector<32x32xf32>
    %cst_27 = arith.constant dense<0.000000e+00> : vector<32x32xf32>
    %72 = tpu.matmul %70, %71, %cst_27 {dimension_numbers = #tpu.dot_dimension_numbers<[1], [0], [0], [1], [0, 0, 1, 1], [], []>} : vector<32x32xf32>, vector<32x32xf32>, vector<32x32xf32> -> vector<32x32xf32>
    %73 = vector.extract_strided_slice %3 {offsets = [1, 0, 0], sizes = [1, 32, 32], strides = [1, 1, 1]} : vector<3x32x32xf32> to vector<1x32x32xf32>
    %74 = vector.shape_cast %73 : vector<1x32x32xf32> to vector<32x32xf32>
    %75 = vector.extract_strided_slice %68 {offsets = [0, 32], sizes = [32, 32], strides = [1, 1]} : vector<32x96xf32> to vector<32x32xf32>
    %cst_28 = arith.constant dense<0.000000e+00> : vector<32x32xf32>
    %76 = tpu.matmul %74, %75, %cst_28 {dimension_numbers = #tpu.dot_dimension_numbers<[1], [0], [0], [1], [0, 0, 1, 1], [], []>} : vector<32x32xf32>, vector<32x32xf32>, vector<32x32xf32> -> vector<32x32xf32>
    %77 = arith.addf %72, %76 : vector<32x32xf32>
    %78 = vector.extract_strided_slice %3 {offsets = [2, 0, 0], sizes = [1, 32, 32], strides = [1, 1, 1]} : vector<3x32x32xf32> to vector<1x32x32xf32>
    %79 = vector.shape_cast %78 : vector<1x32x32xf32> to vector<32x32xf32>
    %80 = vector.extract_strided_slice %68 {offsets = [0, 64], sizes = [32, 32], strides = [1, 1]} : vector<32x96xf32> to vector<32x32xf32>
    %cst_29 = arith.constant dense<0.000000e+00> : vector<32x32xf32>
    %81 = tpu.matmul %79, %80, %cst_29 {dimension_numbers = #tpu.dot_dimension_numbers<[1], [0], [0], [1], [0, 0, 1, 1], [], []>} : vector<32x32xf32>, vector<32x32xf32>, vector<32x32xf32> -> vector<32x32xf32>
    %82 = arith.addf %77, %81 : vector<32x32xf32>
    %83 = vector.broadcast %16 : vector<1x32xf32> to vector<32x32xf32>
    %84 = arith.addf %82, %83 : vector<32x32xf32>
    %85 = math.tanh %84 : vector<32x32xf32>
    %cst_30 = arith.constant 1.000000e+00 : f32
    %86 = vector.broadcast %cst_30 : f32 to vector<32x32xf32>
    %87 = arith.subf %86, %43 : vector<32x32xf32>
    %88 = arith.mulf %87, %11 : vector<32x32xf32>
    %89 = arith.mulf %43, %85 : vector<32x32xf32>
    %90 = arith.addf %88, %89 : vector<32x32xf32>
    %c0_31 = arith.constant 0 : index
    %c0_32 = arith.constant 0 : index
    %c0_33 = arith.constant 0 : index
    %91 = vector.load %arg12[%c0_31, %c0_32, %c0_33] : memref<2x32x32xf32, #tpu.memory_space<vmem>>, vector<1x32x32xf32>
    %92 = vector.shape_cast %91 : vector<1x32x32xf32> to vector<32x32xf32>
    %93 = vector.shape_cast %90 : vector<32x32xf32> to vector<1x32x32xf32>
    tpu.vector_store %arg12[%c0_31, %c0_32, %c0_33], %93 {strides = array<i32>} : memref<2x32x32xf32, #tpu.memory_space<vmem>>, vector<1x32x32xf32>,
    %c0_34 = arith.constant 0 : index
    %c0_35 = arith.constant 0 : index
    %94 = vector.load %arg7[%c0_34, %c0_35] : memref<32x288xf32, #tpu.memory_space<vmem>>, vector<32x288xf32>
    %c0_36 = arith.constant 0 : index
    %c0_37 = arith.constant 0 : index
    %95 = vector.load %arg8[%c0_36, %c0_37] : memref<32x192xf32, #tpu.memory_space<vmem>>, vector<32x192xf32>
    %c0_38 = arith.constant 0 : index
    %c0_39 = arith.constant 0 : index
    %96 = vector.load %arg9[%c0_38, %c0_39] : memref<32x96xf32, #tpu.memory_space<vmem>>, vector<32x96xf32>
    %c0_40 = arith.constant 0 : index
    %c0_41 = arith.constant 0 : index
    %97 = vector.load %arg10[%c0_40, %c0_41] : memref<3x32xf32, #tpu.memory_space<vmem>>, vector<3x32xf32>
    %c1 = arith.constant 1 : index
    %c0_42 = arith.constant 0 : index
    %c0_43 = arith.constant 0 : index
    %98 = vector.load %arg12[%c1, %c0_42, %c0_43] : memref<2x32x32xf32, #tpu.memory_space<vmem>>, vector<1x32x32xf32>
    %99 = vector.shape_cast %98 : vector<1x32x32xf32> to vector<32x32xf32>
    %cst_44 = arith.constant dense<0.000000e+00> : vector<32x288xf32>
    %100 = tpu.matmul %90, %94, %cst_44 {dimension_numbers = #tpu.dot_dimension_numbers<[1], [0], [0], [1], [0, 0, 1, 1], [], []>} : vector<32x32xf32>, vector<32x288xf32>, vector<32x288xf32> -> vector<32x288xf32>
    %cst_45 = arith.constant dense<0.000000e+00> : vector<32x192xf32>
    %101 = tpu.matmul %99, %95, %cst_45 {dimension_numbers = #tpu.dot_dimension_numbers<[1], [0], [0], [1], [0, 0, 1, 1], [], []>} : vector<32x32xf32>, vector<32x192xf32>, vector<32x192xf32> -> vector<32x192xf32>
    %102 = vector.extract_strided_slice %97 {offsets = [0, 0], sizes = [1, 32], strides = [1, 1]} : vector<3x32xf32> to vector<1x32xf32>
    %103 = vector.extract_strided_slice %97 {offsets = [1, 0], sizes = [1, 32], strides = [1, 1]} : vector<3x32xf32> to vector<1x32xf32>
    %104 = vector.extract_strided_slice %97 {offsets = [2, 0], sizes = [1, 32], strides = [1, 1]} : vector<3x32xf32> to vector<1x32xf32>
    %105 = vector.extract_strided_slice %100 {offsets = [0, 0], sizes = [32, 96], strides = [1, 1]} : vector<32x288xf32> to vector<32x96xf32>
    %106 = vector.extract_strided_slice %101 {offsets = [0, 0], sizes = [32, 96], strides = [1, 1]} : vector<32x192xf32> to vector<32x96xf32>
    %107 = arith.addf %105, %106 : vector<32x96xf32>
    %108 = vector.extract_strided_slice %100 {offsets = [0, 96], sizes = [32, 96], strides = [1, 1]} : vector<32x288xf32> to vector<32x96xf32>
    %109 = vector.extract_strided_slice %101 {offsets = [0, 96], sizes = [32, 96], strides = [1, 1]} : vector<32x192xf32> to vector<32x96xf32>
    %110 = arith.addf %108, %109 : vector<32x96xf32>
    %111 = vector.extract_strided_slice %3 {offsets = [0, 0, 0], sizes = [1, 32, 32], strides = [1, 1, 1]} : vector<3x32x32xf32> to vector<1x32x32xf32>
    %112 = vector.shape_cast %111 : vector<1x32x32xf32> to vector<32x32xf32>
    %113 = vector.extract_strided_slice %107 {offsets = [0, 0], sizes = [32, 32], strides = [1, 1]} : vector<32x96xf32> to vector<32x32xf32>
    %cst_46 = arith.constant dense<0.000000e+00> : vector<32x32xf32>
    %114 = tpu.matmul %112, %113, %cst_46 {dimension_numbers = #tpu.dot_dimension_numbers<[1], [0], [0], [1], [0, 0, 1, 1], [], []>} : vector<32x32xf32>, vector<32x32xf32>, vector<32x32xf32> -> vector<32x32xf32>
    %115 = vector.extract_strided_slice %3 {offsets = [1, 0, 0], sizes = [1, 32, 32], strides = [1, 1, 1]} : vector<3x32x32xf32> to vector<1x32x32xf32>
    %116 = vector.shape_cast %115 : vector<1x32x32xf32> to vector<32x32xf32>
    %117 = vector.extract_strided_slice %107 {offsets = [0, 32], sizes = [32, 32], strides = [1, 1]} : vector<32x96xf32> to vector<32x32xf32>
    %cst_47 = arith.constant dense<0.000000e+00> : vector<32x32xf32>
    %118 = tpu.matmul %116, %117, %cst_47 {dimension_numbers = #tpu.dot_dimension_numbers<[1], [0], [0], [1], [0, 0, 1, 1], [], []>} : vector<32x32xf32>, vector<32x32xf32>, vector<32x32xf32> -> vector<32x32xf32>
    %119 = arith.addf %114, %118 : vector<32x32xf32>
    %120 = vector.extract_strided_slice %3 {offsets = [2, 0, 0], sizes = [1, 32, 32], strides = [1, 1, 1]} : vector<3x32x32xf32> to vector<1x32x32xf32>
    %121 = vector.shape_cast %120 : vector<1x32x32xf32> to vector<32x32xf32>
    %122 = vector.extract_strided_slice %107 {offsets = [0, 64], sizes = [32, 32], strides = [1, 1]} : vector<32x96xf32> to vector<32x32xf32>
    %cst_48 = arith.constant dense<0.000000e+00> : vector<32x32xf32>
    %123 = tpu.matmul %121, %122, %cst_48 {dimension_numbers = #tpu.dot_dimension_numbers<[1], [0], [0], [1], [0, 0, 1, 1], [], []>} : vector<32x32xf32>, vector<32x32xf32>, vector<32x32xf32> -> vector<32x32xf32>
    %124 = arith.addf %119, %123 : vector<32x32xf32>
    %125 = vector.broadcast %102 : vector<1x32xf32> to vector<32x32xf32>
    %126 = arith.addf %124, %125 : vector<32x32xf32>
    %127 = arith.negf %126 : vector<32x32xf32>
    %128 = math.exp %127 : vector<32x32xf32>
    %cst_49 = arith.constant 1.000000e+00 : f32
    %129 = vector.broadcast %cst_49 : f32 to vector<32x32xf32>
    %130 = arith.addf %129, %128 : vector<32x32xf32>
    %131 = arith.divf %129, %130 : vector<32x32xf32>
    %132 = vector.extract_strided_slice %3 {offsets = [0, 0, 0], sizes = [1, 32, 32], strides = [1, 1, 1]} : vector<3x32x32xf32> to vector<1x32x32xf32>
    %133 = vector.shape_cast %132 : vector<1x32x32xf32> to vector<32x32xf32>
    %134 = vector.extract_strided_slice %110 {offsets = [0, 0], sizes = [32, 32], strides = [1, 1]} : vector<32x96xf32> to vector<32x32xf32>
    %cst_50 = arith.constant dense<0.000000e+00> : vector<32x32xf32>
    %135 = tpu.matmul %133, %134, %cst_50 {dimension_numbers = #tpu.dot_dimension_numbers<[1], [0], [0], [1], [0, 0, 1, 1], [], []>} : vector<32x32xf32>, vector<32x32xf32>, vector<32x32xf32> -> vector<32x32xf32>
    %136 = vector.extract_strided_slice %3 {offsets = [1, 0, 0], sizes = [1, 32, 32], strides = [1, 1, 1]} : vector<3x32x32xf32> to vector<1x32x32xf32>
    %137 = vector.shape_cast %136 : vector<1x32x32xf32> to vector<32x32xf32>
    %138 = vector.extract_strided_slice %110 {offsets = [0, 32], sizes = [32, 32], strides = [1, 1]} : vector<32x96xf32> to vector<32x32xf32>
    %cst_51 = arith.constant dense<0.000000e+00> : vector<32x32xf32>
    %139 = tpu.matmul %137, %138, %cst_51 {dimension_numbers = #tpu.dot_dimension_numbers<[1], [0], [0], [1], [0, 0, 1, 1], [], []>} : vector<32x32xf32>, vector<32x32xf32>, vector<32x32xf32> -> vector<32x32xf32>
    %140 = arith.addf %135, %139 : vector<32x32xf32>
    %141 = vector.extract_strided_slice %3 {offsets = [2, 0, 0], sizes = [1, 32, 32], strides = [1, 1, 1]} : vector<3x32x32xf32> to vector<1x32x32xf32>
    %142 = vector.shape_cast %141 : vector<1x32x32xf32> to vector<32x32xf32>
    %143 = vector.extract_strided_slice %110 {offsets = [0, 64], sizes = [32, 32], strides = [1, 1]} : vector<32x96xf32> to vector<32x32xf32>
    %cst_52 = arith.constant dense<0.000000e+00> : vector<32x32xf32>
    %144 = tpu.matmul %142, %143, %cst_52 {dimension_numbers = #tpu.dot_dimension_numbers<[1], [0], [0], [1], [0, 0, 1, 1], [], []>} : vector<32x32xf32>, vector<32x32xf32>, vector<32x32xf32> -> vector<32x32xf32>
    %145 = arith.addf %140, %144 : vector<32x32xf32>
    %146 = vector.broadcast %103 : vector<1x32xf32> to vector<32x32xf32>
    %147 = arith.addf %145, %146 : vector<32x32xf32>
    %148 = arith.negf %147 : vector<32x32xf32>
    %149 = math.exp %148 : vector<32x32xf32>
    %cst_53 = arith.constant 1.000000e+00 : f32
    %150 = vector.broadcast %cst_53 : f32 to vector<32x32xf32>
    %151 = arith.addf %150, %149 : vector<32x32xf32>
    %152 = arith.divf %150, %151 : vector<32x32xf32>
    %153 = arith.mulf %152, %99 : vector<32x32xf32>
    %154 = vector.extract_strided_slice %100 {offsets = [0, 192], sizes = [32, 96], strides = [1, 1]} : vector<32x288xf32> to vector<32x96xf32>
    %cst_54 = arith.constant dense<0.000000e+00> : vector<32x96xf32>
    %155 = tpu.matmul %153, %96, %cst_54 {dimension_numbers = #tpu.dot_dimension_numbers<[1], [0], [0], [1], [0, 0, 1, 1], [], []>} : vector<32x32xf32>, vector<32x96xf32>, vector<32x96xf32> -> vector<32x96xf32>
    %156 = arith.addf %154, %155 : vector<32x96xf32>
    %157 = vector.extract_strided_slice %3 {offsets = [0, 0, 0], sizes = [1, 32, 32], strides = [1, 1, 1]} : vector<3x32x32xf32> to vector<1x32x32xf32>
    %158 = vector.shape_cast %157 : vector<1x32x32xf32> to vector<32x32xf32>
    %159 = vector.extract_strided_slice %156 {offsets = [0, 0], sizes = [32, 32], strides = [1, 1]} : vector<32x96xf32> to vector<32x32xf32>
    %cst_55 = arith.constant dense<0.000000e+00> : vector<32x32xf32>
    %160 = tpu.matmul %158, %159, %cst_55 {dimension_numbers = #tpu.dot_dimension_numbers<[1], [0], [0], [1], [0, 0, 1, 1], [], []>} : vector<32x32xf32>, vector<32x32xf32>, vector<32x32xf32> -> vector<32x32xf32>
    %161 = vector.extract_strided_slice %3 {offsets = [1, 0, 0], sizes = [1, 32, 32], strides = [1, 1, 1]} : vector<3x32x32xf32> to vector<1x32x32xf32>
    %162 = vector.shape_cast %161 : vector<1x32x32xf32> to vector<32x32xf32>
    %163 = vector.extract_strided_slice %156 {offsets = [0, 32], sizes = [32, 32], strides = [1, 1]} : vector<32x96xf32> to vector<32x32xf32>
    %cst_56 = arith.constant dense<0.000000e+00> : vector<32x32xf32>
    %164 = tpu.matmul %162, %163, %cst_56 {dimension_numbers = #tpu.dot_dimension_numbers<[1], [0], [0], [1], [0, 0, 1, 1], [], []>} : vector<32x32xf32>, vector<32x32xf32>, vector<32x32xf32> -> vector<32x32xf32>
    %165 = arith.addf %160, %164 : vector<32x32xf32>
    %166 = vector.extract_strided_slice %3 {offsets = [2, 0, 0], sizes = [1, 32, 32], strides = [1, 1, 1]} : vector<3x32x32xf32> to vector<1x32x32xf32>
    %167 = vector.shape_cast %166 : vector<1x32x32xf32> to vector<32x32xf32>
    %168 = vector.extract_strided_slice %156 {offsets = [0, 64], sizes = [32, 32], strides = [1, 1]} : vector<32x96xf32> to vector<32x32xf32>
    %cst_57 = arith.constant dense<0.000000e+00> : vector<32x32xf32>
    %169 = tpu.matmul %167, %168, %cst_57 {dimension_numbers = #tpu.dot_dimension_numbers<[1], [0], [0], [1], [0, 0, 1, 1], [], []>} : vector<32x32xf32>, vector<32x32xf32>, vector<32x32xf32> -> vector<32x32xf32>
    %170 = arith.addf %165, %169 : vector<32x32xf32>
    %171 = vector.broadcast %104 : vector<1x32xf32> to vector<32x32xf32>
    %172 = arith.addf %170, %171 : vector<32x32xf32>
    %173 = math.tanh %172 : vector<32x32xf32>
    %cst_58 = arith.constant 1.000000e+00 : f32
    %174 = vector.broadcast %cst_58 : f32 to vector<32x32xf32>
    %175 = arith.subf %174, %131 : vector<32x32xf32>
    %176 = arith.mulf %175, %99 : vector<32x32xf32>
    %177 = arith.mulf %131, %173 : vector<32x32xf32>
    %178 = arith.addf %176, %177 : vector<32x32xf32>
    %c1_59 = arith.constant 1 : index
    %c0_60 = arith.constant 0 : index
    %c0_61 = arith.constant 0 : index
    %179 = vector.load %arg12[%c1_59, %c0_60, %c0_61] : memref<2x32x32xf32, #tpu.memory_space<vmem>>, vector<1x32x32xf32>
    %180 = vector.shape_cast %179 : vector<1x32x32xf32> to vector<32x32xf32>
    %181 = vector.shape_cast %178 : vector<32x32xf32> to vector<1x32x32xf32>
    tpu.vector_store %arg12[%c1_59, %c0_60, %c0_61], %181 {strides = array<i32>} : memref<2x32x32xf32, #tpu.memory_space<vmem>>, vector<1x32x32xf32>,
    %c7_i32 = arith.constant 7 : i32
    %182 = arith.cmpi eq, %arg0, %c7_i32 : i32
    %183 = arith.extui %182 : i1 to i32
    %c0_i32_62 = arith.constant 0 : i32
    %184 = arith.cmpi ne, %183, %c0_i32_62 : i32
    scf.if %184 {
      %c0_63 = arith.constant 0 : index
      %c0_64 = arith.constant 0 : index
      %c0_65 = arith.constant 0 : index
      %185 = vector.load %arg12[%c0_63, %c0_64, %c0_65] : memref<2x32x32xf32, #tpu.memory_space<vmem>>, vector<2x32x32xf32>
      %c0_66 = arith.constant 0 : index
      %c0_67 = arith.constant 0 : index
      %c0_68 = arith.constant 0 : index
      %186 = vector.load %arg11[%c0_66, %c0_67, %c0_68] : memref<2x32x32xf32, #tpu.memory_space<vmem>>, vector<2x32x32xf32>
      tpu.vector_store %arg11[%c0_66, %c0_67, %c0_68], %185 {strides = array<i32>} : memref<2x32x32xf32, #tpu.memory_space<vmem>>, vector<2x32x32xf32>,
    } else {
    }
    return
  }
  func.func @transform_0(%arg0: i32) -> (i32, i32, i32) {
    %c0_i32 = arith.constant 0 : i32
    %c0_i32_0 = arith.constant 0 : i32
    %c0_i32_1 = arith.constant 0 : i32
    return %arg0, %c0_i32, %c0_i32_0 : i32, i32, i32
  }
  func.func @transform_1(%arg0: i32) -> (i32, i32, i32) {
    %c0_i32 = arith.constant 0 : i32
    %c0_i32_0 = arith.constant 0 : i32
    %c0_i32_1 = arith.constant 0 : i32
    %c0_i32_2 = arith.constant 0 : i32
    return %c0_i32, %c0_i32_0, %c0_i32_1 : i32, i32, i32
  }
  func.func @transform_2(%arg0: i32) -> (i32, i32) {
    %c0_i32 = arith.constant 0 : i32
    %c0_i32_0 = arith.constant 0 : i32
    %c0_i32_1 = arith.constant 0 : i32
    return %c0_i32, %c0_i32_0 : i32, i32
  }
  func.func @transform_3(%arg0: i32) -> (i32, i32) {
    %c0_i32 = arith.constant 0 : i32
    %c0_i32_0 = arith.constant 0 : i32
    %c0_i32_1 = arith.constant 0 : i32
    return %c0_i32, %c0_i32_0 : i32, i32
  }
  func.func @transform_4(%arg0: i32) -> (i32, i32) {
    %c0_i32 = arith.constant 0 : i32
    %c0_i32_0 = arith.constant 0 : i32
    %c0_i32_1 = arith.constant 0 : i32
    return %c0_i32, %c0_i32_0 : i32, i32
  }
  func.func @transform_5(%arg0: i32) -> (i32, i32) {
    %c0_i32 = arith.constant 0 : i32
    %c0_i32_0 = arith.constant 0 : i32
    %c0_i32_1 = arith.constant 0 : i32
    return %c0_i32, %c0_i32_0 : i32, i32
  }
  func.func @transform_6(%arg0: i32) -> (i32, i32) {
    %c0_i32 = arith.constant 0 : i32
    %c0_i32_0 = arith.constant 0 : i32
    %c0_i32_1 = arith.constant 0 : i32
    return %c0_i32, %c0_i32_0 : i32, i32
  }
  func.func @transform_7(%arg0: i32) -> (i32, i32) {
    %c0_i32 = arith.constant 0 : i32
    %c0_i32_0 = arith.constant 0 : i32
    %c0_i32_1 = arith.constant 0 : i32
    return %c0_i32, %c0_i32_0 : i32, i32
  }
  func.func @transform_8(%arg0: i32) -> (i32, i32) {
    %c0_i32 = arith.constant 0 : i32
    %c0_i32_0 = arith.constant 0 : i32
    %c0_i32_1 = arith.constant 0 : i32
    return %c0_i32, %c0_i32_0 : i32, i32
  }
  func.func @transform_9(%arg0: i32) -> (i32, i32) {
    %c0_i32 = arith.constant 0 : i32
    %c0_i32_0 = arith.constant 0 : i32
    %c0_i32_1 = arith.constant 0 : i32
    return %c0_i32, %c0_i32_0 : i32, i32
  }
  func.func @transform_10(%arg0: i32) -> (i32, i32, i32) {
    %c0_i32 = arith.constant 0 : i32
    %c0_i32_0 = arith.constant 0 : i32
    %c0_i32_1 = arith.constant 0 : i32
    %c0_i32_2 = arith.constant 0 : i32
    return %c0_i32, %c0_i32_0, %c0_i32_1 : i32, i32, i32
  }
}

module attributes {stable_mosaic.version = 11 : i64} {
  func.func @_decoder_kernel(%arg0: i32, %arg1: memref<3x32x32xf32, #tpu.memory_space<vmem>>, %arg2: memref<2x32x32xf32, #tpu.memory_space<vmem>>, %arg3: memref<2x288xf32, #tpu.memory_space<vmem>>, %arg4: memref<32x192xf32, #tpu.memory_space<vmem>>, %arg5: memref<32x96xf32, #tpu.memory_space<vmem>>, %arg6: memref<3x32xf32, #tpu.memory_space<vmem>>, %arg7: memref<32x288xf32, #tpu.memory_space<vmem>>, %arg8: memref<32x192xf32, #tpu.memory_space<vmem>>, %arg9: memref<32x96xf32, #tpu.memory_space<vmem>>, %arg10: memref<3x32xf32, #tpu.memory_space<vmem>>, %arg11: memref<32x2xf32, #tpu.memory_space<vmem>>, %arg12: memref<1x2xf32, #tpu.memory_space<vmem>>, %arg13: memref<1x2x1xf32, #tpu.memory_space<vmem>>, %arg14: memref<1x1x1xf32, #tpu.memory_space<vmem>>, %arg15: memref<1x32x1xf32, #tpu.memory_space<vmem>>, %arg16: memref<2x32x32xf32, #tpu.memory_space<vmem>>, %arg17: memref<32x2xf32, #tpu.memory_space<vmem>>) attributes {dimension_semantics = [#tpu.dimension_semantics<arbitrary>], iteration_bounds = array<i64: 3>, scalar_prefetch = 0 : i64, scratch_operands = 2 : i64, tpu.core_type = #tpu.core_type<tc>, window_params = [{pipeline_mode = #tpu.pipeline_mode<synchronous>, transform_indices = @transform_0, window_bounds = array<i64: 3, 32, 32>}, {pipeline_mode = #tpu.pipeline_mode<synchronous>, transform_indices = @transform_1, window_bounds = array<i64: 2, 32, 32>}, {pipeline_mode = #tpu.pipeline_mode<synchronous>, transform_indices = @transform_2, window_bounds = array<i64: 2, 288>}, {pipeline_mode = #tpu.pipeline_mode<synchronous>, transform_indices = @transform_3, window_bounds = array<i64: 32, 192>}, {pipeline_mode = #tpu.pipeline_mode<synchronous>, transform_indices = @transform_4, window_bounds = array<i64: 32, 96>}, {pipeline_mode = #tpu.pipeline_mode<synchronous>, transform_indices = @transform_5, window_bounds = array<i64: 3, 32>}, {pipeline_mode = #tpu.pipeline_mode<synchronous>, transform_indices = @transform_6, window_bounds = array<i64: 32, 288>}, {pipeline_mode = #tpu.pipeline_mode<synchronous>, transform_indices = @transform_7, window_bounds = array<i64: 32, 192>}, {pipeline_mode = #tpu.pipeline_mode<synchronous>, transform_indices = @transform_8, window_bounds = array<i64: 32, 96>}, {pipeline_mode = #tpu.pipeline_mode<synchronous>, transform_indices = @transform_9, window_bounds = array<i64: 3, 32>}, {pipeline_mode = #tpu.pipeline_mode<synchronous>, transform_indices = @transform_10, window_bounds = array<i64: 32, 2>}, {pipeline_mode = #tpu.pipeline_mode<synchronous>, transform_indices = @transform_11, window_bounds = array<i64: 1, 2>}, {transform_indices = @transform_12, window_bounds = array<i64: 1, 2, 1>}, {transform_indices = @transform_13, window_bounds = array<i64: 1, 1, 1>}, {transform_indices = @transform_14, window_bounds = array<i64: 1, 32, 1>}]} {
    %c0_i32 = arith.constant 0 : i32
    %0 = arith.cmpi eq, %arg0, %c0_i32 : i32
    %1 = arith.extui %0 : i1 to i32
    %c0_i32_0 = arith.constant 0 : i32
    %2 = arith.cmpi ne, %1, %c0_i32_0 : i32
    scf.if %2 {
      %c0_78 = arith.constant 0 : index
      %c0_79 = arith.constant 0 : index
      %c0_80 = arith.constant 0 : index
      %197 = vector.load %arg2[%c0_78, %c0_79, %c0_80] : memref<2x32x32xf32, #tpu.memory_space<vmem>>, vector<2x32x32xf32>
      %c0_81 = arith.constant 0 : index
      %c0_82 = arith.constant 0 : index
      %c0_83 = arith.constant 0 : index
      %198 = vector.load %arg16[%c0_81, %c0_82, %c0_83] : memref<2x32x32xf32, #tpu.memory_space<vmem>>, vector<2x32x32xf32>
      tpu.vector_store %arg16[%c0_81, %c0_82, %c0_83], %197 {strides = array<i32>} : memref<2x32x32xf32, #tpu.memory_space<vmem>>, vector<2x32x32xf32>,
      %cst_84 = arith.constant 0.000000e+00 : f32
      %199 = vector.broadcast %cst_84 : f32 to vector<32x2xf32>
      %c0_85 = arith.constant 0 : index
      %c0_86 = arith.constant 0 : index
      %200 = vector.load %arg17[%c0_85, %c0_86] : memref<32x2xf32, #tpu.memory_space<vmem>>, vector<32x2xf32>
      tpu.vector_store %arg17[%c0_85, %c0_86], %199 {strides = array<i32>} : memref<32x2xf32, #tpu.memory_space<vmem>>, vector<32x2xf32>,
    } else {
    }
    %c0 = arith.constant 0 : index
    %c0_1 = arith.constant 0 : index
    %c0_2 = arith.constant 0 : index
    %3 = vector.load %arg1[%c0, %c0_1, %c0_2] : memref<3x32x32xf32, #tpu.memory_space<vmem>>, vector<3x32x32xf32>
    %c0_3 = arith.constant 0 : index
    %c0_4 = arith.constant 0 : index
    %4 = vector.load %arg17[%c0_3, %c0_4] : memref<32x2xf32, #tpu.memory_space<vmem>>, vector<32x2xf32>
    %c0_5 = arith.constant 0 : index
    %c0_6 = arith.constant 0 : index
    %5 = vector.load %arg3[%c0_5, %c0_6] : memref<2x288xf32, #tpu.memory_space<vmem>>, vector<2x288xf32>
    %c0_7 = arith.constant 0 : index
    %c0_8 = arith.constant 0 : index
    %6 = vector.load %arg4[%c0_7, %c0_8] : memref<32x192xf32, #tpu.memory_space<vmem>>, vector<32x192xf32>
    %c0_9 = arith.constant 0 : index
    %c0_10 = arith.constant 0 : index
    %7 = vector.load %arg5[%c0_9, %c0_10] : memref<32x96xf32, #tpu.memory_space<vmem>>, vector<32x96xf32>
    %c0_11 = arith.constant 0 : index
    %c0_12 = arith.constant 0 : index
    %8 = vector.load %arg6[%c0_11, %c0_12] : memref<3x32xf32, #tpu.memory_space<vmem>>, vector<3x32xf32>
    %c0_13 = arith.constant 0 : index
    %c0_14 = arith.constant 0 : index
    %c0_15 = arith.constant 0 : index
    %9 = vector.load %arg16[%c0_13, %c0_14, %c0_15] : memref<2x32x32xf32, #tpu.memory_space<vmem>>, vector<1x32x32xf32>
    %10 = vector.shape_cast %9 : vector<1x32x32xf32> to vector<32x32xf32>
    %cst = arith.constant dense<0.000000e+00> : vector<32x288xf32>
    %11 = tpu.matmul %4, %5, %cst {dimension_numbers = #tpu.dot_dimension_numbers<[1], [0], [0], [1], [0, 0, 1, 1], [], []>} : vector<32x2xf32>, vector<2x288xf32>, vector<32x288xf32> -> vector<32x288xf32>
    %cst_16 = arith.constant dense<0.000000e+00> : vector<32x192xf32>
    %12 = tpu.matmul %10, %6, %cst_16 {dimension_numbers = #tpu.dot_dimension_numbers<[1], [0], [0], [1], [0, 0, 1, 1], [], []>} : vector<32x32xf32>, vector<32x192xf32>, vector<32x192xf32> -> vector<32x192xf32>
    %13 = vector.extract_strided_slice %8 {offsets = [0, 0], sizes = [1, 32], strides = [1, 1]} : vector<3x32xf32> to vector<1x32xf32>
    %14 = vector.extract_strided_slice %8 {offsets = [1, 0], sizes = [1, 32], strides = [1, 1]} : vector<3x32xf32> to vector<1x32xf32>
    %15 = vector.extract_strided_slice %8 {offsets = [2, 0], sizes = [1, 32], strides = [1, 1]} : vector<3x32xf32> to vector<1x32xf32>
    %16 = vector.extract_strided_slice %11 {offsets = [0, 0], sizes = [32, 96], strides = [1, 1]} : vector<32x288xf32> to vector<32x96xf32>
    %17 = vector.extract_strided_slice %12 {offsets = [0, 0], sizes = [32, 96], strides = [1, 1]} : vector<32x192xf32> to vector<32x96xf32>
    %18 = arith.addf %16, %17 : vector<32x96xf32>
    %19 = vector.extract_strided_slice %11 {offsets = [0, 96], sizes = [32, 96], strides = [1, 1]} : vector<32x288xf32> to vector<32x96xf32>
    %20 = vector.extract_strided_slice %12 {offsets = [0, 96], sizes = [32, 96], strides = [1, 1]} : vector<32x192xf32> to vector<32x96xf32>
    %21 = arith.addf %19, %20 : vector<32x96xf32>
    %22 = vector.extract_strided_slice %3 {offsets = [0, 0, 0], sizes = [1, 32, 32], strides = [1, 1, 1]} : vector<3x32x32xf32> to vector<1x32x32xf32>
    %23 = vector.shape_cast %22 : vector<1x32x32xf32> to vector<32x32xf32>
    %24 = vector.extract_strided_slice %18 {offsets = [0, 0], sizes = [32, 32], strides = [1, 1]} : vector<32x96xf32> to vector<32x32xf32>
    %cst_17 = arith.constant dense<0.000000e+00> : vector<32x32xf32>
    %25 = tpu.matmul %23, %24, %cst_17 {dimension_numbers = #tpu.dot_dimension_numbers<[1], [0], [0], [1], [0, 0, 1, 1], [], []>} : vector<32x32xf32>, vector<32x32xf32>, vector<32x32xf32> -> vector<32x32xf32>
    %26 = vector.extract_strided_slice %3 {offsets = [1, 0, 0], sizes = [1, 32, 32], strides = [1, 1, 1]} : vector<3x32x32xf32> to vector<1x32x32xf32>
    %27 = vector.shape_cast %26 : vector<1x32x32xf32> to vector<32x32xf32>
    %28 = vector.extract_strided_slice %18 {offsets = [0, 32], sizes = [32, 32], strides = [1, 1]} : vector<32x96xf32> to vector<32x32xf32>
    %cst_18 = arith.constant dense<0.000000e+00> : vector<32x32xf32>
    %29 = tpu.matmul %27, %28, %cst_18 {dimension_numbers = #tpu.dot_dimension_numbers<[1], [0], [0], [1], [0, 0, 1, 1], [], []>} : vector<32x32xf32>, vector<32x32xf32>, vector<32x32xf32> -> vector<32x32xf32>
    %30 = arith.addf %25, %29 : vector<32x32xf32>
    %31 = vector.extract_strided_slice %3 {offsets = [2, 0, 0], sizes = [1, 32, 32], strides = [1, 1, 1]} : vector<3x32x32xf32> to vector<1x32x32xf32>
    %32 = vector.shape_cast %31 : vector<1x32x32xf32> to vector<32x32xf32>
    %33 = vector.extract_strided_slice %18 {offsets = [0, 64], sizes = [32, 32], strides = [1, 1]} : vector<32x96xf32> to vector<32x32xf32>
    %cst_19 = arith.constant dense<0.000000e+00> : vector<32x32xf32>
    %34 = tpu.matmul %32, %33, %cst_19 {dimension_numbers = #tpu.dot_dimension_numbers<[1], [0], [0], [1], [0, 0, 1, 1], [], []>} : vector<32x32xf32>, vector<32x32xf32>, vector<32x32xf32> -> vector<32x32xf32>
    %35 = arith.addf %30, %34 : vector<32x32xf32>
    %36 = vector.broadcast %13 : vector<1x32xf32> to vector<32x32xf32>
    %37 = arith.addf %35, %36 : vector<32x32xf32>
    %38 = arith.negf %37 : vector<32x32xf32>
    %39 = math.exp %38 : vector<32x32xf32>
    %cst_20 = arith.constant 1.000000e+00 : f32
    %40 = vector.broadcast %cst_20 : f32 to vector<32x32xf32>
    %41 = arith.addf %40, %39 : vector<32x32xf32>
    %42 = arith.divf %40, %41 : vector<32x32xf32>
    %43 = vector.extract_strided_slice %3 {offsets = [0, 0, 0], sizes = [1, 32, 32], strides = [1, 1, 1]} : vector<3x32x32xf32> to vector<1x32x32xf32>
    %44 = vector.shape_cast %43 : vector<1x32x32xf32> to vector<32x32xf32>
    %45 = vector.extract_strided_slice %21 {offsets = [0, 0], sizes = [32, 32], strides = [1, 1]} : vector<32x96xf32> to vector<32x32xf32>
    %cst_21 = arith.constant dense<0.000000e+00> : vector<32x32xf32>
    %46 = tpu.matmul %44, %45, %cst_21 {dimension_numbers = #tpu.dot_dimension_numbers<[1], [0], [0], [1], [0, 0, 1, 1], [], []>} : vector<32x32xf32>, vector<32x32xf32>, vector<32x32xf32> -> vector<32x32xf32>
    %47 = vector.extract_strided_slice %3 {offsets = [1, 0, 0], sizes = [1, 32, 32], strides = [1, 1, 1]} : vector<3x32x32xf32> to vector<1x32x32xf32>
    %48 = vector.shape_cast %47 : vector<1x32x32xf32> to vector<32x32xf32>
    %49 = vector.extract_strided_slice %21 {offsets = [0, 32], sizes = [32, 32], strides = [1, 1]} : vector<32x96xf32> to vector<32x32xf32>
    %cst_22 = arith.constant dense<0.000000e+00> : vector<32x32xf32>
    %50 = tpu.matmul %48, %49, %cst_22 {dimension_numbers = #tpu.dot_dimension_numbers<[1], [0], [0], [1], [0, 0, 1, 1], [], []>} : vector<32x32xf32>, vector<32x32xf32>, vector<32x32xf32> -> vector<32x32xf32>
    %51 = arith.addf %46, %50 : vector<32x32xf32>
    %52 = vector.extract_strided_slice %3 {offsets = [2, 0, 0], sizes = [1, 32, 32], strides = [1, 1, 1]} : vector<3x32x32xf32> to vector<1x32x32xf32>
    %53 = vector.shape_cast %52 : vector<1x32x32xf32> to vector<32x32xf32>
    %54 = vector.extract_strided_slice %21 {offsets = [0, 64], sizes = [32, 32], strides = [1, 1]} : vector<32x96xf32> to vector<32x32xf32>
    %cst_23 = arith.constant dense<0.000000e+00> : vector<32x32xf32>
    %55 = tpu.matmul %53, %54, %cst_23 {dimension_numbers = #tpu.dot_dimension_numbers<[1], [0], [0], [1], [0, 0, 1, 1], [], []>} : vector<32x32xf32>, vector<32x32xf32>, vector<32x32xf32> -> vector<32x32xf32>
    %56 = arith.addf %51, %55 : vector<32x32xf32>
    %57 = vector.broadcast %14 : vector<1x32xf32> to vector<32x32xf32>
    %58 = arith.addf %56, %57 : vector<32x32xf32>
    %59 = arith.negf %58 : vector<32x32xf32>
    %60 = math.exp %59 : vector<32x32xf32>
    %cst_24 = arith.constant 1.000000e+00 : f32
    %61 = vector.broadcast %cst_24 : f32 to vector<32x32xf32>
    %62 = arith.addf %61, %60 : vector<32x32xf32>
    %63 = arith.divf %61, %62 : vector<32x32xf32>
    %64 = arith.mulf %63, %10 : vector<32x32xf32>
    %65 = vector.extract_strided_slice %11 {offsets = [0, 192], sizes = [32, 96], strides = [1, 1]} : vector<32x288xf32> to vector<32x96xf32>
    %cst_25 = arith.constant dense<0.000000e+00> : vector<32x96xf32>
    %66 = tpu.matmul %64, %7, %cst_25 {dimension_numbers = #tpu.dot_dimension_numbers<[1], [0], [0], [1], [0, 0, 1, 1], [], []>} : vector<32x32xf32>, vector<32x96xf32>, vector<32x96xf32> -> vector<32x96xf32>
    %67 = arith.addf %65, %66 : vector<32x96xf32>
    %68 = vector.extract_strided_slice %3 {offsets = [0, 0, 0], sizes = [1, 32, 32], strides = [1, 1, 1]} : vector<3x32x32xf32> to vector<1x32x32xf32>
    %69 = vector.shape_cast %68 : vector<1x32x32xf32> to vector<32x32xf32>
    %70 = vector.extract_strided_slice %67 {offsets = [0, 0], sizes = [32, 32], strides = [1, 1]} : vector<32x96xf32> to vector<32x32xf32>
    %cst_26 = arith.constant dense<0.000000e+00> : vector<32x32xf32>
    %71 = tpu.matmul %69, %70, %cst_26 {dimension_numbers = #tpu.dot_dimension_numbers<[1], [0], [0], [1], [0, 0, 1, 1], [], []>} : vector<32x32xf32>, vector<32x32xf32>, vector<32x32xf32> -> vector<32x32xf32>
    %72 = vector.extract_strided_slice %3 {offsets = [1, 0, 0], sizes = [1, 32, 32], strides = [1, 1, 1]} : vector<3x32x32xf32> to vector<1x32x32xf32>
    %73 = vector.shape_cast %72 : vector<1x32x32xf32> to vector<32x32xf32>
    %74 = vector.extract_strided_slice %67 {offsets = [0, 32], sizes = [32, 32], strides = [1, 1]} : vector<32x96xf32> to vector<32x32xf32>
    %cst_27 = arith.constant dense<0.000000e+00> : vector<32x32xf32>
    %75 = tpu.matmul %73, %74, %cst_27 {dimension_numbers = #tpu.dot_dimension_numbers<[1], [0], [0], [1], [0, 0, 1, 1], [], []>} : vector<32x32xf32>, vector<32x32xf32>, vector<32x32xf32> -> vector<32x32xf32>
    %76 = arith.addf %71, %75 : vector<32x32xf32>
    %77 = vector.extract_strided_slice %3 {offsets = [2, 0, 0], sizes = [1, 32, 32], strides = [1, 1, 1]} : vector<3x32x32xf32> to vector<1x32x32xf32>
    %78 = vector.shape_cast %77 : vector<1x32x32xf32> to vector<32x32xf32>
    %79 = vector.extract_strided_slice %67 {offsets = [0, 64], sizes = [32, 32], strides = [1, 1]} : vector<32x96xf32> to vector<32x32xf32>
    %cst_28 = arith.constant dense<0.000000e+00> : vector<32x32xf32>
    %80 = tpu.matmul %78, %79, %cst_28 {dimension_numbers = #tpu.dot_dimension_numbers<[1], [0], [0], [1], [0, 0, 1, 1], [], []>} : vector<32x32xf32>, vector<32x32xf32>, vector<32x32xf32> -> vector<32x32xf32>
    %81 = arith.addf %76, %80 : vector<32x32xf32>
    %82 = vector.broadcast %15 : vector<1x32xf32> to vector<32x32xf32>
    %83 = arith.addf %81, %82 : vector<32x32xf32>
    %84 = math.tanh %83 : vector<32x32xf32>
    %cst_29 = arith.constant 1.000000e+00 : f32
    %85 = vector.broadcast %cst_29 : f32 to vector<32x32xf32>
    %86 = arith.subf %85, %42 : vector<32x32xf32>
    %87 = arith.mulf %86, %10 : vector<32x32xf32>
    %88 = arith.mulf %42, %84 : vector<32x32xf32>
    %89 = arith.addf %87, %88 : vector<32x32xf32>
    %c0_30 = arith.constant 0 : index
    %c0_31 = arith.constant 0 : index
    %c0_32 = arith.constant 0 : index
    %90 = vector.load %arg16[%c0_30, %c0_31, %c0_32] : memref<2x32x32xf32, #tpu.memory_space<vmem>>, vector<1x32x32xf32>
    %91 = vector.shape_cast %90 : vector<1x32x32xf32> to vector<32x32xf32>
    %92 = vector.shape_cast %89 : vector<32x32xf32> to vector<1x32x32xf32>
    tpu.vector_store %arg16[%c0_30, %c0_31, %c0_32], %92 {strides = array<i32>} : memref<2x32x32xf32, #tpu.memory_space<vmem>>, vector<1x32x32xf32>,
    %c0_33 = arith.constant 0 : index
    %c0_34 = arith.constant 0 : index
    %93 = vector.load %arg7[%c0_33, %c0_34] : memref<32x288xf32, #tpu.memory_space<vmem>>, vector<32x288xf32>
    %c0_35 = arith.constant 0 : index
    %c0_36 = arith.constant 0 : index
    %94 = vector.load %arg8[%c0_35, %c0_36] : memref<32x192xf32, #tpu.memory_space<vmem>>, vector<32x192xf32>
    %c0_37 = arith.constant 0 : index
    %c0_38 = arith.constant 0 : index
    %95 = vector.load %arg9[%c0_37, %c0_38] : memref<32x96xf32, #tpu.memory_space<vmem>>, vector<32x96xf32>
    %c0_39 = arith.constant 0 : index
    %c0_40 = arith.constant 0 : index
    %96 = vector.load %arg10[%c0_39, %c0_40] : memref<3x32xf32, #tpu.memory_space<vmem>>, vector<3x32xf32>
    %c1 = arith.constant 1 : index
    %c0_41 = arith.constant 0 : index
    %c0_42 = arith.constant 0 : index
    %97 = vector.load %arg16[%c1, %c0_41, %c0_42] : memref<2x32x32xf32, #tpu.memory_space<vmem>>, vector<1x32x32xf32>
    %98 = vector.shape_cast %97 : vector<1x32x32xf32> to vector<32x32xf32>
    %cst_43 = arith.constant dense<0.000000e+00> : vector<32x288xf32>
    %99 = tpu.matmul %89, %93, %cst_43 {dimension_numbers = #tpu.dot_dimension_numbers<[1], [0], [0], [1], [0, 0, 1, 1], [], []>} : vector<32x32xf32>, vector<32x288xf32>, vector<32x288xf32> -> vector<32x288xf32>
    %cst_44 = arith.constant dense<0.000000e+00> : vector<32x192xf32>
    %100 = tpu.matmul %98, %94, %cst_44 {dimension_numbers = #tpu.dot_dimension_numbers<[1], [0], [0], [1], [0, 0, 1, 1], [], []>} : vector<32x32xf32>, vector<32x192xf32>, vector<32x192xf32> -> vector<32x192xf32>
    %101 = vector.extract_strided_slice %96 {offsets = [0, 0], sizes = [1, 32], strides = [1, 1]} : vector<3x32xf32> to vector<1x32xf32>
    %102 = vector.extract_strided_slice %96 {offsets = [1, 0], sizes = [1, 32], strides = [1, 1]} : vector<3x32xf32> to vector<1x32xf32>
    %103 = vector.extract_strided_slice %96 {offsets = [2, 0], sizes = [1, 32], strides = [1, 1]} : vector<3x32xf32> to vector<1x32xf32>
    %104 = vector.extract_strided_slice %99 {offsets = [0, 0], sizes = [32, 96], strides = [1, 1]} : vector<32x288xf32> to vector<32x96xf32>
    %105 = vector.extract_strided_slice %100 {offsets = [0, 0], sizes = [32, 96], strides = [1, 1]} : vector<32x192xf32> to vector<32x96xf32>
    %106 = arith.addf %104, %105 : vector<32x96xf32>
    %107 = vector.extract_strided_slice %99 {offsets = [0, 96], sizes = [32, 96], strides = [1, 1]} : vector<32x288xf32> to vector<32x96xf32>
    %108 = vector.extract_strided_slice %100 {offsets = [0, 96], sizes = [32, 96], strides = [1, 1]} : vector<32x192xf32> to vector<32x96xf32>
    %109 = arith.addf %107, %108 : vector<32x96xf32>
    %110 = vector.extract_strided_slice %3 {offsets = [0, 0, 0], sizes = [1, 32, 32], strides = [1, 1, 1]} : vector<3x32x32xf32> to vector<1x32x32xf32>
    %111 = vector.shape_cast %110 : vector<1x32x32xf32> to vector<32x32xf32>
    %112 = vector.extract_strided_slice %106 {offsets = [0, 0], sizes = [32, 32], strides = [1, 1]} : vector<32x96xf32> to vector<32x32xf32>
    %cst_45 = arith.constant dense<0.000000e+00> : vector<32x32xf32>
    %113 = tpu.matmul %111, %112, %cst_45 {dimension_numbers = #tpu.dot_dimension_numbers<[1], [0], [0], [1], [0, 0, 1, 1], [], []>} : vector<32x32xf32>, vector<32x32xf32>, vector<32x32xf32> -> vector<32x32xf32>
    %114 = vector.extract_strided_slice %3 {offsets = [1, 0, 0], sizes = [1, 32, 32], strides = [1, 1, 1]} : vector<3x32x32xf32> to vector<1x32x32xf32>
    %115 = vector.shape_cast %114 : vector<1x32x32xf32> to vector<32x32xf32>
    %116 = vector.extract_strided_slice %106 {offsets = [0, 32], sizes = [32, 32], strides = [1, 1]} : vector<32x96xf32> to vector<32x32xf32>
    %cst_46 = arith.constant dense<0.000000e+00> : vector<32x32xf32>
    %117 = tpu.matmul %115, %116, %cst_46 {dimension_numbers = #tpu.dot_dimension_numbers<[1], [0], [0], [1], [0, 0, 1, 1], [], []>} : vector<32x32xf32>, vector<32x32xf32>, vector<32x32xf32> -> vector<32x32xf32>
    %118 = arith.addf %113, %117 : vector<32x32xf32>
    %119 = vector.extract_strided_slice %3 {offsets = [2, 0, 0], sizes = [1, 32, 32], strides = [1, 1, 1]} : vector<3x32x32xf32> to vector<1x32x32xf32>
    %120 = vector.shape_cast %119 : vector<1x32x32xf32> to vector<32x32xf32>
    %121 = vector.extract_strided_slice %106 {offsets = [0, 64], sizes = [32, 32], strides = [1, 1]} : vector<32x96xf32> to vector<32x32xf32>
    %cst_47 = arith.constant dense<0.000000e+00> : vector<32x32xf32>
    %122 = tpu.matmul %120, %121, %cst_47 {dimension_numbers = #tpu.dot_dimension_numbers<[1], [0], [0], [1], [0, 0, 1, 1], [], []>} : vector<32x32xf32>, vector<32x32xf32>, vector<32x32xf32> -> vector<32x32xf32>
    %123 = arith.addf %118, %122 : vector<32x32xf32>
    %124 = vector.broadcast %101 : vector<1x32xf32> to vector<32x32xf32>
    %125 = arith.addf %123, %124 : vector<32x32xf32>
    %126 = arith.negf %125 : vector<32x32xf32>
    %127 = math.exp %126 : vector<32x32xf32>
    %cst_48 = arith.constant 1.000000e+00 : f32
    %128 = vector.broadcast %cst_48 : f32 to vector<32x32xf32>
    %129 = arith.addf %128, %127 : vector<32x32xf32>
    %130 = arith.divf %128, %129 : vector<32x32xf32>
    %131 = vector.extract_strided_slice %3 {offsets = [0, 0, 0], sizes = [1, 32, 32], strides = [1, 1, 1]} : vector<3x32x32xf32> to vector<1x32x32xf32>
    %132 = vector.shape_cast %131 : vector<1x32x32xf32> to vector<32x32xf32>
    %133 = vector.extract_strided_slice %109 {offsets = [0, 0], sizes = [32, 32], strides = [1, 1]} : vector<32x96xf32> to vector<32x32xf32>
    %cst_49 = arith.constant dense<0.000000e+00> : vector<32x32xf32>
    %134 = tpu.matmul %132, %133, %cst_49 {dimension_numbers = #tpu.dot_dimension_numbers<[1], [0], [0], [1], [0, 0, 1, 1], [], []>} : vector<32x32xf32>, vector<32x32xf32>, vector<32x32xf32> -> vector<32x32xf32>
    %135 = vector.extract_strided_slice %3 {offsets = [1, 0, 0], sizes = [1, 32, 32], strides = [1, 1, 1]} : vector<3x32x32xf32> to vector<1x32x32xf32>
    %136 = vector.shape_cast %135 : vector<1x32x32xf32> to vector<32x32xf32>
    %137 = vector.extract_strided_slice %109 {offsets = [0, 32], sizes = [32, 32], strides = [1, 1]} : vector<32x96xf32> to vector<32x32xf32>
    %cst_50 = arith.constant dense<0.000000e+00> : vector<32x32xf32>
    %138 = tpu.matmul %136, %137, %cst_50 {dimension_numbers = #tpu.dot_dimension_numbers<[1], [0], [0], [1], [0, 0, 1, 1], [], []>} : vector<32x32xf32>, vector<32x32xf32>, vector<32x32xf32> -> vector<32x32xf32>
    %139 = arith.addf %134, %138 : vector<32x32xf32>
    %140 = vector.extract_strided_slice %3 {offsets = [2, 0, 0], sizes = [1, 32, 32], strides = [1, 1, 1]} : vector<3x32x32xf32> to vector<1x32x32xf32>
    %141 = vector.shape_cast %140 : vector<1x32x32xf32> to vector<32x32xf32>
    %142 = vector.extract_strided_slice %109 {offsets = [0, 64], sizes = [32, 32], strides = [1, 1]} : vector<32x96xf32> to vector<32x32xf32>
    %cst_51 = arith.constant dense<0.000000e+00> : vector<32x32xf32>
    %143 = tpu.matmul %141, %142, %cst_51 {dimension_numbers = #tpu.dot_dimension_numbers<[1], [0], [0], [1], [0, 0, 1, 1], [], []>} : vector<32x32xf32>, vector<32x32xf32>, vector<32x32xf32> -> vector<32x32xf32>
    %144 = arith.addf %139, %143 : vector<32x32xf32>
    %145 = vector.broadcast %102 : vector<1x32xf32> to vector<32x32xf32>
    %146 = arith.addf %144, %145 : vector<32x32xf32>
    %147 = arith.negf %146 : vector<32x32xf32>
    %148 = math.exp %147 : vector<32x32xf32>
    %cst_52 = arith.constant 1.000000e+00 : f32
    %149 = vector.broadcast %cst_52 : f32 to vector<32x32xf32>
    %150 = arith.addf %149, %148 : vector<32x32xf32>
    %151 = arith.divf %149, %150 : vector<32x32xf32>
    %152 = arith.mulf %151, %98 : vector<32x32xf32>
    %153 = vector.extract_strided_slice %99 {offsets = [0, 192], sizes = [32, 96], strides = [1, 1]} : vector<32x288xf32> to vector<32x96xf32>
    %cst_53 = arith.constant dense<0.000000e+00> : vector<32x96xf32>
    %154 = tpu.matmul %152, %95, %cst_53 {dimension_numbers = #tpu.dot_dimension_numbers<[1], [0], [0], [1], [0, 0, 1, 1], [], []>} : vector<32x32xf32>, vector<32x96xf32>, vector<32x96xf32> -> vector<32x96xf32>
    %155 = arith.addf %153, %154 : vector<32x96xf32>
    %156 = vector.extract_strided_slice %3 {offsets = [0, 0, 0], sizes = [1, 32, 32], strides = [1, 1, 1]} : vector<3x32x32xf32> to vector<1x32x32xf32>
    %157 = vector.shape_cast %156 : vector<1x32x32xf32> to vector<32x32xf32>
    %158 = vector.extract_strided_slice %155 {offsets = [0, 0], sizes = [32, 32], strides = [1, 1]} : vector<32x96xf32> to vector<32x32xf32>
    %cst_54 = arith.constant dense<0.000000e+00> : vector<32x32xf32>
    %159 = tpu.matmul %157, %158, %cst_54 {dimension_numbers = #tpu.dot_dimension_numbers<[1], [0], [0], [1], [0, 0, 1, 1], [], []>} : vector<32x32xf32>, vector<32x32xf32>, vector<32x32xf32> -> vector<32x32xf32>
    %160 = vector.extract_strided_slice %3 {offsets = [1, 0, 0], sizes = [1, 32, 32], strides = [1, 1, 1]} : vector<3x32x32xf32> to vector<1x32x32xf32>
    %161 = vector.shape_cast %160 : vector<1x32x32xf32> to vector<32x32xf32>
    %162 = vector.extract_strided_slice %155 {offsets = [0, 32], sizes = [32, 32], strides = [1, 1]} : vector<32x96xf32> to vector<32x32xf32>
    %cst_55 = arith.constant dense<0.000000e+00> : vector<32x32xf32>
    %163 = tpu.matmul %161, %162, %cst_55 {dimension_numbers = #tpu.dot_dimension_numbers<[1], [0], [0], [1], [0, 0, 1, 1], [], []>} : vector<32x32xf32>, vector<32x32xf32>, vector<32x32xf32> -> vector<32x32xf32>
    %164 = arith.addf %159, %163 : vector<32x32xf32>
    %165 = vector.extract_strided_slice %3 {offsets = [2, 0, 0], sizes = [1, 32, 32], strides = [1, 1, 1]} : vector<3x32x32xf32> to vector<1x32x32xf32>
    %166 = vector.shape_cast %165 : vector<1x32x32xf32> to vector<32x32xf32>
    %167 = vector.extract_strided_slice %155 {offsets = [0, 64], sizes = [32, 32], strides = [1, 1]} : vector<32x96xf32> to vector<32x32xf32>
    %cst_56 = arith.constant dense<0.000000e+00> : vector<32x32xf32>
    %168 = tpu.matmul %166, %167, %cst_56 {dimension_numbers = #tpu.dot_dimension_numbers<[1], [0], [0], [1], [0, 0, 1, 1], [], []>} : vector<32x32xf32>, vector<32x32xf32>, vector<32x32xf32> -> vector<32x32xf32>
    %169 = arith.addf %164, %168 : vector<32x32xf32>
    %170 = vector.broadcast %103 : vector<1x32xf32> to vector<32x32xf32>
    %171 = arith.addf %169, %170 : vector<32x32xf32>
    %172 = math.tanh %171 : vector<32x32xf32>
    %cst_57 = arith.constant 1.000000e+00 : f32
    %173 = vector.broadcast %cst_57 : f32 to vector<32x32xf32>
    %174 = arith.subf %173, %130 : vector<32x32xf32>
    %175 = arith.mulf %174, %98 : vector<32x32xf32>
    %176 = arith.mulf %130, %172 : vector<32x32xf32>
    %177 = arith.addf %175, %176 : vector<32x32xf32>
    %c1_58 = arith.constant 1 : index
    %c0_59 = arith.constant 0 : index
    %c0_60 = arith.constant 0 : index
    %178 = vector.load %arg16[%c1_58, %c0_59, %c0_60] : memref<2x32x32xf32, #tpu.memory_space<vmem>>, vector<1x32x32xf32>
    %179 = vector.shape_cast %178 : vector<1x32x32xf32> to vector<32x32xf32>
    %180 = vector.shape_cast %177 : vector<32x32xf32> to vector<1x32x32xf32>
    tpu.vector_store %arg16[%c1_58, %c0_59, %c0_60], %180 {strides = array<i32>} : memref<2x32x32xf32, #tpu.memory_space<vmem>>, vector<1x32x32xf32>,
    %c0_61 = arith.constant 0 : index
    %c0_62 = arith.constant 0 : index
    %181 = vector.load %arg11[%c0_61, %c0_62] : memref<32x2xf32, #tpu.memory_space<vmem>>, vector<32x2xf32>
    %cst_63 = arith.constant dense<0.000000e+00> : vector<32x2xf32>
    %182 = tpu.matmul %177, %181, %cst_63 {dimension_numbers = #tpu.dot_dimension_numbers<[1], [0], [0], [1], [0, 0, 1, 1], [], []>} : vector<32x32xf32>, vector<32x2xf32>, vector<32x2xf32> -> vector<32x2xf32>
    %c0_64 = arith.constant 0 : index
    %c0_65 = arith.constant 0 : index
    %183 = vector.load %arg12[%c0_64, %c0_65] : memref<1x2xf32, #tpu.memory_space<vmem>>, vector<1x2xf32>
    %184 = vector.broadcast %183 : vector<1x2xf32> to vector<32x2xf32>
    %185 = arith.addf %182, %184 : vector<32x2xf32>
    %c0_66 = arith.constant 0 : index
    %c0_67 = arith.constant 0 : index
    %186 = vector.load %arg17[%c0_66, %c0_67] : memref<32x2xf32, #tpu.memory_space<vmem>>, vector<32x2xf32>
    tpu.vector_store %arg17[%c0_66, %c0_67], %185 {strides = array<i32>} : memref<32x2xf32, #tpu.memory_space<vmem>>, vector<32x2xf32>,
    %c0_68 = arith.constant 0 : index
    %c0_69 = arith.constant 0 : index
    %c0_70 = arith.constant 0 : index
    %187 = vector.load %arg13[%c0_68, %c0_69, %c0_70] : memref<1x2x1xf32, #tpu.memory_space<vmem>>, vector<1x2x1xf32>
    %188 = vector.shape_cast %187 : vector<1x2x1xf32> to vector<2x1xf32>
    %cst_71 = arith.constant dense<0.000000e+00> : vector<32x1xf32>
    %189 = tpu.matmul %185, %188, %cst_71 {dimension_numbers = #tpu.dot_dimension_numbers<[1], [0], [0], [1], [0, 0, 1, 1], [], []>} : vector<32x2xf32>, vector<2x1xf32>, vector<32x1xf32> -> vector<32x1xf32>
    %c0_72 = arith.constant 0 : index
    %c0_73 = arith.constant 0 : index
    %c0_74 = arith.constant 0 : index
    %190 = vector.load %arg14[%c0_72, %c0_73, %c0_74] : memref<1x1x1xf32, #tpu.memory_space<vmem>>, vector<1x1x1xf32>
    %191 = vector.shape_cast %190 : vector<1x1x1xf32> to vector<1x1xf32>
    %192 = vector.broadcast %191 : vector<1x1xf32> to vector<32x1xf32>
    %193 = arith.addf %189, %192 : vector<32x1xf32>
    %c0_75 = arith.constant 0 : index
    %c0_76 = arith.constant 0 : index
    %c0_77 = arith.constant 0 : index
    %194 = vector.load %arg15[%c0_75, %c0_76, %c0_77] : memref<1x32x1xf32, #tpu.memory_space<vmem>>, vector<1x32x1xf32>
    %195 = vector.shape_cast %194 : vector<1x32x1xf32> to vector<32x1xf32>
    %196 = vector.shape_cast %193 : vector<32x1xf32> to vector<1x32x1xf32>
    tpu.vector_store %arg15[%c0_75, %c0_76, %c0_77], %196 {strides = array<i32>} : memref<1x32x1xf32, #tpu.memory_space<vmem>>, vector<1x32x1xf32>,
    return
  }
  func.func @transform_0(%arg0: i32) -> (i32, i32, i32) {
    %c0_i32 = arith.constant 0 : i32
    %c0_i32_0 = arith.constant 0 : i32
    %c0_i32_1 = arith.constant 0 : i32
    %c0_i32_2 = arith.constant 0 : i32
    return %c0_i32, %c0_i32_0, %c0_i32_1 : i32, i32, i32
  }
  func.func @transform_1(%arg0: i32) -> (i32, i32, i32) {
    %c0_i32 = arith.constant 0 : i32
    %c0_i32_0 = arith.constant 0 : i32
    %c0_i32_1 = arith.constant 0 : i32
    %c0_i32_2 = arith.constant 0 : i32
    return %c0_i32, %c0_i32_0, %c0_i32_1 : i32, i32, i32
  }
  func.func @transform_2(%arg0: i32) -> (i32, i32) {
    %c0_i32 = arith.constant 0 : i32
    %c0_i32_0 = arith.constant 0 : i32
    %c0_i32_1 = arith.constant 0 : i32
    return %c0_i32, %c0_i32_0 : i32, i32
  }
  func.func @transform_3(%arg0: i32) -> (i32, i32) {
    %c0_i32 = arith.constant 0 : i32
    %c0_i32_0 = arith.constant 0 : i32
    %c0_i32_1 = arith.constant 0 : i32
    return %c0_i32, %c0_i32_0 : i32, i32
  }
  func.func @transform_4(%arg0: i32) -> (i32, i32) {
    %c0_i32 = arith.constant 0 : i32
    %c0_i32_0 = arith.constant 0 : i32
    %c0_i32_1 = arith.constant 0 : i32
    return %c0_i32, %c0_i32_0 : i32, i32
  }
  func.func @transform_5(%arg0: i32) -> (i32, i32) {
    %c0_i32 = arith.constant 0 : i32
    %c0_i32_0 = arith.constant 0 : i32
    %c0_i32_1 = arith.constant 0 : i32
    return %c0_i32, %c0_i32_0 : i32, i32
  }
  func.func @transform_6(%arg0: i32) -> (i32, i32) {
    %c0_i32 = arith.constant 0 : i32
    %c0_i32_0 = arith.constant 0 : i32
    %c0_i32_1 = arith.constant 0 : i32
    return %c0_i32, %c0_i32_0 : i32, i32
  }
  func.func @transform_7(%arg0: i32) -> (i32, i32) {
    %c0_i32 = arith.constant 0 : i32
    %c0_i32_0 = arith.constant 0 : i32
    %c0_i32_1 = arith.constant 0 : i32
    return %c0_i32, %c0_i32_0 : i32, i32
  }
  func.func @transform_8(%arg0: i32) -> (i32, i32) {
    %c0_i32 = arith.constant 0 : i32
    %c0_i32_0 = arith.constant 0 : i32
    %c0_i32_1 = arith.constant 0 : i32
    return %c0_i32, %c0_i32_0 : i32, i32
  }
  func.func @transform_9(%arg0: i32) -> (i32, i32) {
    %c0_i32 = arith.constant 0 : i32
    %c0_i32_0 = arith.constant 0 : i32
    %c0_i32_1 = arith.constant 0 : i32
    return %c0_i32, %c0_i32_0 : i32, i32
  }
  func.func @transform_10(%arg0: i32) -> (i32, i32) {
    %c0_i32 = arith.constant 0 : i32
    %c0_i32_0 = arith.constant 0 : i32
    %c0_i32_1 = arith.constant 0 : i32
    return %c0_i32, %c0_i32_0 : i32, i32
  }
  func.func @transform_11(%arg0: i32) -> (i32, i32) {
    %c0_i32 = arith.constant 0 : i32
    %c0_i32_0 = arith.constant 0 : i32
    %c0_i32_1 = arith.constant 0 : i32
    return %c0_i32, %c0_i32_0 : i32, i32
  }
  func.func @transform_12(%arg0: i32) -> (i32, i32, i32) {
    %c0_i32 = arith.constant 0 : i32
    %c0_i32_0 = arith.constant 0 : i32
    %c0_i32_1 = arith.constant 0 : i32
    return %arg0, %c0_i32, %c0_i32_0 : i32, i32, i32
  }
  func.func @transform_13(%arg0: i32) -> (i32, i32, i32) {
    %c0_i32 = arith.constant 0 : i32
    %c0_i32_0 = arith.constant 0 : i32
    %c0_i32_1 = arith.constant 0 : i32
    return %arg0, %c0_i32, %c0_i32_0 : i32, i32, i32
  }
  func.func @transform_14(%arg0: i32) -> (i32, i32, i32) {
    %c0_i32 = arith.constant 0 : i32
    %c0_i32_0 = arith.constant 0 : i32
    %c0_i32_1 = arith.constant 0 : i32
    return %arg0, %c0_i32, %c0_i32_0 : i32, i32, i32
  }
}

</mosaic_0001>

<bundles_post_ra>
// kernel: dcrnn_forward.2
= control target key start
LH: loop header
LB: loop body
LE: loop exit
PB: predicated region body
PF: predicated region fallthrough
CT: control target
= control target key end

     0   :  { %s4435_s13 = smov 0   ;;  %s5098_s0 = inlined_call_operand.vmem [shape: f32[8,32,2], index: 0, kind: input, shape index: {}]   ;;  %s5099_s1 = inlined_call_operand.vmem [shape: f32[3,32,32], index: 1, kind: input, shape index: {}]   ;;  %s5100_s2 = inlined_call_operand.vmem [shape: f32[2,288], index: 2, kind: input, shape index: {}]   ;;  %s5101_s3 = inlined_call_operand.vmem [shape: f32[32,192], index: 3, kind: input, shape index: {}]   ;;  %s5102_s4 = inlined_call_operand.vmem [shape: f32[32,96], index: 4, kind: input, shape index: {}]   ;;  %s5103_s5 = inlined_call_operand.vmem [shape: f32[3,32], index: 5, kind: input, shape index: {}]   ;;  %s5104_s6 = inlined_call_operand.vmem [shape: f32[32,288], index: 6, kind: input, shape index: {}]   ;;  %s5105_s7 = inlined_call_operand.vmem [shape: f32[32,192], index: 7, kind: input, shape index: {}]   ;;  %s5106_s8 = inlined_call_operand.vmem [shape: f32[32,96], index: 8, kind: input, shape index: {}]   ;;  %s5107_s9 = inlined_call_operand.vmem [shape: f32[3,32], index: 9, kind: input, shape index: {}]   ;;  %s5108_s10 = inlined_call_operand.vmem [shape: f32[2,32,32], index: 10, kind: output, shape index: {}]  }
   0x1 LB: > { %s4441_s14 = sadd.s32 4294967295, %s4372_s13   ;;  %p3289_p0 = scmp.ge.s32.totalorder %s4372_s13, 1  ;;  %s4372_s13 = sphi %s4435_s13, %s20_s13  }
   0x2   : > { %p307_p1 = scmp.lt.s32.totalorder %s4372_s13, 9 }
   0x4   : > { %p308_p2 = pnand %p3289_p0, %p307_p1 }
   0x5   : > { %p340_p3 = scmp.lt.s32.totalorder (!%p308_p2), %s4441_s14, 7  ;;  %p3292_p4 = scmp.ne.s32.totalorder (!%p308_p2), %s4441_s14, 0 }
   0x6   : > { %311 = sbr.rel (%p308_p2) target bundleno = 2675 (0xa73), region = 60 }
   0xd   : > { %s341_s15 = scalar_select %p340_p3, %s4441_s14, 7 }
   0xe   : > { %348 = sbr.rel (%p3292_p4) target bundleno = 21 (0x15), region = 64  ;;  %vm349_vm0 = vcmask (!%p3292_p4), 261120   ;;  %v4374_v0 = vmov (!%p3292_p4), 0.0  }
   0xf   : > { %s3419_s16 = sshll.u32 %s341_s15, 5  ;;  %350 = vst.msk [vmem:[#allocation2] sm:$0xff] (!%p3292_p4), %vm349_vm0, %v4374_v0  ;;  %351 = vst.msk [vmem:[#allocation2 + $0x8] sm:$0xff] (!%p3292_p4), %vm349_vm0, %v4374_v0 }
  0x10   : > { %s4450_s19 = scalar_lea.vmem %s5098_s0, %s3419_s16  ;;  %352 = vst.msk [vmem:[#allocation2 + $0x10] sm:$0xff] (!%p3292_p4), %vm349_vm0, %v4374_v0  ;;  %353 = vst.msk [vmem:[#allocation2 + $0x18] sm:$0xff] (!%p3292_p4), %vm349_vm0, %v4374_v0 }
  0x11   : > { %354 = vst.msk [vmem:[#allocation2 + $0x20] sm:$0xff] (!%p3292_p4), %vm349_vm0, %v4374_v0  ;;  %355 = vst.msk [vmem:[#allocation2 + $0x28] sm:$0xff] (!%p3292_p4), %vm349_vm0, %v4374_v0 }
  0x12   : > { %356 = vst.msk [vmem:[#allocation2 + $0x30] sm:$0xff] (!%p3292_p4), %vm349_vm0, %v4374_v0  ;;  %357 = vst.msk [vmem:[#allocation2 + $0x38] sm:$0xff] (!%p3292_p4), %vm349_vm0, %v4374_v0 }
  0x15 PF: > { %v374_v1 = vld [vmem:[%s5100_s2] sm:$0x3f]  ;;  %v397_v2 = vlaneseq  ;;  %v4375_v3 = vmov 1983009808   ;;  %v4376_v5 = vmov 0.0   ;;  %vm409_vm1 = vcmask 15360  }
  0x16   : > { %v395_v4 = vunpack.c.l.s4 %v4375_v3  ;;  %493 = vmatprep.mubr.f32.mxu0 %v4376_v5  ;;  %v370_v6 = vld [vmem:[%s4450_s19] sm:$0xff]  ;;  %v393_v9 = vcombine.high %v374_v1, %v374_v1  ;;  %v376_v11 = vld [vmem:[%s5101_s3 + $0x8] sm:$0xff]  ;;  %v378_v12 = vld [vmem:[%s5101_s3 + $0x18] sm:$0xff]  ;;  %vm422_vm2 = vcmask 1041408   ;;  %vm603_vm3 = vcmask 261120   ;;  %s4377_s22 = smov 32  }
  0x17   : > { %v4458_v7 = vshrl.u32 %v397_v2, 7  ;;  %3595 = vmatprep.mubr.msk.f32.mxu1 %vm409_vm1, %v370_v6  ;;  %v375_v15 = vld [vmem:[%s5101_s3] sm:$0xff]  ;;  %v377_v16 = vld [vmem:[%s5101_s3 + $0x10] sm:$0xff]  ;;  %v371_v17 = vld [vmem:[%s4450_s19 + $0x8] sm:$0xff]  ;;  %v3895_v18 = vpack.c.bf16 %v378_v12, %v376_v11  ;;  %s4378_s23 = smov 96   ;;  %s4379_s12 = smov 64  }
  0x18   : > { %v396_v8 = vunpack.c.0.s8 %v395_v4  ;;  %v380_v20 = vld [vmem:[%s5101_s3 + $0x28] sm:$0xff]  ;;  %v382_v21 = vld [vmem:[%s5101_s3 + $0x38] sm:$0xff]  ;;  %v3897_v22 = vpack.c.bf16 %v377_v16, %v375_v15  ;;  %v379_v23 = vld [vmem:[%s5101_s3 + $0x20] sm:$0xff]  ;;  %p3416_p5 = scmp.ne.s32.totalorder %s4441_s14, 7 }
  0x19   : > { %v381_v24 = vld [vmem:[%s5101_s3 + $0x30] sm:$0xff]  ;;  %v3899_v26 = vpack.c.bf16 %v382_v21, %v380_v20  ;;  %v373_v27 = vld [vmem:[%s4450_s19 + $0x18] sm:$0xff]  ;;  %v4514_v31 = vld [vmem:[#allocation2] sm:$0xff] }
  0x1a   : > { %v399_v10 = vsub.s32 %v396_v8, %v4458_v7  ;;  %v372_v25 = vld [vmem:[%s4450_s19 + $0x10] sm:$0xff]  ;;  %v3901_v28 = vpack.c.bf16 %v381_v24, %v379_v23  ;;  %v4508_v30 = vld [vmem:[#allocation2 + $0x18] sm:$0xff]  ;;  %v4519_v32 = vld [vmem:[#allocation2 + $0x8] sm:$0xff] }
  0x1b   : > { %v4501_v29 = vld [vmem:[#allocation2 + $0x10] sm:$0xff]  ;;  %v4544_v53 = vld [vmem:[%s5099_s1 + $0x20] sm:$0xff]  ;;  %v4563_v8 = vld [vmem:[%s5099_s1 + $0x28] sm:$0xff] }
  0x1c   : > { %v400_v13 = vrot.slane %v374_v1, %v399_v10  ;;  %v407_v14 = vrot.slane %v393_v9, %v399_v10  ;;  %v4568_v9 = vld [vmem:[%s5099_s1 + $0x30] sm:$0xff]  ;;  %v4579_v10 = vld [vmem:[%s5099_s1 + $0x38] sm:$0xff]  ;;  %v4584_v11 = vld [vmem:[%s5099_s1] sm:$0xff] }
  0x1e   : > { %v408_v19 = vcombine.high %v400_v13, %v400_v13  ;;  %3593 = vmatprep.subr.msk.mxu1 %vm422_vm2, %v407_v14 }
  0x1f   : > { %3594 = vmatpush3.msk.msra.mxu1 %vm422_vm2, %v407_v14 }
  0x20   : > { %3293 = vmatprep.subr.msk.mxu0 %vm422_vm2, %v408_v19  ;;  %3596 = vmatmul.mubr.msk.f32.vlgmr.msra.gmra.mrb[0].mxu1 %vm409_vm1, %v371_v17 }
  0x21   : > { %3294 = vmatpush1.msk.msra.mxu0 %vm422_vm2, %v400_v13  ;;  %4087 = vmatprep.subr.bf16.mxu1 %v3895_v18 }
  0x22   : > { %3295 = vmatmul.mubr.msk.f32.vlgmr.msra.gmra.mrb[0].mxu0 %vm409_vm1, %v370_v6  ;;  %3896 = vmatprep.subr.bf16.mxu0 %v3895_v18 }
  0x23   : > { %3898 = vmatpush1.bf16.msra.mxu0 %v3897_v22  ;;  %4089 = vmatpush1.bf16.msra.mxu1 %v3897_v22 }
  0x24   : > { %499 = vmatprep.mubr.f32.mxu0 %v4376_v5  ;;  %3598 = vmatprep.mubr.msk.f32.mxu1 %vm409_vm1, %v372_v25 }
  0x25   : > { %3599 = vmatmul.mubr.msk.f32.gmra.mrb[2].mxu1 %vm409_vm1, %v373_v27  ;;  %4088 = vmatprep.subr.bf16.mxu1 %v3899_v26 }
  0x26   : > { %3296 = vmatmul.mubr.msk.f32.gmra.mrb[2].mxu0 %vm409_vm1, %v371_v17  ;;  %692 = vmatprep.mubr.f32.mxu1 %v4376_v5 }
  0x27   : > { %4090 = vmatpush1.bf16.msra.mxu1 %v3901_v28  ;;  %505 = vmatprep.mubr.f32.mxu0 %v4376_v5 }
  0x28   : > { %3900 = vmatprep.subr.bf16.mxu0 %v3899_v26 }
  0x29   : > { %3902 = vmatpush1.bf16.msra.mxu0 %v3901_v28 }
  0x2a   : > { %3297 = vmatmul.mubr.msk.f32.gmra.mrb[4].mxu0 %vm409_vm1, %v372_v25  ;;  %3306 = vmatmul.mubr.msk.f32.vlgmr.msra.gmra.mrb[4].mxu1 %vm603_vm3, %v4501_v29 }
  0x2b   : > { %511 = vmatprep.mubr.f32.mxu0 %v4376_v5  ;;  %698 = vmatprep.mubr.f32.mxu1 %v4376_v5 }
  0x2e   : > { %3298 = vmatmul.mubr.msk.f32.gmra.mrb[6].mxu0 %vm409_vm1, %v373_v27  ;;  %3307 = vmatmul.mubr.msk.f32.gmra.mrb[6].mxu1 %vm603_vm3, %v4508_v30 }
  0x2f   : > { %680 = vmatprep.mubr.f32.mxu0 %v4376_v5  ;;  %3651 = vmatprep.mubr.msk.f32.mxu1 %vm603_vm3, %v4544_v53 }
  0x32   : > { %3304 = vmatmul.mubr.msk.f32.vlgmr.msra.gmra.mrb[8].mxu0 %vm603_vm3, %v4514_v31 }
  0x33   : > { %686 = vmatprep.mubr.f32.mxu0 %v4376_v5 }
  0x36   : > { %3305 = vmatmul.mubr.msk.f32.gmra.mrb[10].mxu0 %vm603_vm3, %v4519_v32 }
  0x37   : > { %3609 = vmatprep.mubr.msk.f32.mxu0 %vm603_vm3, %v4544_v53 }
  0xf3   : > { %v4523_v33 = vpop.f32.mrb[0].mxu1 }
  0xf4   : > { %v4525_v34 = vpop.f32.mrb[1].mxu1 }
  0xf5   : > { %v495_v35 = vpop.f32.mrb[0].mxu0 }
  0xf6   : > { %v4527_v36 = vpop.f32.mrb[1].mxu0 }
  0xf8   : > { %v4529_v37 = vpop.f32.mrb[2].mxu1 }
  0xf9   : > { %v501_v38 = vpop.f32.mrb[2].mxu0  ;;  %v4531_v39 = vpop.f32.mrb[3].mxu1 }
  0xfa   : > { %v4533_v40 = vpop.f32.mrb[3].mxu0 }
  0xfd   : > { %v507_v41 = vpop.f32.mrb[4].mxu0  ;;  %v694_v42 = vpop.f32.mrb[4].mxu1 }
  0xfe   : > { %v707_v43 = vadd.f32 %v694_v42, %v507_v41  ;;  %v4535_v44 = vpop.f32.mrb[5].mxu0  ;;  %v696_v45 = vpop.f32.mrb[5].mxu1 }
  0xff   : > { %v711_v46 = vadd.f32 %v696_v45, %v4535_v44 }
 0x101   : > { %v513_v47 = vpop.f32.mrb[6].mxu0  ;;  %v700_v48 = vpop.f32.mrb[6].mxu1 }
 0x102   : > { %v708_v49 = vadd.f32 %v700_v48, %v513_v47  ;;  %v4538_v50 = vpop.f32.mrb[7].mxu0  ;;  %v702_v51 = vpop.f32.mrb[7].mxu1  ;;  %v4602_v48 = vld [vmem:[%s5099_s1 + $0x10] sm:$0xff] }
 0x103   : > { %v712_v52 = vadd.f32 %v702_v51, %v4538_v50  ;;  %v4614_v51 = vld [vmem:[%s5099_s1 + $0x40] sm:$0xff] }
 0x104   : > { %v4158_v54 = vpack.i.bf16 %v708_v49, %v707_v43  ;;  %v4550_v58 = vpack.c.bf16 %v708_v49, %v707_v43  ;;  %v4595_v43 = vld [vmem:[%s5099_s1 + $0x8] sm:$0xff]  ;;  %v4607_v49 = vld [vmem:[%s5099_s1 + $0x18] sm:$0xff] }
 0x105   : > { %v4168_v55 = vpack.i.bf16 %v712_v52, %v711_v46  ;;  %v3931_v56 = vpack.c.bf16 %v712_v52, %v711_v46  ;;  %v682_v57 = vpop.f32.mrb[8].mxu0 }
 0x106   : > { %v705_v59 = vadd.f32 %v682_v57, %v495_v35  ;;  %v684_v60 = vpop.f32.mrb[9].mxu0 }
 0x107   : > { %v709_v61 = vadd.f32 %v684_v60, %v4527_v36  ;;  %v4641_v60 = vld [vmem:[%s5099_s1 + $0x58] sm:$0xff] }
 0x109   : > { %v688_v62 = vpop.f32.mrb[10].mxu0 }
 0x10a   : > { %v706_v63 = vadd.f32 %v688_v62, %v501_v38  ;;  %v690_v0 = vpop.f32.mrb[11].mxu0 }
 0x10b   : > { %v710_v1 = vadd.f32 %v690_v0, %v4533_v40 }
 0x10c   : > { %v4153_v2 = vpack.i.bf16 %v706_v63, %v705_v59  ;;  %v4554_v3 = vpack.c.bf16 %v706_v63, %v705_v59 }
 0x10d   : > { %v3927_v4 = vpack.c.bf16 %v710_v1, %v709_v61  ;;  %v4163_v6 = vpack.i.bf16 %v710_v1, %v709_v61  ;;  %v384_v1 = vld [vmem:[%s5102_s4 + $0x8] sm:$0xff] }
 0x10e   : > { %4154 = vrot.lane.b32.xlu0 %v4153_v2, %s4377_s22 }
 0x10f   : > { %4164 = vrot.lane.b32.xlu1 %v4163_v6, %s4378_s23  ;;  %3928 = vmatprep.subr.bf16.mxu1 %v3927_v4 }
 0x110   : > { %3930 = vmatpush3.bf16.msra.mxu1 %v3927_v4  ;;  %v386_v4 = vld [vmem:[%s5102_s4 + $0x18] sm:$0xff] }
 0x111   : > { %3932 = vmatprep.subr.bf16.mxu1 %v3931_v56 }
 0x112   : > { %4159 = vrot.lane.b32.xlu0 %v4158_v54, %s4377_s22 }
 0x113   : > { %4169 = vrot.lane.b32.xlu1 %v4168_v55, %s4378_s23  ;;  %v4629_v55 = vld [vmem:[%s5099_s1 + $0x50] sm:$0xff] }
 0x114   : > { %3934 = vmatpush3.bf16.msra.mxu1 %v3931_v56 }
 0x116   : > { %4174 = vrot.lane.b32.xlu0 %v4153_v2, %s4378_s23 }
 0x117   : > { %4179 = vrot.lane.b32.xlu1 %v4158_v54, %s4378_s23  ;;  %3652 = vmatmul.mubr.msk.f32.vlgmr.msra.gmra.mrb[8].mxu1 %vm603_vm3, %v4563_v8 }
 0x118   : > { %3654 = vmatprep.mubr.msk.f32.mxu1 %vm603_vm3, %v4568_v9 }
 0x11a   : > { %4184 = vrot.lane.b32.xlu0 %v4153_v2, %s4379_s12 }
 0x11b   : > { %4189 = vrot.lane.b32.xlu1 %v4158_v54, %s4379_s12  ;;  %3655 = vmatmul.mubr.msk.f32.gmra.mrb[10].mxu1 %vm603_vm3, %v4579_v10  ;;  %v4621_v54 = vld [vmem:[%s5099_s1 + $0x48] sm:$0xff] }
 0x11c   : > { %3665 = vmatprep.mubr.msk.f32.mxu1 %vm603_vm3, %v4584_v11 }
 0x180   : > { %v4155_v12 = vpop.permute.xlu0 %4154 }
 0x181   : > { %v4157_v13 = vunpack.i.h.bf16 %v4155_v12  ;;  %v4156_v14 = vunpack.i.l.bf16 %v4155_v12  ;;  %v4165_v15 = vpop.permute.xlu1 %4164  ;;  %v1357_v12 = vsub.s32 1, %v4458_v7 }
 0x182   : > { %v4167_v17 = vunpack.i.h.bf16 %v4165_v15  ;;  %v4166_v18 = vunpack.i.l.bf16 %v4165_v15 }
 0x183   : > { %v3935_v16 = vpack.c.bf16 %v4157_v13, %v4156_v14  ;;  %v4684_v13 = vld [vmem:[%s5103_s5] sm:$0x7] }
 0x184   : > { %v4160_v19 = vpop.permute.xlu0 %4159  ;;  %v3943_v24 = vpack.c.bf16 %v4167_v17, %v4166_v18  ;;  %v1358_v14 = vrot.slane %v4684_v13, %v1357_v12 }
 0x185   : > { %v4162_v20 = vunpack.i.h.bf16 %v4160_v19  ;;  %v4161_v21 = vunpack.i.l.bf16 %v4160_v19  ;;  %v4170_v22 = vpop.permute.xlu1 %4169  ;;  %3936 = vmatprep.subr.bf16.mxu1 %v3935_v16 }
 0x186   : > { %3938 = vmatpush3.bf16.msra.mxu1 %v3935_v16  ;;  %v4172_v26 = vunpack.i.h.bf16 %v4170_v22  ;;  %v4171_v27 = vunpack.i.l.bf16 %v4170_v22 }
 0x187   : > { %v3939_v23 = vpack.c.bf16 %v4162_v20, %v4161_v21 }
 0x188   : > { %v4175_v25 = vpop.permute.xlu0 %4174  ;;  %v3947_v47 = vpack.c.bf16 %v4172_v26, %v4171_v27 }
 0x189   : > { %v4177_v28 = vunpack.i.h.bf16 %v4175_v25  ;;  %v4176_v35 = vunpack.i.l.bf16 %v4175_v25  ;;  %v4180_v38 = vpop.permute.xlu1 %4179  ;;  %3940 = vmatprep.subr.bf16.mxu1 %v3939_v23 }
 0x18a   : > { %v4182_v41 = vunpack.i.h.bf16 %v4180_v38  ;;  %v4181_v42 = vunpack.i.l.bf16 %v4180_v38  ;;  %3942 = vmatpush3.bf16.msra.mxu1 %v3939_v23 }
 0x18b   : > { %v3903_v45 = vpack.c.bf16 %v4177_v28, %v4176_v35  ;;  %3944 = vmatprep.subr.bf16.mxu1 %v3943_v24 }
 0x18c   : > { %v3907_v46 = vpack.c.bf16 %v4182_v41, %v4181_v42  ;;  %v4185_v52 = vpop.permute.xlu0 %4184 }
 0x18d   : > { %3904 = vmatprep.subr.bf16.mxu0 %v3903_v45  ;;  %3666 = vmatmul.mubr.msk.f32.vlgmr.msra.gmra.mrb[8].mxu1 %vm603_vm3, %v4595_v43  ;;  %v4187_v56 = vunpack.i.h.bf16 %v4185_v52  ;;  %v4186_v57 = vunpack.i.l.bf16 %v4185_v52  ;;  %v4190_v59 = vpop.permute.xlu1 %4189 }
 0x18e   : > { %3906 = vmatpush3.bf16.msra.mxu0 %v3903_v45  ;;  %3946 = vmatpush3.bf16.msra.mxu1 %v3943_v24  ;;  %v4192_v62 = vunpack.i.h.bf16 %v4190_v59  ;;  %v4191_v63 = vunpack.i.l.bf16 %v4190_v59 }
 0x18f   : > { %3908 = vmatprep.subr.bf16.mxu0 %v3907_v46  ;;  %3948 = vmatprep.subr.bf16.mxu1 %v3947_v47  ;;  %v3919_v61 = vpack.c.bf16 %v4187_v56, %v4186_v57 }
 0x190   : > { %3668 = vmatprep.mubr.msk.f32.mxu1 %vm603_vm3, %v4602_v48  ;;  %v3923_v0 = vpack.c.bf16 %v4192_v62, %v4191_v63 }
 0x191   : > { %3669 = vmatmul.mubr.msk.f32.gmra.mrb[10].mxu1 %vm603_vm3, %v4607_v49 }
 0x192   : > { %3910 = vmatpush3.bf16.msra.mxu0 %v3907_v46  ;;  %3950 = vmatpush3.bf16.msra.mxu1 %v3947_v47 }
 0x193   : > { %3912 = vmatprep.subr.bf16.mxu0 %v4554_v3  ;;  %3679 = vmatprep.mubr.msk.f32.mxu1 %vm603_vm3, %v4614_v51 }
 0x195   : > { %3680 = vmatmul.mubr.msk.f32.vlgmr.msra.gmra.mrb[8].mxu1 %vm603_vm3, %v4621_v54  ;;  %3610 = vmatmul.mubr.msk.f32.vlgmr.msra.gmra.mrb[12].mxu0 %vm603_vm3, %v4563_v8 }
 0x196   : > { %3914 = vmatpush3.bf16.msra.mxu0 %v4554_v3  ;;  %3682 = vmatprep.mubr.msk.f32.mxu1 %vm603_vm3, %v4629_v55  ;;  %v385_v3 = vld [vmem:[%s5102_s4 + $0x10] sm:$0xff] }
 0x197   : > { %3916 = vmatprep.subr.bf16.mxu0 %v4550_v58  ;;  %3612 = vmatprep.mubr.msk.f32.mxu0 %vm603_vm3, %v4568_v9  ;;  %v3955_v6 = vpack.c.bf16 %v386_v4, %v385_v3 }
 0x199   : > { %3683 = vmatmul.mubr.msk.f32.gmra.mrb[10].mxu1 %vm603_vm3, %v4641_v60  ;;  %3613 = vmatmul.mubr.msk.f32.gmra.mrb[14].mxu0 %vm603_vm3, %v4579_v10 }
 0x19a   : > { %3918 = vmatpush3.bf16.msra.mxu0 %v4550_v58  ;;  %3623 = vmatprep.mubr.msk.f32.mxu0 %vm603_vm3, %v4584_v11  ;;  %v383_v58 = vld [vmem:[%s5102_s4] sm:$0xff] }
 0x19b   : > { %3920 = vmatprep.subr.bf16.mxu0 %v3919_v61  ;;  %1937 = vmatprep.mubr.f32.mxu1 %v4376_v5  ;;  %v3951_v2 = vpack.c.bf16 %v384_v1, %v383_v58 }
 0x19d   : > { %3624 = vmatmul.mubr.msk.f32.vlgmr.msra.gmra.mrb[12].mxu0 %vm603_vm3, %v4595_v43 }
 0x19e   : > { %3922 = vmatpush3.bf16.msra.mxu0 %v3919_v61  ;;  %3626 = vmatprep.mubr.msk.f32.mxu0 %vm603_vm3, %v4602_v48 }
 0x19f   : > { %3924 = vmatprep.subr.bf16.mxu0 %v3923_v0 }
 0x1a1   : > { %3627 = vmatmul.mubr.msk.f32.gmra.mrb[14].mxu0 %vm603_vm3, %v4607_v49 }
 0x1a2   : > { %3926 = vmatpush3.bf16.msra.mxu0 %v3923_v0  ;;  %3637 = vmatprep.mubr.msk.f32.mxu0 %vm603_vm3, %v4614_v51 }
 0x1a3   : > { %3952 = vmatprep.subr.bf16.mxu0 %v3951_v2 }
 0x1a5   : > { %3638 = vmatmul.mubr.msk.f32.vlgmr.msra.gmra.mrb[12].mxu0 %vm603_vm3, %v4621_v54 }
 0x1a6   : > { %3640 = vmatprep.mubr.msk.f32.mxu0 %vm603_vm3, %v4629_v55  ;;  %3954 = vmatpush3.bf16.msra.mxu0 %v3951_v2 }
 0x1a7   : > { %3956 = vmatprep.subr.bf16.mxu0 %v3955_v6 }
 0x1a9   : > { %3641 = vmatmul.mubr.msk.f32.gmra.mrb[14].mxu0 %vm603_vm3, %v4641_v60 }
 0x1aa   : > { %3958 = vmatpush3.bf16.msra.mxu0 %v3955_v6 }
 0x268   : > { %v3681_v15 = vpop.f32.mrb[8].mxu1 }
 0x269   : > { %v1360_v16 = vadd.f32 %v3681_v15, %v1358_v14  ;;  %v1332_v17 = vpop.f32.mrb[9].mxu1 }
 0x26a   : > { %v1359_v18 = vadd.f32 %v1358_v14, %v1332_v17 }
 0x26b   : > { %v3337_v19 = vmul.f32 -1.442695, %v1360_v16 }
 0x26c   : > { %v3336_v20 = vmul.f32 -1.442695, %v1359_v18  ;;  %v3684_v21 = vpop.f32.mrb[10].mxu1 }
 0x26d   : > { %4274 = vpow2.f32 %v3337_v19  ;;  %v1362_v22 = vadd.f32 %v3684_v21, %v1358_v14  ;;  %v1342_v23 = vpop.f32.mrb[11].mxu1 }
 0x26e   : > { %4276 = vpow2.f32 %v3336_v20  ;;  %v1361_v24 = vadd.f32 %v1358_v14, %v1342_v23 }
 0x26f   : > { %v3339_v25 = vmul.f32 -1.442695, %v1362_v22 }
 0x270   : > { %v3338_v26 = vmul.f32 -1.442695, %v1361_v24 }
 0x271   : > { %4278 = vpow2.f32 %v3339_v25 }
 0x272   : > { %4280 = vpow2.f32 %v3338_v26 }
 0x277   : > { %v4275_v27 = vpop.eup %4274 }
 0x278   : > { %v4277_v28 = vpop.eup %4276  ;;  %v1376_v35 = vadd.f32 1.0, %v4275_v27  ;;  %v4689_v38 = vpop.f32.mrb[12].mxu0 }
 0x279   : > { %v1375_v41 = vadd.f32 1.0, %v4277_v28  ;;  %v4691_v42 = vpop.f32.mrb[13].mxu0 }
 0x27a   : > { %4282 = vrcp.f32 %v1376_v35 }
 0x27b   : > { %v4279_v45 = vpop.eup %4278  ;;  %4284 = vrcp.f32 %v1375_v41 }
 0x27c   : > { %v4281_v46 = vpop.eup %4280  ;;  %v1378_v47 = vadd.f32 1.0, %v4279_v45  ;;  %v4693_v52 = vpop.f32.mrb[14].mxu0 }
 0x27d   : > { %v1377_v56 = vadd.f32 1.0, %v4281_v46  ;;  %v4695_v57 = vpop.f32.mrb[15].mxu0 }
 0x27e   : > { %4286 = vrcp.f32 %v1378_v47 }
 0x27f   : > { %4288 = vrcp.f32 %v1377_v56 }
 0x284   : > { %v4283_v59 = vpop.eup %4282 }
 0x285   : > { %v4285_v61 = vpop.eup %4284  ;;  %v1388_v63 = vmul.f32 %v4283_v59, %v4519_v32 }
 0x286   : > { %v1387_v62 = vmul.f32 %v4285_v61, %v4514_v31 }
 0x288   : > { %v4287_v0 = vpop.eup %4286  ;;  %3693 = vmatprep.mubr.msk.f32.mxu0 %vm603_vm3, %v1387_v62 }
 0x289   : > { %v4289_v58 = vpop.eup %4288  ;;  %3694 = vmatmul.mubr.msk.f32.vlgmr.msra.gmra.mrb[16].mxu0 %vm603_vm3, %v1388_v63  ;;  %v1390_v2 = vmul.f32 %v4287_v0, %v4508_v30  ;;  %v1844_v0 = vld [vmem:[%s5105_s7 + $0x8] sm:$0xff] }
 0x28a   : > { %v1389_v1 = vmul.f32 %v4289_v58, %v4501_v29  ;;  %v1846_v58 = vld [vmem:[%s5105_s7 + $0x18] sm:$0xff] }
 0x28c   : > { %3696 = vmatprep.mubr.msk.f32.mxu0 %vm603_vm3, %v1389_v1  ;;  %v3999_v1 = vpack.c.bf16 %v1846_v58, %v1844_v0 }
 0x28d   : > { %3697 = vmatmul.mubr.msk.f32.gmra.mrb[18].mxu0 %vm603_vm3, %v1390_v2  ;;  %v1832_v2 = vld [vmem:[%s5104_s6 + $0x8] sm:$0xff] }
 0x28e   : > { %3707 = vmatprep.mubr.msk.f32.mxu0 %vm603_vm3, %v4544_v53 }
 0x35c   : > { %v3695_v3 = vpop.f32.mrb[16].mxu0 }
 0x35d   : > { %1494 = vrot.lane.b32.xlu1 %v3695_v3, %s4379_s12  ;;  %v1469_v4 = vpop.f32.mrb[17].mxu0  ;;  %v1835_v3 = vld [vmem:[%s5104_s6 + $0x20] sm:$0xff] }
 0x35e   : > { %1492 = vrot.lane.b32.xlu0 %v1469_v4, %s4379_s12  ;;  %v1843_v4 = vld [vmem:[%s5105_s7] sm:$0xff] }
 0x360   : > { %v3698_v6 = vpop.f32.mrb[18].mxu0 }
 0x361   : > { %1498 = vrot.lane.b32.xlu1 %v3698_v6, %s4379_s12  ;;  %v1479_v14 = vpop.f32.mrb[19].mxu0  ;;  %v3983_v6 = vpack.c.bf16 %v1835_v3, %v1832_v2  ;;  %v1801_v3 = vsub.s32 2, %v4458_v7 }
 0x362   : > { %1496 = vrot.lane.b32.xlu0 %v1479_v14, %s4379_s12  ;;  %v1845_v14 = vld [vmem:[%s5105_s7 + $0x10] sm:$0xff] }
 0x363   : > { %3984 = vmatprep.subr.bf16.mxu1 %v3983_v6 }
 0x3cf   : > { %v1495_v15 = vpop.permute.xlu1 %1494 }
 0x3d0   : > { %v1506_v16 = vadd.f32 %v1495_v15, %v4533_v40  ;;  %v1507_v17 = vadd.f32 %v4523_v33, %v1495_v15  ;;  %v1493_v18 = vpop.permute.xlu0 %1492  ;;  %v1831_v15 = vld [vmem:[%s5104_s6] sm:$0xff] }
 0x3d1   : > { %v1504_v19 = vadd.f32 %v1493_v18, %v4527_v36  ;;  %v1505_v20 = vadd.f32 %v1493_v18, %v4525_v34 }
 0x3d3   : > { %v3975_v21 = vpack.c.bf16 %v1507_v17, %v1505_v20  ;;  %v4203_v22 = vpack.i.bf16 %v1506_v16, %v1504_v19  ;;  %v1499_v23 = vpop.permute.xlu1 %1498  ;;  %v1834_v16 = vld [vmem:[%s5104_s6 + $0x18] sm:$0xff]  ;;  %v4001_v17 = vpack.c.bf16 %v1845_v14, %v1843_v4  ;;  %v1848_v19 = vld [vmem:[%s5105_s7 + $0x28] sm:$0xff] }
 0x3d4   : > { %v1510_v24 = vadd.f32 %v1499_v23, %v4538_v50  ;;  %v1511_v25 = vadd.f32 %v4529_v37, %v1499_v23  ;;  %v1497_v26 = vpop.permute.xlu0 %1496  ;;  %v3985_v18 = vpack.c.bf16 %v1834_v16, %v1831_v15  ;;  %v1850_v20 = vld [vmem:[%s5105_s7 + $0x38] sm:$0xff]  ;;  %v1841_v23 = vld [vmem:[%s5104_s6 + $0x50] sm:$0xff] }
 0x3d5   : > { %v1508_v27 = vadd.f32 %v1497_v26, %v4535_v44  ;;  %v1509_v28 = vadd.f32 %v1497_v26, %v4531_v39  ;;  %4194 = vrot.lane.b32.xlu0 %v4203_v22, %s4377_s22  ;;  %v1849_v26 = vld [vmem:[%s5105_s7 + $0x30] sm:$0xff] }
 0x3d6   : > { %3986 = vmatpush1.bf16.msra.mxu1 %v3985_v18 }
 0x3d7   : > { %v3979_v33 = vpack.c.bf16 %v1511_v25, %v1509_v28  ;;  %v4208_v40 = vpack.i.bf16 %v1510_v24, %v1508_v27  ;;  %v1847_v24 = vld [vmem:[%s5105_s7 + $0x20] sm:$0xff]  ;;  %v1837_v27 = vld [vmem:[%s5104_s6 + $0x30] sm:$0xff]  ;;  %v1840_v28 = vld [vmem:[%s5104_s6 + $0x48] sm:$0xff] }
 0x3d9   : > { %4204 = vrot.lane.b32.xlu0 %v4203_v22, %s4379_s12  ;;  %4199 = vrot.lane.b32.xlu1 %v4208_v40, %s4377_s22  ;;  %v1838_v22 = vld [vmem:[%s5104_s6 + $0x38] sm:$0xff] }
 0x3da   : > { %v3987_v25 = vpack.c.bf16 %v1841_v23, %v1838_v22 }
 0x3dc   : > { %3988 = vmatprep.subr.bf16.mxu1 %v3987_v25 }
 0x3dd   : > { %4209 = vrot.lane.b32.xlu1 %v4208_v40, %s4379_s12  ;;  %v3989_v40 = vpack.c.bf16 %v1840_v28, %v1837_v27 }
 0x3df   : > { %3990 = vmatpush1.bf16.msra.mxu1 %v3989_v40 }
 0x447   : > { %v4195_v34 = vpop.permute.xlu0 %4194 }
 0x448   : > { %v4197_v36 = vunpack.i.h.bf16 %v4195_v34  ;;  %v4196_v50 = vunpack.i.l.bf16 %v4195_v34  ;;  %v4794_v34 = vld [vmem:[#allocation2 + $0x20] sm:$0xff] }
 0x44a   : > { %v3959_v35 = vpack.c.bf16 %v4197_v36, %v4196_v50  ;;  %v4799_v36 = vld [vmem:[#allocation2 + $0x28] sm:$0xff]  ;;  %v4804_v50 = vld [vmem:[#allocation2 + $0x30] sm:$0xff] }
 0x44b   : > { %v4200_v37 = vpop.permute.xlu1 %4199  ;;  %v4205_v41 = vpop.permute.xlu0 %4204 }
 0x44c   : > { %v4202_v45 = vunpack.i.h.bf16 %v4200_v37  ;;  %v4201_v44 = vunpack.i.l.bf16 %v4200_v37  ;;  %v4207_v46 = vunpack.i.h.bf16 %v4205_v41  ;;  %v4206_v39 = vunpack.i.l.bf16 %v4205_v41  ;;  %3960 = vmatprep.subr.bf16.mxu0 %v3959_v35  ;;  %v1836_v37 = vld [vmem:[%s5104_s6 + $0x28] sm:$0xff] }
 0x44d   : > { %3962 = vmatpush3.bf16.msra.mxu0 %v3959_v35  ;;  %v1833_v35 = vld [vmem:[%s5104_s6 + $0x10] sm:$0xff] }
 0x44e   : > { %v3963_v47 = vpack.c.bf16 %v4202_v45, %v4201_v44  ;;  %v3967_v59 = vpack.c.bf16 %v4207_v46, %v4206_v39  ;;  %v4812_v41 = vpack.c.bf16 %v1836_v37, %v1833_v35  ;;  %v4818_v45 = vld [vmem:[#allocation2 + $0x38] sm:$0xff]  ;;  %v1038_v44 = vsub.s32 0, %v4458_v7  ;;  %v1839_v37 = vld [vmem:[%s5104_s6 + $0x40] sm:$0xff] }
 0x44f   : > { %v4210_v56 = vpop.permute.xlu1 %4209 }
 0x450   : > { %v4212_v61 = vunpack.i.h.bf16 %v4210_v56  ;;  %v4211_v62 = vunpack.i.l.bf16 %v4210_v56  ;;  %3964 = vmatprep.subr.bf16.mxu0 %v3963_v47  ;;  %3992 = vmatprep.subr.bf16.mxu1 %v4812_v41  ;;  %v1039_v46 = vrot.slane %v4684_v13, %v1038_v44 }
 0x451   : > { %3966 = vmatpush3.bf16.msra.mxu0 %v3963_v47 }
 0x452   : > { %3968 = vmatprep.subr.bf16.mxu0 %v3967_v59  ;;  %v3971_v63 = vpack.c.bf16 %v4212_v61, %v4211_v62  ;;  %v1041_v39 = vadd.f32 %v4689_v38, %v1039_v46  ;;  %v1040_v47 = vadd.f32 %v1039_v46, %v4691_v42  ;;  %v1042_v62 = vadd.f32 %v1039_v46, %v4695_v57 }
 0x454   : > { %3708 = vmatmul.mubr.msk.f32.vlgmr.msra.gmra.mrb[20].mxu0 %vm603_vm3, %v4563_v8  ;;  %v3321_v56 = vmul.f32 -1.442695, %v1041_v39  ;;  %v3320_v61 = vmul.f32 -1.442695, %v1040_v47  ;;  %v3322_v0 = vmul.f32 -1.442695, %v1042_v62 }
 0x455   : > { %3970 = vmatpush3.bf16.msra.mxu0 %v3967_v59  ;;  %3710 = vmatprep.mubr.msk.f32.mxu0 %vm603_vm3, %v4568_v9  ;;  %v1043_v59 = vadd.f32 %v4693_v52, %v1039_v46  ;;  %v1802_v52 = vrot.slane %v4684_v13, %v1801_v3  ;;  %v1842_v46 = vld [vmem:[%s5104_s6 + $0x58] sm:$0xff] }
 0x456   : > { %3972 = vmatprep.subr.bf16.mxu0 %v3971_v63  ;;  %4290 = vpow2.f32 %v3321_v56 }
 0x457   : > { %4292 = vpow2.f32 %v3320_v61 }
 0x458   : > { %3711 = vmatmul.mubr.msk.f32.gmra.mrb[22].mxu0 %vm603_vm3, %v4579_v10 }
 0x459   : > { %3974 = vmatpush3.bf16.msra.mxu0 %v3971_v63  ;;  %3721 = vmatprep.mubr.msk.f32.mxu0 %vm603_vm3, %v4584_v11  ;;  %v3323_v63 = vmul.f32 -1.442695, %v1043_v59 }
 0x45a   : > { %3976 = vmatprep.subr.bf16.mxu0 %v3975_v21 }
 0x45b   : > { %4294 = vpow2.f32 %v3323_v63  ;;  %v3995_v63 = vpack.c.bf16 %v1842_v46, %v1839_v37 }
 0x45c   : > { %3722 = vmatmul.mubr.msk.f32.vlgmr.msra.gmra.mrb[20].mxu0 %vm603_vm3, %v4595_v43  ;;  %4296 = vpow2.f32 %v3322_v0 }
 0x45d   : > { %3978 = vmatpush3.bf16.msra.mxu0 %v3975_v21  ;;  %3724 = vmatprep.mubr.msk.f32.mxu0 %vm603_vm3, %v4602_v48  ;;  %v4003_v21 = vpack.c.bf16 %v1850_v20, %v1848_v19 }
 0x45e   : > { %3980 = vmatprep.subr.bf16.mxu0 %v3979_v33 }
 0x460   : > { %3725 = vmatmul.mubr.msk.f32.gmra.mrb[22].mxu0 %vm603_vm3, %v4607_v49  ;;  %v4291_v58 = vpop.eup %4290 }
 0x461   : > { %3982 = vmatpush3.bf16.msra.mxu0 %v3979_v33  ;;  %3735 = vmatprep.mubr.msk.f32.mxu0 %vm603_vm3, %v4614_v51  ;;  %v4005_v33 = vpack.c.bf16 %v1849_v26, %v1847_v24  ;;  %v1057_v2 = vadd.f32 1.0, %v4291_v58 }
 0x462   : > { %4000 = vmatprep.subr.bf16.mxu0 %v3999_v1  ;;  %v4293_v1 = vpop.eup %4292 }
 0x463   : > { %v1056_v4 = vadd.f32 1.0, %v4293_v1  ;;  %4298 = vrcp.f32 %v1057_v2 }
 0x464   : > { %3736 = vmatmul.mubr.msk.f32.vlgmr.msra.gmra.mrb[20].mxu0 %vm603_vm3, %v4621_v54 }
 0x465   : > { %3738 = vmatprep.mubr.msk.f32.mxu0 %vm603_vm3, %v4629_v55  ;;  %4002 = vmatpush1.bf16.msra.mxu0 %v4001_v17  ;;  %v4295_v38 = vpop.eup %4294  ;;  %4300 = vrcp.f32 %v1056_v4 }
 0x466   : > { %4004 = vmatprep.subr.bf16.mxu0 %v4003_v21  ;;  %v4297_v42 = vpop.eup %4296  ;;  %v1059_v6 = vadd.f32 1.0, %v4295_v38 }
 0x467   : > { %v1058_v57 = vadd.f32 1.0, %v4297_v42 }
 0x468   : > { %3739 = vmatmul.mubr.msk.f32.gmra.mrb[22].mxu0 %vm603_vm3, %v4641_v60  ;;  %4302 = vrcp.f32 %v1059_v6 }
 0x469   : > { %2123 = vmatprep.mubr.f32.mxu0 %v4376_v5  ;;  %4006 = vmatpush1.bf16.msra.mxu0 %v4005_v33  ;;  %4304 = vrcp.f32 %v1058_v57 }
 0x46c   : > { %3364 = vmatmul.mubr.msk.f32.vlgmr.msra.gmra.mrb[24].mxu0 %vm603_vm3, %v4794_v34 }
 0x46d   : > { %2129 = vmatprep.mubr.f32.mxu0 %v4376_v5  ;;  %v4299_v22 = vpop.eup %4298 }
 0x46e   : > { %v1812_v24 = vsub.f32 1.0, %v4299_v22 }
 0x46f   : > { %v4301_v23 = vpop.eup %4300 }
 0x470   : > { %3365 = vmatmul.mubr.msk.f32.gmra.mrb[26].mxu0 %vm603_vm3, %v4799_v36  ;;  %v1811_v25 = vsub.f32 1.0, %v4301_v23  ;;  %v1816_v33 = vmul.f32 %v1812_v24, %v4519_v32 }
 0x471   : > { %2135 = vmatprep.mubr.f32.mxu0 %v4376_v5 }
 0x472   : > { %v4303_v13 = vpop.eup %4302  ;;  %v1815_v39 = vmul.f32 %v1811_v25, %v4514_v31 }
 0x473   : > { %v4305_v26 = vpop.eup %4304  ;;  %v1814_v35 = vsub.f32 1.0, %v4303_v13 }
 0x474   : > { %3366 = vmatmul.mubr.msk.f32.gmra.mrb[28].mxu0 %vm603_vm3, %v4804_v50  ;;  %v1813_v56 = vsub.f32 1.0, %v4305_v26 }
 0x475   : > { %2141 = vmatprep.mubr.f32.mxu0 %v4376_v5  ;;  %v1818_v32 = vmul.f32 %v1814_v35, %v4508_v30 }
 0x476   : > { %v1817_v1 = vmul.f32 %v1813_v56, %v4501_v29 }
 0x478   : > { %3367 = vmatmul.mubr.msk.f32.gmra.mrb[30].mxu0 %vm603_vm3, %v4818_v45 }
 0x479   : > { %3805 = vmatprep.mubr.msk.f32.mxu0 %vm603_vm3, %v4544_v53 }
 0x537   : > { %v3737_v14 = vpop.f32.mrb[20].mxu0 }
 0x538   : > { %v1804_v15 = vadd.f32 %v3737_v14, %v1802_v52  ;;  %v1776_v16 = vpop.f32.mrb[21].mxu0 }
 0x539   : > { %v1803_v17 = vadd.f32 %v1802_v52, %v1776_v16 }
 0x53a   : > { %4306 = vtanh.f32 %v1804_v15 }
 0x53b   : > { %4308 = vtanh.f32 %v1803_v17  ;;  %v3740_v18 = vpop.f32.mrb[22].mxu0 }
 0x53c   : > { %v1806_v19 = vadd.f32 %v3740_v18, %v1802_v52  ;;  %v1786_v20 = vpop.f32.mrb[23].mxu0 }
 0x53d   : > { %v1805_v21 = vadd.f32 %v1802_v52, %v1786_v20 }
 0x53e   : > { %4310 = vtanh.f32 %v1806_v19 }
 0x53f   : > { %4312 = vtanh.f32 %v1805_v21  ;;  %v2125_v29 = vpop.f32.mrb[24].mxu0 }
 0x540   : > { %v2127_v30 = vpop.f32.mrb[25].mxu0 }
 0x544   : > { %v4307_v27 = vpop.eup %4306 }
 0x545   : > { %v4309_v28 = vpop.eup %4308  ;;  %v1820_v40 = vmul.f32 %v4307_v27, %v4299_v22 }
 0x546   : > { %v1819_v47 = vmul.f32 %v4309_v28, %v4301_v23 }
 0x547   : > { %v1824_v59 = vadd.f32 %v1820_v40, %v1816_v33 }
 0x548   : > { %v4311_v61 = vpop.eup %4310  ;;  %v1823_v62 = vadd.f32 %v1819_v47, %v1815_v39 }
 0x549   : > { %v4313_v0 = vpop.eup %4312  ;;  %1828 = vst.msk [vmem:[#allocation2 + $0x8] sm:$0xff] %vm603_vm3, %v1824_v59  ;;  %v1822_v58 = vmul.f32 %v4311_v61, %v4303_v13 }
 0x54a   : > { %1827 = vst.msk [vmem:[#allocation2] sm:$0xff] %vm603_vm3, %v1823_v62  ;;  %3356 = vmatmul.mubr.msk.f32.vlgmr.msra.gmra.mrb[12].mxu1 %vm603_vm3, %v1823_v62  ;;  %v1821_v2 = vmul.f32 %v4313_v0, %v4305_v26 }
 0x54b   : > { %1943 = vmatprep.mubr.f32.mxu1 %v4376_v5  ;;  %3994 = vmatpush3.bf16.msra.mxu1 %v4812_v41  ;;  %v1826_v31 = vadd.f32 %v1822_v58, %v1818_v32  ;;  %v2131_v41 = vpop.f32.mrb[26].mxu0 }
 0x54c   : > { %v1825_v38 = vadd.f32 %v1821_v2, %v1817_v1  ;;  %3996 = vmatprep.subr.bf16.mxu1 %v3995_v63  ;;  %v2133_v4 = vpop.f32.mrb[27].mxu0 }
 0x54d   : > { %1830 = vst.msk [vmem:[#allocation2 + $0x18] sm:$0xff] %vm603_vm3, %v1826_v31  ;;  %v2137_v42 = vpop.f32.mrb[28].mxu0 }
 0x54e   : > { %3357 = vmatmul.mubr.msk.f32.gmra.mrb[14].mxu1 %vm603_vm3, %v1824_v59  ;;  %1829 = vst.msk [vmem:[#allocation2 + $0x10] sm:$0xff] %vm603_vm3, %v1825_v38  ;;  %v2139_v6 = vpop.f32.mrb[29].mxu0 }
 0x54f   : > { %1949 = vmatprep.mubr.f32.mxu1 %v4376_v5  ;;  %3998 = vmatpush3.bf16.msra.mxu1 %v3995_v63 }
 0x552   : > { %3358 = vmatmul.mubr.msk.f32.gmra.mrb[16].mxu1 %vm603_vm3, %v1825_v38 }
 0x553   : > { %1955 = vmatprep.mubr.f32.mxu1 %v4376_v5  ;;  %v2143_v5 = vpop.f32.mrb[30].mxu0 }
 0x554   : > { %v2145_v52 = vpop.f32.mrb[31].mxu0 }
 0x556   : > { %3359 = vmatmul.mubr.msk.f32.gmra.mrb[18].mxu1 %vm603_vm3, %v1826_v31 }
 0x557   : > { %3749 = vmatprep.mubr.msk.f32.mxu1 %vm603_vm3, %v1823_v62 }
 0x55a   : > { %3750 = vmatmul.mubr.msk.f32.vlgmr.msra.gmra.mrb[20].mxu1 %vm603_vm3, %v1824_v59 }
 0x55b   : > { %3752 = vmatprep.mubr.msk.f32.mxu1 %vm603_vm3, %v1825_v38 }
 0x55e   : > { %3753 = vmatmul.mubr.msk.f32.gmra.mrb[22].mxu1 %vm603_vm3, %v1826_v31 }
 0x55f   : > { %3763 = vmatprep.mubr.msk.f32.mxu1 %vm603_vm3, %v4544_v53 }
 0x61d   : > { %v1939_v57 = vpop.f32.mrb[12].mxu1 }
 0x61e   : > { %v2148_v14 = vadd.f32 %v2125_v29, %v1939_v57  ;;  %v4864_v15 = vpop.f32.mrb[13].mxu1 }
 0x61f   : > { %v2152_v16 = vadd.f32 %v2127_v30, %v4864_v15 }
 0x621   : > { %v1945_v17 = vpop.f32.mrb[14].mxu1 }
 0x622   : > { %v2149_v18 = vadd.f32 %v2131_v41, %v1945_v17  ;;  %v4867_v19 = vpop.f32.mrb[15].mxu1 }
 0x623   : > { %v2153_v53 = vadd.f32 %v2133_v4, %v4867_v19 }
 0x624   : > { %v4213_v20 = vpack.i.bf16 %v2149_v18, %v2148_v14  ;;  %v4870_v21 = vpack.c.bf16 %v2149_v18, %v2148_v14 }
 0x625   : > { %v4223_v22 = vpack.i.bf16 %v2153_v53, %v2152_v16  ;;  %v4031_v23 = vpack.c.bf16 %v2153_v53, %v2152_v16  ;;  %v1951_v24 = vpop.f32.mrb[16].mxu1 }
 0x626   : > { %v2150_v13 = vadd.f32 %v2137_v42, %v1951_v24  ;;  %4214 = vrot.lane.b32.xlu0 %v4213_v20, %s4377_s22  ;;  %v4873_v25 = vpop.f32.mrb[17].mxu1 }
 0x627   : > { %v2154_v26 = vadd.f32 %v2139_v6, %v4873_v25  ;;  %4032 = vmatprep.subr.bf16.mxu0 %v4031_v23 }
 0x628   : > { %4034 = vmatpush3.bf16.msra.mxu0 %v4031_v23 }
 0x629   : > { %v1957_v27 = vpop.f32.mrb[18].mxu1 }
 0x62a   : > { %v2151_v28 = vadd.f32 %v2143_v5, %v1957_v27  ;;  %4224 = vrot.lane.b32.xlu0 %v4223_v22, %s4378_s23  ;;  %v4877_v33 = vpop.f32.mrb[19].mxu1 }
 0x62b   : > { %v2155_v40 = vadd.f32 %v2145_v52, %v4877_v33 }
 0x62c   : > { %v4218_v35 = vpack.i.bf16 %v2151_v28, %v2150_v13  ;;  %v4880_v37 = vpack.c.bf16 %v2151_v28, %v2150_v13 }
 0x62d   : > { %v4228_v46 = vpack.i.bf16 %v2155_v40, %v2154_v26  ;;  %v4035_v39 = vpack.c.bf16 %v2155_v40, %v2154_v26  ;;  %v4882_v47 = vpop.f32.mrb[20].mxu1 }
 0x62e   : > { %4234 = vrot.lane.b32.xlu0 %v4213_v20, %s4378_s23  ;;  %4219 = vrot.lane.b32.xlu1 %v4218_v35, %s4377_s22  ;;  %v4886_v56 = vpop.f32.mrb[21].mxu1 }
 0x62f   : > { %4036 = vmatprep.subr.bf16.mxu0 %v4035_v39 }
 0x630   : > { %4038 = vmatpush3.bf16.msra.mxu0 %v4035_v39 }
 0x631   : > { %v4888_v59 = vpop.f32.mrb[22].mxu1 }
 0x632   : > { %4244 = vrot.lane.b32.xlu0 %v4213_v20, %s4379_s12  ;;  %4229 = vrot.lane.b32.xlu1 %v4228_v46, %s4378_s23  ;;  %v4892_v61 = vpop.f32.mrb[23].mxu1 }
 0x633   : > { %3806 = vmatmul.mubr.msk.f32.vlgmr.msra.gmra.mrb[32].mxu0 %vm603_vm3, %v4563_v8 }
 0x634   : > { %3808 = vmatprep.mubr.msk.f32.mxu0 %vm603_vm3, %v4568_v9 }
 0x636   : > { %4239 = vrot.lane.b32.xlu1 %v4218_v35, %s4378_s23 }
 0x637   : > { %3809 = vmatmul.mubr.msk.f32.gmra.mrb[34].mxu0 %vm603_vm3, %v4579_v10 }
 0x638   : > { %3819 = vmatprep.mubr.msk.f32.mxu0 %vm603_vm3, %v4584_v11 }
 0x63a   : > { %4249 = vrot.lane.b32.xlu1 %v4218_v35, %s4379_s12 }
 0x698   : > { %v4215_v62 = vpop.permute.xlu0 %4214 }
 0x699   : > { %v4217_v63 = vunpack.i.h.bf16 %v4215_v62  ;;  %v4216_v0 = vunpack.i.l.bf16 %v4215_v62 }
 0x69b   : > { %v4039_v32 = vpack.c.bf16 %v4217_v63, %v4216_v0 }
 0x69c   : > { %v4225_v58 = vpop.permute.xlu0 %4224 }
 0x69d   : > { %4040 = vmatprep.subr.bf16.mxu0 %v4039_v32  ;;  %v4227_v1 = vunpack.i.h.bf16 %v4225_v58  ;;  %v4226_v2 = vunpack.i.l.bf16 %v4225_v58 }
 0x69e   : > { %4042 = vmatpush3.bf16.msra.mxu0 %v4039_v32 }
 0x69f   : > { %v4047_v52 = vpack.c.bf16 %v4227_v1, %v4226_v2 }
 0x6a0   : > { %v4235_v31 = vpop.permute.xlu0 %4234  ;;  %v4220_v38 = vpop.permute.xlu1 %4219 }
 0x6a1   : > { %v4237_v29 = vunpack.i.h.bf16 %v4235_v31  ;;  %v4236_v30 = vunpack.i.l.bf16 %v4235_v31  ;;  %v4222_v41 = vunpack.i.h.bf16 %v4220_v38  ;;  %v4221_v4 = vunpack.i.l.bf16 %v4220_v38 }
 0x6a3   : > { %v4007_v42 = vpack.c.bf16 %v4237_v29, %v4236_v30  ;;  %v4043_v6 = vpack.c.bf16 %v4222_v41, %v4221_v4 }
 0x6a4   : > { %v4230_v5 = vpop.permute.xlu1 %4229  ;;  %v4245_v22 = vpop.permute.xlu0 %4244 }
 0x6a5   : > { %v4232_v57 = vunpack.i.h.bf16 %v4230_v5  ;;  %v4231_v14 = vunpack.i.l.bf16 %v4230_v5  ;;  %4008 = vmatprep.subr.bf16.mxu1 %v4007_v42  ;;  %4044 = vmatprep.subr.bf16.mxu0 %v4043_v6  ;;  %v4247_v23 = vunpack.i.h.bf16 %v4245_v22  ;;  %v4246_v24 = vunpack.i.l.bf16 %v4245_v22 }
 0x6a6   : > { %4010 = vmatpush3.bf16.msra.mxu1 %v4007_v42  ;;  %4046 = vmatpush3.bf16.msra.mxu0 %v4043_v6 }
 0x6a7   : > { %4048 = vmatprep.subr.bf16.mxu0 %v4047_v52  ;;  %v4051_v17 = vpack.c.bf16 %v4232_v57, %v4231_v14  ;;  %v4023_v26 = vpack.c.bf16 %v4247_v23, %v4246_v24 }
 0x6a8   : > { %v4240_v16 = vpop.permute.xlu1 %4239 }
 0x6a9   : > { %v4242_v18 = vunpack.i.h.bf16 %v4240_v16  ;;  %v4241_v53 = vunpack.i.l.bf16 %v4240_v16  ;;  %3820 = vmatmul.mubr.msk.f32.vlgmr.msra.gmra.mrb[32].mxu0 %vm603_vm3, %v4595_v43 }
 0x6aa   : > { %4050 = vmatpush3.bf16.msra.mxu0 %v4047_v52  ;;  %3822 = vmatprep.mubr.msk.f32.mxu0 %vm603_vm3, %v4602_v48 }
 0x6ab   : > { %v4011_v20 = vpack.c.bf16 %v4242_v18, %v4241_v53  ;;  %4052 = vmatprep.subr.bf16.mxu0 %v4051_v17 }
 0x6ac   : > { %v4250_v13 = vpop.permute.xlu1 %4249 }
 0x6ad   : > { %4012 = vmatprep.subr.bf16.mxu1 %v4011_v20  ;;  %3823 = vmatmul.mubr.msk.f32.gmra.mrb[34].mxu0 %vm603_vm3, %v4607_v49  ;;  %v4252_v27 = vunpack.i.h.bf16 %v4250_v13  ;;  %v4251_v28 = vunpack.i.l.bf16 %v4250_v13 }
 0x6ae   : > { %4014 = vmatpush3.bf16.msra.mxu1 %v4011_v20  ;;  %4054 = vmatpush3.bf16.msra.mxu0 %v4051_v17  ;;  %v4354_v20 = vld [vmem:[%s5099_s1 + $0x20] sm:$0xff] }
 0x6af   : > { %4016 = vmatprep.subr.bf16.mxu1 %v4870_v21  ;;  %3833 = vmatprep.mubr.msk.f32.mxu0 %vm603_vm3, %v4614_v51 }
 0x6b1   : > { %3834 = vmatmul.mubr.msk.f32.vlgmr.msra.gmra.mrb[32].mxu0 %vm603_vm3, %v4621_v54  ;;  %3764 = vmatmul.mubr.msk.f32.vlgmr.msra.gmra.mrb[24].mxu1 %vm603_vm3, %v4563_v8  ;;  %v4027_v8 = vpack.c.bf16 %v4252_v27, %v4251_v28 }
 0x6b2   : > { %4018 = vmatpush3.bf16.msra.mxu1 %v4870_v21  ;;  %3836 = vmatprep.mubr.msk.f32.mxu0 %vm603_vm3, %v4629_v55 }
 0x6b3   : > { %4020 = vmatprep.subr.bf16.mxu1 %v4880_v37  ;;  %3766 = vmatprep.mubr.msk.f32.mxu1 %vm603_vm3, %v4568_v9  ;;  %v1851_v9 = vld [vmem:[%s5106_s8] sm:$0xff] }
 0x6b5   : > { %3837 = vmatmul.mubr.msk.f32.gmra.mrb[34].mxu0 %vm603_vm3, %v4641_v60  ;;  %3767 = vmatmul.mubr.msk.f32.gmra.mrb[26].mxu1 %vm603_vm3, %v4579_v10  ;;  %v1852_v10 = vld [vmem:[%s5106_s8 + $0x8] sm:$0xff] }
 0x6b6   : > { %4022 = vmatpush3.bf16.msra.mxu1 %v4880_v37  ;;  %3777 = vmatprep.mubr.msk.f32.mxu1 %vm603_vm3, %v4584_v11  ;;  %v4055_v11 = vpack.c.bf16 %v1852_v10, %v1851_v9 }
 0x6b7   : > { %4024 = vmatprep.subr.bf16.mxu1 %v4023_v26 }
 0x6b9   : > { %3778 = vmatmul.mubr.msk.f32.vlgmr.msra.gmra.mrb[24].mxu1 %vm603_vm3, %v4595_v43  ;;  %v1853_v43 = vld [vmem:[%s5106_s8 + $0x10] sm:$0xff] }
 0x6ba   : > { %4026 = vmatpush3.bf16.msra.mxu1 %v4023_v26  ;;  %3780 = vmatprep.mubr.msk.f32.mxu1 %vm603_vm3, %v4602_v48  ;;  %v1854_v48 = vld [vmem:[%s5106_s8 + $0x18] sm:$0xff] }
 0x6bb   : > { %4028 = vmatprep.subr.bf16.mxu1 %v4027_v8 }
 0x6bd   : > { %3781 = vmatmul.mubr.msk.f32.gmra.mrb[26].mxu1 %vm603_vm3, %v4607_v49  ;;  %v4059_v49 = vpack.c.bf16 %v1854_v48, %v1853_v43 }
 0x6be   : > { %4030 = vmatpush3.bf16.msra.mxu1 %v4027_v8  ;;  %3791 = vmatprep.mubr.msk.f32.mxu1 %vm603_vm3, %v4614_v51  ;;  %v4959_v51 = vld [vmem:[%s5107_s9] sm:$0x7] }
 0x6bf   : > { %4056 = vmatprep.subr.bf16.mxu1 %v4055_v11 }
 0x6c1   : > { %3792 = vmatmul.mubr.msk.f32.vlgmr.msra.gmra.mrb[24].mxu1 %vm603_vm3, %v4621_v54  ;;  %v2765_v54 = vrot.slane %v4959_v51, %v1357_v12 }
 0x6c2   : > { %3794 = vmatprep.mubr.msk.f32.mxu1 %vm603_vm3, %v4629_v55  ;;  %4058 = vmatpush3.bf16.msra.mxu1 %v4055_v11 }
 0x6c3   : > { %4060 = vmatprep.subr.bf16.mxu1 %v4059_v49 }
 0x6c5   : > { %3795 = vmatmul.mubr.msk.f32.gmra.mrb[26].mxu1 %vm603_vm3, %v4641_v60 }
 0x6c6   : > { %4062 = vmatpush3.bf16.msra.mxu1 %v4059_v49 }
 0x784   : > { %v3835_v55 = vpop.f32.mrb[32].mxu0 }
 0x785   : > { %v2767_v60 = vadd.f32 %v3835_v55, %v2765_v54  ;;  %v2739_v21 = vpop.f32.mrb[33].mxu0 }
 0x786   : > { %v2766_v40 = vadd.f32 %v2765_v54, %v2739_v21 }
 0x787   : > { %v3397_v35 = vmul.f32 -1.442695, %v2767_v60 }
 0x788   : > { %v3396_v37 = vmul.f32 -1.442695, %v2766_v40  ;;  %v3838_v46 = vpop.f32.mrb[34].mxu0 }
 0x789   : > { %4314 = vpow2.f32 %v3397_v35  ;;  %v2769_v39 = vadd.f32 %v3838_v46, %v2765_v54  ;;  %v2749_v62 = vpop.f32.mrb[35].mxu0 }
 0x78a   : > { %4316 = vpow2.f32 %v3396_v37  ;;  %v2768_v63 = vadd.f32 %v2765_v54, %v2749_v62 }
 0x78b   : > { %v3399_v0 = vmul.f32 -1.442695, %v2769_v39 }
 0x78c   : > { %v3398_v32 = vmul.f32 -1.442695, %v2768_v63 }
 0x78d   : > { %4318 = vpow2.f32 %v3399_v0 }
 0x78e   : > { %4320 = vpow2.f32 %v3398_v32 }
 0x793   : > { %v4315_v58 = vpop.eup %4314 }
 0x794   : > { %v4317_v1 = vpop.eup %4316  ;;  %v2783_v2 = vadd.f32 1.0, %v4315_v58  ;;  %v4964_v12 = vpop.f32.mrb[24].mxu1 }
 0x795   : > { %v2782_v31 = vadd.f32 1.0, %v4317_v1  ;;  %v4966_v38 = vpop.f32.mrb[25].mxu1  ;;  %v4355_v1 = vld [vmem:[%s5099_s1 + $0x28] sm:$0xff] }
 0x796   : > { %4322 = vrcp.f32 %v2783_v2  ;;  %v4356_v2 = vld [vmem:[%s5099_s1 + $0x30] sm:$0xff] }
 0x797   : > { %v4319_v29 = vpop.eup %4318  ;;  %4324 = vrcp.f32 %v2782_v31  ;;  %v4357_v31 = vld [vmem:[%s5099_s1 + $0x38] sm:$0xff] }
 0x798   : > { %v4321_v30 = vpop.eup %4320  ;;  %v2785_v41 = vadd.f32 1.0, %v4319_v29  ;;  %v4968_v4 = vpop.f32.mrb[26].mxu1  ;;  %v4358_v29 = vld [vmem:[%s5099_s1] sm:$0xff] }
 0x799   : > { %v2784_v42 = vadd.f32 1.0, %v4321_v30  ;;  %v4970_v6 = vpop.f32.mrb[27].mxu1  ;;  %v4359_v30 = vld [vmem:[%s5099_s1 + $0x8] sm:$0xff] }
 0x79a   : > { %4326 = vrcp.f32 %v2785_v41  ;;  %v4360_v41 = vld [vmem:[%s5099_s1 + $0x10] sm:$0xff] }
 0x79b   : > { %4328 = vrcp.f32 %v2784_v42  ;;  %v4361_v42 = vld [vmem:[%s5099_s1 + $0x18] sm:$0xff] }
 0x7a0   : > { %v4323_v5 = vpop.eup %4322 }
 0x7a1   : > { %v4325_v52 = vpop.eup %4324  ;;  %v2795_v14 = vmul.f32 %v4323_v5, %v4799_v36  ;;  %v4362_v5 = vld [vmem:[%s5099_s1 + $0x40] sm:$0xff] }
 0x7a2   : > { %v2794_v57 = vmul.f32 %v4325_v52, %v4794_v34  ;;  %v4363_v52 = vld [vmem:[%s5099_s1 + $0x48] sm:$0xff] }
 0x7a4   : > { %v4327_v16 = vpop.eup %4326  ;;  %3847 = vmatprep.mubr.msk.f32.mxu1 %vm603_vm3, %v2794_v57  ;;  %v4364_v57 = vld [vmem:[%s5099_s1 + $0x50] sm:$0xff] }
 0x7a5   : > { %v4329_v17 = vpop.eup %4328  ;;  %3848 = vmatmul.mubr.msk.f32.vlgmr.msra.gmra.mrb[28].mxu1 %vm603_vm3, %v2795_v14  ;;  %v2797_v53 = vmul.f32 %v4327_v16, %v4818_v45  ;;  %v4365_v14 = vld [vmem:[%s5099_s1 + $0x58] sm:$0xff]  ;;  %v2446_v16 = vrot.slane %v4959_v51, %v1038_v44 }
 0x7a6   : > { %v2796_v18 = vmul.f32 %v4329_v17, %v4804_v50 }
 0x7a7   : > { %v2448_v17 = vadd.f32 %v4964_v12, %v2446_v16 }
 0x7a8   : > { %3850 = vmatprep.mubr.msk.f32.mxu1 %vm603_vm3, %v2796_v18  ;;  %v2447_v18 = vadd.f32 %v2446_v16, %v4966_v38 }
 0x7a9   : > { %3851 = vmatmul.mubr.msk.f32.gmra.mrb[30].mxu1 %vm603_vm3, %v2797_v53  ;;  %v3381_v53 = vmul.f32 -1.442695, %v2448_v17 }
 0x7aa   : > { %3861 = vmatprep.mubr.msk.f32.mxu1 %vm603_vm3, %v4354_v20  ;;  %v2450_v20 = vadd.f32 %v4968_v4, %v2446_v16  ;;  %v3209_v4 = vrot.slane %v4959_v51, %v1801_v3 }
 0x7ab   : > { %4330 = vpow2.f32 %v3381_v53 }
 0x878   : > { %v3849_v22 = vpop.f32.mrb[28].mxu1 }
 0x879   : > { %2901 = vrot.lane.b32.xlu1 %v3849_v22, %s4379_s12  ;;  %v2876_v23 = vpop.f32.mrb[29].mxu1  ;;  %v3380_v22 = vmul.f32 -1.442695, %v2447_v18 }
 0x87a   : > { %2899 = vrot.lane.b32.xlu0 %v2876_v23, %s4379_s12  ;;  %v2449_v23 = vadd.f32 %v2446_v16, %v4970_v6 }
 0x87b   : > { %4332 = vpow2.f32 %v3380_v22 }
 0x87c   : > { %v3852_v24 = vpop.f32.mrb[30].mxu1 }
 0x87d   : > { %2905 = vrot.lane.b32.xlu1 %v3852_v24, %s4379_s12  ;;  %v2886_v13 = vpop.f32.mrb[31].mxu1  ;;  %v3383_v24 = vmul.f32 -1.442695, %v2450_v20 }
 0x87e   : > { %2903 = vrot.lane.b32.xlu0 %v2886_v13, %s4379_s12  ;;  %v3382_v13 = vmul.f32 -1.442695, %v2449_v23 }
 0x87f   : > { %4334 = vpow2.f32 %v3383_v24 }
 0x880   : > { %4336 = vpow2.f32 %v3382_v13 }
 0x8eb   : > { %v2902_v26 = vpop.permute.xlu1 %2901 }
 0x8ec   : > { %v2913_v27 = vadd.f32 %v2902_v26, %v4867_v19  ;;  %v2914_v28 = vadd.f32 %v4882_v47, %v2902_v26  ;;  %v2900_v8 = vpop.permute.xlu0 %2899  ;;  %v4331_v26 = vpop.eup %4330 }
 0x8ed   : > { %v2911_v9 = vadd.f32 %v2900_v8, %v4864_v15  ;;  %v2912_v10 = vadd.f32 %v2900_v8, %v4886_v56 }
 0x8ef   : > { %v4079_v11 = vpack.c.bf16 %v2914_v28, %v2912_v10  ;;  %v4263_v43 = vpack.i.bf16 %v2913_v27, %v2911_v9  ;;  %v2906_v48 = vpop.permute.xlu1 %2905  ;;  %v4333_v27 = vpop.eup %4332  ;;  %v2464_v28 = vadd.f32 1.0, %v4331_v26 }
 0x8f0   : > { %v2917_v49 = vadd.f32 %v2906_v48, %v4877_v33  ;;  %v2918_v54 = vadd.f32 %v4888_v59, %v2906_v48  ;;  %v2904_v55 = vpop.permute.xlu0 %2903  ;;  %v4335_v44 = vpop.eup %4334  ;;  %v2463_v8 = vadd.f32 1.0, %v4333_v27 }
 0x8f1   : > { %v2915_v60 = vadd.f32 %v2904_v55, %v4873_v25  ;;  %v2916_v21 = vadd.f32 %v2904_v55, %v4892_v61  ;;  %4254 = vrot.lane.b32.xlu0 %v4263_v43, %s4377_s22  ;;  %v4337_v12 = vpop.eup %4336  ;;  %4338 = vrcp.f32 %v2464_v28  ;;  %v2466_v38 = vadd.f32 1.0, %v4335_v44 }
 0x8f2   : > { %4340 = vrcp.f32 %v2463_v8  ;;  %v2465_v6 = vadd.f32 1.0, %v4337_v12 }
 0x8f3   : > { %v4083_v19 = vpack.c.bf16 %v2918_v54, %v2916_v21  ;;  %v4268_v47 = vpack.i.bf16 %v2917_v49, %v2915_v60  ;;  %4342 = vrcp.f32 %v2466_v38 }
 0x8f4   : > { %4344 = vrcp.f32 %v2465_v6 }
 0x8f5   : > { %4264 = vrot.lane.b32.xlu0 %v4263_v43, %s4379_s12  ;;  %4259 = vrot.lane.b32.xlu1 %v4268_v47, %s4377_s22 }
 0x8f9   : > { %4269 = vrot.lane.b32.xlu1 %v4268_v47, %s4379_s12 }
 0x8fb   : > { %v4339_v60 = vpop.eup %4338 }
 0x8fc   : > { %v4341_v21 = vpop.eup %4340  ;;  %v3219_v7 = vsub.f32 1.0, %v4339_v60 }
 0x8fd   : > { %v4343_v3 = vpop.eup %4342  ;;  %v3218_v51 = vsub.f32 1.0, %v4341_v21 }
 0x963   : > { %v4255_v15 = vpop.permute.xlu0 %4254 }
 0x964   : > { %v4257_v56 = vunpack.i.h.bf16 %v4255_v15  ;;  %v4256_v33 = vunpack.i.l.bf16 %v4255_v15 }
 0x966   : > { %v4063_v40 = vpack.c.bf16 %v4257_v56, %v4256_v33  ;;  %v3221_v56 = vsub.f32 1.0, %v4343_v3  ;;  %v3223_v33 = vmul.f32 %v3219_v7, %v4799_v36 }
 0x967   : > { %v4260_v59 = vpop.permute.xlu1 %4259  ;;  %v4265_v35 = vpop.permute.xlu0 %4264 }
 0x968   : > { %v4262_v37 = vunpack.i.h.bf16 %v4260_v59  ;;  %v4261_v25 = vunpack.i.l.bf16 %v4260_v59  ;;  %v4267_v46 = vunpack.i.h.bf16 %v4265_v35  ;;  %v4266_v61 = vunpack.i.l.bf16 %v4265_v35  ;;  %4064 = vmatprep.subr.bf16.mxu1 %v4063_v40 }
 0x969   : > { %4066 = vmatpush3.bf16.msra.mxu1 %v4063_v40  ;;  %v3222_v35 = vmul.f32 %v3218_v51, %v4794_v34  ;;  %v3242_v34 = vld [vmem:[#allocation2] sm:$0xff] (!%p3416_p5) }
 0x96a   : > { %v4067_v39 = vpack.c.bf16 %v4262_v37, %v4261_v25  ;;  %v4071_v63 = vpack.c.bf16 %v4267_v46, %v4266_v61  ;;  %3250 = vst.msk [vmem:[%s5108_s10] sm:$0xff] (!%p3416_p5), %vm603_vm3, %v3242_v34 }
 0x96b   : > { %v4270_v62 = vpop.permute.xlu1 %4269 }
 0x96c   : > { %v4272_v0 = vunpack.i.h.bf16 %v4270_v62  ;;  %v4271_v32 = vunpack.i.l.bf16 %v4270_v62  ;;  %4068 = vmatprep.subr.bf16.mxu1 %v4067_v39  ;;  %v3225_v62 = vmul.f32 %v3221_v56, %v4818_v45 }
 0x96d   : > { %4070 = vmatpush3.bf16.msra.mxu1 %v4067_v39 }
 0x96e   : > { %4072 = vmatprep.subr.bf16.mxu1 %v4071_v63  ;;  %v4075_v58 = vpack.c.bf16 %v4272_v0, %v4271_v32 }
 0x970   : > { %3862 = vmatmul.mubr.msk.f32.vlgmr.msra.gmra.mrb[32].mxu1 %vm603_vm3, %v4355_v1  ;;  %v3243_v1 = vld [vmem:[#allocation2 + $0x8] sm:$0xff] (!%p3416_p5) }
 0x971   : > { %4074 = vmatpush3.bf16.msra.mxu1 %v4071_v63  ;;  %3864 = vmatprep.mubr.msk.f32.mxu1 %vm603_vm3, %v4356_v2  ;;  %v3244_v2 = vld [vmem:[#allocation2 + $0x10] sm:$0xff] (!%p3416_p5)  ;;  %3251 = vst.msk [vmem:[%s5108_s10 + $0x8] sm:$0xff] (!%p3416_p5), %vm603_vm3, %v3243_v1 }
 0x972   : > { %4076 = vmatprep.subr.bf16.mxu1 %v4075_v58  ;;  %3252 = vst.msk [vmem:[%s5108_s10 + $0x10] sm:$0xff] (!%p3416_p5), %vm603_vm3, %v3244_v2 }
 0x974   : > { %3865 = vmatmul.mubr.msk.f32.gmra.mrb[34].mxu1 %vm603_vm3, %v4357_v31 }
 0x975   : > { %4078 = vmatpush3.bf16.msra.mxu1 %v4075_v58  ;;  %3875 = vmatprep.mubr.msk.f32.mxu1 %vm603_vm3, %v4358_v29 }
 0x976   : > { %4080 = vmatprep.subr.bf16.mxu1 %v4079_v11 }
 0x978   : > { %3876 = vmatmul.mubr.msk.f32.vlgmr.msra.gmra.mrb[32].mxu1 %vm603_vm3, %v4359_v30 }
 0x979   : > { %4082 = vmatpush3.bf16.msra.mxu1 %v4079_v11  ;;  %3878 = vmatprep.mubr.msk.f32.mxu1 %vm603_vm3, %v4360_v41 }
 0x97a   : > { %4084 = vmatprep.subr.bf16.mxu1 %v4083_v19 }
 0x97c   : > { %3879 = vmatmul.mubr.msk.f32.gmra.mrb[34].mxu1 %vm603_vm3, %v4361_v42 }
 0x97d   : > { %4086 = vmatpush3.bf16.msra.mxu1 %v4083_v19  ;;  %3889 = vmatprep.mubr.msk.f32.mxu1 %vm603_vm3, %v4362_v5  ;;  %v4345_v19 = vpop.eup %4344 }
 0x97e   : > { %v3220_v59 = vsub.f32 1.0, %v4345_v19 }
 0x980   : > { %3890 = vmatmul.mubr.msk.f32.vlgmr.msra.gmra.mrb[32].mxu1 %vm603_vm3, %v4363_v52  ;;  %v3224_v0 = vmul.f32 %v3220_v59, %v4804_v50  ;;  %v3245_v50 = vld [vmem:[#allocation2 + $0x18] sm:$0xff] (!%p3416_p5) }
 0x981   : > { %3892 = vmatprep.mubr.msk.f32.mxu1 %vm603_vm3, %v4364_v57  ;;  %3253 = vst.msk [vmem:[%s5108_s10 + $0x18] sm:$0xff] (!%p3416_p5), %vm603_vm3, %v3245_v50 }
 0x984   : > { %3893 = vmatmul.mubr.msk.f32.gmra.mrb[34].mxu1 %vm603_vm3, %v4365_v14 }
 0xa53   : > { %v3891_v9 = vpop.f32.mrb[32].mxu1 }
 0xa54   : > { %v3211_v10 = vadd.f32 %v3891_v9, %v3209_v4  ;;  %v3183_v11 = vpop.f32.mrb[33].mxu1 }
 0xa55   : > { %v3210_v43 = vadd.f32 %v3209_v4, %v3183_v11 }
 0xa56   : > { %4346 = vtanh.f32 %v3211_v10 }
 0xa57   : > { %4348 = vtanh.f32 %v3210_v43  ;;  %v3894_v48 = vpop.f32.mrb[34].mxu1 }
 0xa58   : > { %v3213_v49 = vadd.f32 %v3894_v48, %v3209_v4  ;;  %v3193_v54 = vpop.f32.mrb[35].mxu1 }
 0xa59   : > { %v3212_v55 = vadd.f32 %v3209_v4, %v3193_v54 }
 0xa5a   : > { %4350 = vtanh.f32 %v3213_v49 }
 0xa5b   : > { %4352 = vtanh.f32 %v3212_v55 }
 0xa60   : > { %v4347_v47 = vpop.eup %4346 }
 0xa61   : > { %v4349_v15 = vpop.eup %4348  ;;  %v3227_v40 = vmul.f32 %v4347_v47, %v4339_v60 }
 0xa62   : > { %v3226_v37 = vmul.f32 %v4349_v15, %v4341_v21 }
 0xa63   : > { %v3231_v25 = vadd.f32 %v3227_v40, %v3223_v33 }
 0xa64   : > { %v4351_v46 = vpop.eup %4350  ;;  %v3230_v61 = vadd.f32 %v3226_v37, %v3222_v35  ;;  %3241 = sbr.rel (%p3416_p5) target bundleno = 2675 (0xa73), region = 68 }
 0xa65   : > { %v4353_v39 = vpop.eup %4352  ;;  %3235 = vst.msk [vmem:[#allocation2 + $0x28] sm:$0xff] %vm603_vm3, %v3231_v25  ;;  %v3229_v63 = vmul.f32 %v4351_v46, %v4343_v3 }
 0xa66   : > { %3234 = vst.msk [vmem:[#allocation2 + $0x20] sm:$0xff] %vm603_vm3, %v3230_v61  ;;  %v3228_v32 = vmul.f32 %v4353_v39, %v4345_v19 }
 0xa67   : > { %v3233_v36 = vadd.f32 %v3229_v63, %v3225_v62 }
 0xa68   : > { %v3232_v58 = vadd.f32 %v3228_v32, %v3224_v0 }
 0xa69   : > { %3237 = vst.msk [vmem:[#allocation2 + $0x38] sm:$0xff] %vm603_vm3, %v3233_v36 }
 0xa6a   : > { %3236 = vst.msk [vmem:[#allocation2 + $0x30] sm:$0xff] %vm603_vm3, %v3232_v58 }
 0xa6c   : > { %v3247_v31 = vld [vmem:[#allocation2 + $0x28] sm:$0xff] }
 0xa6d   : > { %v3246_v45 = vld [vmem:[#allocation2 + $0x20] sm:$0xff]  ;;  %3255 = vst.msk [vmem:[%s5108_s10 + $0x28] sm:$0xff] %vm603_vm3, %v3247_v31 }
 0xa6e   : > { %3254 = vst.msk [vmem:[%s5108_s10 + $0x20] sm:$0xff] %vm603_vm3, %v3246_v45 }
 0xa70   : > { %v3249_v30 = vld [vmem:[#allocation2 + $0x38] sm:$0xff] }
 0xa71   : > { %v3248_v29 = vld [vmem:[#allocation2 + $0x30] sm:$0xff]  ;;  %3257 = vst.msk [vmem:[%s5108_s10 + $0x38] sm:$0xff] %vm603_vm3, %v3249_v30 }
 0xa72   : > { %3256 = vst.msk [vmem:[%s5108_s10 + $0x30] sm:$0xff] %vm603_vm3, %v3248_v29 }
 0xa73 PF: > { %s20_s13 = sadd.s32 1, %s4372_s13  }
 0xa74   : > { %p17_p6 = scmp.ge.s32.totalorder %s20_s13, 10  }
 0xa76   :  { %19 = sbr.rel (!%p17_p6) target bundleno = 1 (0x1), region = 95 }

// kernel: dcrnn_forward.3
= control target key start
LH: loop header
LB: loop body
LE: loop exit
PB: predicated region body
PF: predicated region fallthrough
CT: control target
= control target key end

     0   :  { %s4894_s29 = smov 0   ;;  %s5603_s0 = inlined_call_operand.vmem [shape: f32[3,32,32], index: 0, kind: input, shape index: {}]   ;;  %s5604_s1 = inlined_call_operand.vmem [shape: f32[2,32,32], index: 1, kind: input, shape index: {}]   ;;  %s5605_s2 = inlined_call_operand.vmem [shape: f32[2,288], index: 2, kind: input, shape index: {}]   ;;  %s5606_s3 = inlined_call_operand.vmem [shape: f32[32,192], index: 3, kind: input, shape index: {}]   ;;  %s5607_s4 = inlined_call_operand.vmem [shape: f32[32,96], index: 4, kind: input, shape index: {}]   ;;  %s5608_s5 = inlined_call_operand.vmem [shape: f32[3,32], index: 5, kind: input, shape index: {}]   ;;  %s5609_s6 = inlined_call_operand.vmem [shape: f32[32,288], index: 6, kind: input, shape index: {}]   ;;  %s5610_s7 = inlined_call_operand.vmem [shape: f32[32,192], index: 7, kind: input, shape index: {}]   ;;  %s5611_s8 = inlined_call_operand.vmem [shape: f32[32,96], index: 8, kind: input, shape index: {}]   ;;  %s5612_s9 = inlined_call_operand.vmem [shape: f32[3,32], index: 9, kind: input, shape index: {}]   ;;  %s5613_s10 = inlined_call_operand.vmem [shape: f32[32,2], index: 10, kind: input, shape index: {}]   ;;  %s5614_s11 = inlined_call_operand.vmem [shape: f32[1,2], index: 11, kind: input, shape index: {}]   ;;  %s5615_s12 = inlined_call_operand.vmem [shape: f32[3,2,1], index: 12, kind: input, shape index: {}]   ;;  %s5616_s13 = inlined_call_operand.vmem [shape: f32[3,1,1], index: 13, kind: input, shape index: {}]   ;;  %s5617_s14 = inlined_call_operand.vmem [shape: f32[3,32,1], index: 14, kind: output, shape index: {}]  }
   0x1 LB: > { %s3674_s30 = sadd.s32 4294967295, %s4811_s29   ;;  %p3678_p0 = scmp.ge.s32.totalorder %s4811_s29, 1  ;;  %s4811_s29 = sphi %s4894_s29, %s24_s29  }
   0x2   : > { %p419_p1 = scmp.lt.s32.totalorder %s4811_s29, 4 }
   0x4   : > { %p420_p2 = pnand %p3678_p0, %p419_p1 }
   0x5   : > { %p467_p3 = scmp.lt.s32.totalorder (!%p420_p2), %s3674_s30, 2  ;;  %p3682_p4 = scmp.ne.s32.totalorder (!%p420_p2), %s3674_s30, 0 }
   0x6   : > { %423 = sbr.rel (%p420_p2) target bundleno = 3093 (0xc15), region = 76 }
   0xd   : > { %s4902_s15 = scalar_select %p467_p3, %s3674_s30, 2 }
   0xe   : > { %482 = sbr.rel (%p3682_p4) target bundleno = 21 (0x15), region = 80  ;;  %v483_v0 = vld [vmem:[%s5604_s1] sm:$0xff] (!%p3682_p4)  ;;  %vm491_vm0 = vcmask (!%p3682_p4), 261120   ;;  %v484_v1 = vld [vmem:[%s5604_s1 + $0x8] sm:$0xff] (!%p3682_p4)  ;;  %v485_v2 = vld [vmem:[%s5604_s1 + $0x10] sm:$0xff] (!%p3682_p4)  ;;  %vm500_vm1 = vcmask (!%p3682_p4), 15360  }
   0xf   : > { %s3679_s16 = sshll.u32 %s4902_s15, 1  ;;  %s3819_s23 = sshll.u32 %s4902_s15, 5  ;;  %492 = vst.msk [vmem:[#allocation2] sm:$0xff] (!%p3682_p4), %vm491_vm0, %v483_v0  ;;  %493 = vst.msk [vmem:[#allocation2 + $0x8] sm:$0xff] (!%p3682_p4), %vm491_vm0, %v484_v1  ;;  %v486_v3 = vld [vmem:[%s5604_s1 + $0x18] sm:$0xff] (!%p3682_p4)  ;;  %v487_v4 = vld [vmem:[%s5604_s1 + $0x20] sm:$0xff] (!%p3682_p4) }
  0x10   : > { %s4912_s22 = scalar_lea.vmem %s5615_s12, %s3679_s16  ;;  %s4918_s26 = scalar_lea.vmem %s5617_s14, %s3819_s23  ;;  %494 = vst.msk [vmem:[#allocation2 + $0x10] sm:$0xff] (!%p3682_p4), %vm491_vm0, %v485_v2  ;;  %v488_v5 = vld [vmem:[%s5604_s1 + $0x28] sm:$0xff] (!%p3682_p4)  ;;  %v4813_v6 = vmov (!%p3682_p4), 0.0   ;;  %495 = vst.msk [vmem:[#allocation2 + $0x18] sm:$0xff] (!%p3682_p4), %vm491_vm0, %v486_v3  ;;  %v489_v7 = vld [vmem:[%s5604_s1 + $0x30] sm:$0xff] (!%p3682_p4) }
  0x11   : > { %501 = vst.msk [vmem:[#allocation3] sm:$0xff] (!%p3682_p4), %vm500_vm1, %v4813_v6  ;;  %502 = vst.msk [vmem:[#allocation3 + $0x8] sm:$0xff] (!%p3682_p4), %vm500_vm1, %v4813_v6  ;;  %v490_v8 = vld [vmem:[%s5604_s1 + $0x38] sm:$0xff] (!%p3682_p4) }
  0x12   : > { %503 = vst.msk [vmem:[#allocation3 + $0x10] sm:$0xff] (!%p3682_p4), %vm500_vm1, %v4813_v6  ;;  %504 = vst.msk [vmem:[#allocation3 + $0x18] sm:$0xff] (!%p3682_p4), %vm500_vm1, %v4813_v6 }
  0x13   : > { %496 = vst.msk [vmem:[#allocation2 + $0x20] sm:$0xff] (!%p3682_p4), %vm491_vm0, %v487_v4  ;;  %497 = vst.msk [vmem:[#allocation2 + $0x28] sm:$0xff] (!%p3682_p4), %vm491_vm0, %v488_v5 }
  0x14   : > { %498 = vst.msk [vmem:[#allocation2 + $0x30] sm:$0xff] (!%p3682_p4), %vm491_vm0, %v489_v7  ;;  %499 = vst.msk [vmem:[#allocation2 + $0x38] sm:$0xff] (!%p3682_p4), %vm491_vm0, %v490_v8 }
  0x15 PF: > { %v521_v9 = vld [vmem:[%s5605_s2] sm:$0x3f]  ;;  %v544_v10 = vlaneseq  ;;  %v4814_v12 = vmov 1983009808   ;;  %vm556_vm2 = vcmask 15360   ;;  %v4815_v15 = vmov 0.0  }
  0x16   : > { %v542_v13 = vunpack.c.l.s4 %v4814_v12  ;;  %640 = vmatprep.mubr.f32.mxu0 %v4815_v15  ;;  %v540_v16 = vcombine.high %v521_v9, %v521_v9  ;;  %v523_v18 = vld [vmem:[%s5606_s3 + $0x8] sm:$0xff]  ;;  %v525_v19 = vld [vmem:[%s5606_s3 + $0x18] sm:$0xff]  ;;  %v522_v21 = vld [vmem:[%s5606_s3] sm:$0xff]  ;;  %vm569_vm3 = vcmask 1041408   ;;  %vm750_vm4 = vcmask 261120   ;;  %s4816_s18 = smov 32  }
  0x17   : > { %v4955_v14 = vshrl.u32 %v544_v10, 7  ;;  %v524_v22 = vld [vmem:[%s5606_s3 + $0x10] sm:$0xff]  ;;  %v527_v23 = vld [vmem:[%s5606_s3 + $0x28] sm:$0xff]  ;;  %v529_v24 = vld [vmem:[%s5606_s3 + $0x38] sm:$0xff]  ;;  %v4330_v26 = vpack.c.bf16 %v525_v19, %v523_v18  ;;  %s5620_s20 = smov 96   ;;  %s5618_s17 = smov 64  }
  0x18   : > { %v517_v11 = vld [vmem:[#allocation3] sm:$0xff]  ;;  %v543_v17 = vunpack.c.0.s8 %v542_v13  ;;  %v518_v28 = vld [vmem:[#allocation3 + $0x8] sm:$0xff]  ;;  %v4332_v29 = vpack.c.bf16 %v524_v22, %v522_v21  ;;  %v4334_v31 = vpack.c.bf16 %v529_v24, %v527_v23  ;;  %v528_v34 = vld [vmem:[%s5606_s3 + $0x30] sm:$0xff]  ;;  %s5623_s27 = smov 64   ;;  %vm3605_vm5 = vcmask 7168  }
  0x19   : > { %4008 = vmatprep.mubr.msk.f32.mxu1 %vm556_vm2, %v517_v11  ;;  %v519_v30 = vld [vmem:[#allocation3 + $0x10] sm:$0xff]  ;;  %v526_v33 = vld [vmem:[%s5606_s3 + $0x20] sm:$0xff]  ;;  %v520_v35 = vld [vmem:[#allocation3 + $0x18] sm:$0xff] }
  0x1a   : > { %v546_v20 = vsub.s32 %v543_v17, %v4955_v14  ;;  %v4336_v36 = vpack.c.bf16 %v528_v34, %v526_v33  ;;  %v4993_v37 = vld [vmem:[#allocation2] sm:$0xff]  ;;  %v5000_v38 = vld [vmem:[#allocation2 + $0x8] sm:$0xff]  ;;  %v5007_v39 = vld [vmem:[#allocation2 + $0x10] sm:$0xff] }
  0x1b   : > { %v5014_v40 = vld [vmem:[#allocation2 + $0x18] sm:$0xff]  ;;  %v5031_v47 = vld [vmem:[%s5603_s0 + $0x20] sm:$0xff]  ;;  %v5063_v17 = vld [vmem:[%s5603_s0 + $0x30] sm:$0xff] }
  0x1c   : > { %v554_v25 = vrot.slane %v540_v16, %v546_v20  ;;  %v547_v27 = vrot.slane %v521_v9, %v546_v20  ;;  %v5058_v16 = vld [vmem:[%s5603_s0 + $0x28] sm:$0xff]  ;;  %v5074_v18 = vld [vmem:[%s5603_s0 + $0x38] sm:$0xff]  ;;  %v5079_v19 = vld [vmem:[%s5603_s0] sm:$0xff] }
  0x1e   : > { %4006 = vmatprep.subr.msk.mxu1 %vm569_vm3, %v554_v25  ;;  %v555_v32 = vcombine.high %v547_v27, %v547_v27 }
  0x1f   : > { %4007 = vmatpush3.msk.msra.mxu1 %vm569_vm3, %v554_v25 }
  0x20   : > { %4009 = vmatmul.mubr.msk.f32.vlgmr.msra.gmra.mrb[0].mxu1 %vm556_vm2, %v518_v28  ;;  %4331 = vmatprep.subr.bf16.mxu1 %v4330_v26 }
  0x21   : > { %4333 = vmatpush1.bf16.msra.mxu1 %v4332_v29  ;;  %4011 = vmatprep.mubr.msk.f32.mxu1 %vm556_vm2, %v519_v30 }
  0x22   : > { %4335 = vmatprep.subr.bf16.mxu1 %v4334_v31  ;;  %3683 = vmatprep.subr.msk.mxu0 %vm569_vm3, %v555_v32 }
  0x23   : > { %3684 = vmatpush1.msk.msra.mxu0 %vm569_vm3, %v547_v27 }
  0x24   : > { %4012 = vmatmul.mubr.msk.f32.gmra.mrb[2].mxu1 %vm556_vm2, %v520_v35  ;;  %3685 = vmatmul.mubr.msk.f32.vlgmr.msra.gmra.mrb[0].mxu0 %vm556_vm2, %v517_v11 }
  0x25   : > { %4337 = vmatpush1.bf16.msra.mxu1 %v4336_v36  ;;  %827 = vmatprep.mubr.f32.mxu1 %v4815_v15 }
  0x26   : > { %646 = vmatprep.mubr.f32.mxu0 %v4815_v15 }
  0x28   : > { %3694 = vmatmul.mubr.msk.f32.vlgmr.msra.gmra.mrb[4].mxu1 %vm750_vm4, %v4993_v37  ;;  %3686 = vmatmul.mubr.msk.f32.gmra.mrb[2].mxu0 %vm556_vm2, %v518_v28 }
  0x29   : > { %833 = vmatprep.mubr.f32.mxu1 %v4815_v15  ;;  %652 = vmatprep.mubr.f32.mxu0 %v4815_v15 }
  0x2c   : > { %3695 = vmatmul.mubr.msk.f32.gmra.mrb[6].mxu1 %vm750_vm4, %v5000_v38  ;;  %3687 = vmatmul.mubr.msk.f32.gmra.mrb[4].mxu0 %vm556_vm2, %v519_v30 }
  0x2d   : > { %839 = vmatprep.mubr.f32.mxu1 %v4815_v15  ;;  %658 = vmatprep.mubr.f32.mxu0 %v4815_v15 }
  0x30   : > { %3696 = vmatmul.mubr.msk.f32.gmra.mrb[8].mxu1 %vm750_vm4, %v5007_v39  ;;  %3688 = vmatmul.mubr.msk.f32.gmra.mrb[6].mxu0 %vm556_vm2, %v520_v35 }
  0x31   : > { %845 = vmatprep.mubr.f32.mxu1 %v4815_v15  ;;  %4022 = vmatprep.mubr.msk.f32.mxu0 %vm750_vm4, %v5031_v47 }
  0x34   : > { %3697 = vmatmul.mubr.msk.f32.gmra.mrb[10].mxu1 %vm750_vm4, %v5014_v40 }
  0x35   : > { %4064 = vmatprep.mubr.msk.f32.mxu1 %vm750_vm4, %v5031_v47 }
  0xf3   : > { %v5018_v41 = vpop.f32.mrb[0].mxu1 }
  0xf4   : > { %v5020_v42 = vpop.f32.mrb[1].mxu1 }
  0xf7   : > { %v5022_v43 = vpop.f32.mrb[2].mxu1  ;;  %v642_v44 = vpop.f32.mrb[0].mxu0 }
  0xf8   : > { %v5024_v45 = vpop.f32.mrb[3].mxu1  ;;  %v5026_v46 = vpop.f32.mrb[1].mxu0 }
  0xfb   : > { %v829_v48 = vpop.f32.mrb[4].mxu1  ;;  %v648_v49 = vpop.f32.mrb[2].mxu0 }
  0xfc   : > { %v852_v50 = vadd.f32 %v829_v48, %v642_v44  ;;  %v831_v51 = vpop.f32.mrb[5].mxu1  ;;  %v5037_v52 = vpop.f32.mrb[3].mxu0 }
  0xfd   : > { %v856_v53 = vadd.f32 %v831_v51, %v5026_v46  ;;  %v5090_v51 = vld [vmem:[%s5603_s0 + $0x8] sm:$0xff] }
  0xff   : > { %v835_v54 = vpop.f32.mrb[6].mxu1  ;;  %v654_v55 = vpop.f32.mrb[4].mxu0 }
 0x100   : > { %v853_v56 = vadd.f32 %v835_v54, %v648_v49  ;;  %v837_v57 = vpop.f32.mrb[7].mxu1  ;;  %v5040_v58 = vpop.f32.mrb[5].mxu0 }
 0x101   : > { %v857_v59 = vadd.f32 %v837_v57, %v5037_v52  ;;  %v5102_v57 = vld [vmem:[%s5603_s0 + $0x18] sm:$0xff] }
 0x102   : > { %v4592_v60 = vpack.i.bf16 %v853_v56, %v852_v50  ;;  %v5043_v61 = vpack.c.bf16 %v853_v56, %v852_v50  ;;  %v5097_v56 = vld [vmem:[%s5603_s0 + $0x10] sm:$0xff] }
 0x103   : > { %v4362_v62 = vpack.c.bf16 %v857_v59, %v856_v53  ;;  %v841_v63 = vpop.f32.mrb[8].mxu1  ;;  %v4602_v0 = vpack.i.bf16 %v857_v59, %v856_v53  ;;  %v660_v1 = vpop.f32.mrb[6].mxu0  ;;  %v5109_v59 = vld [vmem:[%s5603_s0 + $0x40] sm:$0xff] }
 0x104   : > { %v854_v2 = vadd.f32 %v841_v63, %v654_v55  ;;  %v843_v3 = vpop.f32.mrb[9].mxu1  ;;  %4593 = vrot.lane.b32.xlu0 %v4592_v60, %s4816_s18  ;;  %v5046_v4 = vpop.f32.mrb[7].mxu0  ;;  %v5124_v63 = vld [vmem:[%s5603_s0 + $0x50] sm:$0xff] }
 0x105   : > { %v858_v5 = vadd.f32 %v843_v3, %v5040_v58  ;;  %4603 = vrot.lane.b32.xlu1 %v4602_v0, %s5620_s20  ;;  %4363 = vmatprep.subr.bf16.mxu1 %v4362_v62  ;;  %v5136_v3 = vld [vmem:[%s5603_s0 + $0x58] sm:$0xff] }
 0x106   : > { %4365 = vmatpush3.bf16.msra.mxu1 %v4362_v62  ;;  %v5116_v62 = vld [vmem:[%s5603_s0 + $0x48] sm:$0xff] }
 0x107   : > { %v847_v6 = vpop.f32.mrb[10].mxu1 }
 0x108   : > { %v855_v7 = vadd.f32 %v847_v6, %v660_v1  ;;  %v849_v8 = vpop.f32.mrb[11].mxu1 }
 0x109   : > { %v859_v9 = vadd.f32 %v849_v8, %v5046_v4  ;;  %v530_v8 = vld [vmem:[%s5607_s4] sm:$0xff] }
 0x10a   : > { %v4597_v10 = vpack.i.bf16 %v855_v7, %v854_v2  ;;  %v5051_v11 = vpack.c.bf16 %v855_v7, %v854_v2 }
 0x10b   : > { %v4607_v12 = vpack.i.bf16 %v859_v9, %v858_v5  ;;  %v4366_v13 = vpack.c.bf16 %v859_v9, %v858_v5  ;;  %v531_v9 = vld [vmem:[%s5607_s4 + $0x8] sm:$0xff] }
 0x10c   : > { %4598 = vrot.lane.b32.xlu0 %v4597_v10, %s4816_s18 }
 0x10d   : > { %4608 = vrot.lane.b32.xlu1 %v4607_v12, %s5620_s20  ;;  %4367 = vmatprep.subr.bf16.mxu1 %v4366_v13  ;;  %v533_v12 = vld [vmem:[%s5607_s4 + $0x18] sm:$0xff] }
 0x10e   : > { %4369 = vmatpush3.bf16.msra.mxu1 %v4366_v13 }
 0x110   : > { %4613 = vrot.lane.b32.xlu0 %v4592_v60, %s5620_s20 }
 0x111   : > { %4618 = vrot.lane.b32.xlu1 %v4597_v10, %s5620_s20  ;;  %4065 = vmatmul.mubr.msk.f32.vlgmr.msra.gmra.mrb[12].mxu1 %vm750_vm4, %v5058_v16 }
 0x112   : > { %4067 = vmatprep.mubr.msk.f32.mxu1 %vm750_vm4, %v5063_v17 }
 0x114   : > { %4623 = vrot.lane.b32.xlu0 %v4592_v60, %s5618_s17 }
 0x115   : > { %4628 = vrot.lane.b32.xlu1 %v4597_v10, %s5618_s17  ;;  %4068 = vmatmul.mubr.msk.f32.gmra.mrb[14].mxu1 %vm750_vm4, %v5074_v18  ;;  %v4386_v10 = vpack.c.bf16 %v531_v9, %v530_v8 }
 0x116   : > { %4078 = vmatprep.mubr.msk.f32.mxu1 %vm750_vm4, %v5079_v19 }
 0x176   : > { %v4594_v20 = vpop.permute.xlu0 %4593 }
 0x177   : > { %v4596_v21 = vunpack.i.h.bf16 %v4594_v20  ;;  %v4595_v22 = vunpack.i.l.bf16 %v4594_v20  ;;  %v4604_v24 = vpop.permute.xlu1 %4603  ;;  %v1504_v20 = vsub.s32 1, %v4955_v14 }
 0x178   : > { %v4606_v25 = vunpack.i.h.bf16 %v4604_v24  ;;  %v4605_v26 = vunpack.i.l.bf16 %v4604_v24 }
 0x179   : > { %v4370_v23 = vpack.c.bf16 %v4596_v21, %v4595_v22  ;;  %v5179_v21 = vld [vmem:[%s5608_s5] sm:$0x7] }
 0x17a   : > { %v4378_v32 = vpack.c.bf16 %v4606_v25, %v4605_v26  ;;  %v1505_v22 = vrot.slane %v5179_v21, %v1504_v20 }
 0x17b   : > { %4371 = vmatprep.subr.bf16.mxu1 %v4370_v23 }
 0x17c   : > { %4373 = vmatpush3.bf16.msra.mxu1 %v4370_v23 }
 0x17e   : > { %v4599_v27 = vpop.permute.xlu0 %4598 }
 0x17f   : > { %v4601_v28 = vunpack.i.h.bf16 %v4599_v27  ;;  %v4600_v29 = vunpack.i.l.bf16 %v4599_v27  ;;  %v4609_v30 = vpop.permute.xlu1 %4608 }
 0x180   : > { %v4611_v34 = vunpack.i.h.bf16 %v4609_v30  ;;  %v4610_v35 = vunpack.i.l.bf16 %v4609_v30 }
 0x181   : > { %v4374_v31 = vpack.c.bf16 %v4601_v28, %v4600_v29 }
 0x182   : > { %v4614_v33 = vpop.permute.xlu0 %4613  ;;  %v4382_v55 = vpack.c.bf16 %v4611_v34, %v4610_v35 }
 0x183   : > { %v4616_v36 = vunpack.i.h.bf16 %v4614_v33  ;;  %v4615_v44 = vunpack.i.l.bf16 %v4614_v33  ;;  %v4619_v48 = vpop.permute.xlu1 %4618  ;;  %4375 = vmatprep.subr.bf16.mxu1 %v4374_v31 }
 0x184   : > { %v4621_v49 = vunpack.i.h.bf16 %v4619_v48  ;;  %v4620_v50 = vunpack.i.l.bf16 %v4619_v48  ;;  %4377 = vmatpush3.bf16.msra.mxu1 %v4374_v31 }
 0x185   : > { %v4338_v53 = vpack.c.bf16 %v4616_v36, %v4615_v44  ;;  %4379 = vmatprep.subr.bf16.mxu1 %v4378_v32 }
 0x186   : > { %v4342_v54 = vpack.c.bf16 %v4621_v49, %v4620_v50  ;;  %v4624_v60 = vpop.permute.xlu0 %4623 }
 0x187   : > { %4339 = vmatprep.subr.bf16.mxu0 %v4338_v53  ;;  %4079 = vmatmul.mubr.msk.f32.vlgmr.msra.gmra.mrb[12].mxu1 %vm750_vm4, %v5090_v51  ;;  %v4626_v0 = vunpack.i.h.bf16 %v4624_v60  ;;  %v4625_v1 = vunpack.i.l.bf16 %v4624_v60  ;;  %v4629_v2 = vpop.permute.xlu1 %4628 }
 0x188   : > { %4341 = vmatpush3.bf16.msra.mxu0 %v4338_v53  ;;  %4381 = vmatpush3.bf16.msra.mxu1 %v4378_v32  ;;  %v4631_v6 = vunpack.i.h.bf16 %v4629_v2  ;;  %v4630_v7 = vunpack.i.l.bf16 %v4629_v2 }
 0x189   : > { %4343 = vmatprep.subr.bf16.mxu0 %v4342_v54  ;;  %4383 = vmatprep.subr.bf16.mxu1 %v4382_v55  ;;  %v4354_v5 = vpack.c.bf16 %v4626_v0, %v4625_v1 }
 0x18a   : > { %4081 = vmatprep.mubr.msk.f32.mxu1 %vm750_vm4, %v5097_v56 }
 0x18b   : > { %4082 = vmatmul.mubr.msk.f32.gmra.mrb[14].mxu1 %vm750_vm4, %v5102_v57 }
 0x18c   : > { %4345 = vmatpush3.bf16.msra.mxu0 %v4342_v54  ;;  %4385 = vmatpush3.bf16.msra.mxu1 %v4382_v55 }
 0x18d   : > { %4347 = vmatprep.subr.bf16.mxu0 %v5043_v61  ;;  %4092 = vmatprep.mubr.msk.f32.mxu1 %vm750_vm4, %v5109_v59 }
 0x18f   : > { %4093 = vmatmul.mubr.msk.f32.vlgmr.msra.gmra.mrb[12].mxu1 %vm750_vm4, %v5116_v62  ;;  %4023 = vmatmul.mubr.msk.f32.vlgmr.msra.gmra.mrb[8].mxu0 %vm750_vm4, %v5058_v16 }
 0x190   : > { %4349 = vmatpush3.bf16.msra.mxu0 %v5043_v61  ;;  %4095 = vmatprep.mubr.msk.f32.mxu1 %vm750_vm4, %v5124_v63  ;;  %v4358_v61 = vpack.c.bf16 %v4631_v6, %v4630_v7 }
 0x191   : > { %4351 = vmatprep.subr.bf16.mxu0 %v5051_v11  ;;  %4025 = vmatprep.mubr.msk.f32.mxu0 %vm750_vm4, %v5063_v17 }
 0x193   : > { %4096 = vmatmul.mubr.msk.f32.gmra.mrb[14].mxu1 %vm750_vm4, %v5136_v3  ;;  %4026 = vmatmul.mubr.msk.f32.gmra.mrb[10].mxu0 %vm750_vm4, %v5074_v18 }
 0x194   : > { %4353 = vmatpush3.bf16.msra.mxu0 %v5051_v11  ;;  %4036 = vmatprep.mubr.msk.f32.mxu0 %vm750_vm4, %v5079_v19  ;;  %v532_v11 = vld [vmem:[%s5607_s4 + $0x10] sm:$0xff] }
 0x195   : > { %4355 = vmatprep.subr.bf16.mxu0 %v4354_v5  ;;  %2084 = vmatprep.mubr.f32.mxu1 %v4815_v15  ;;  %v4390_v13 = vpack.c.bf16 %v533_v12, %v532_v11 }
 0x197   : > { %4037 = vmatmul.mubr.msk.f32.vlgmr.msra.gmra.mrb[8].mxu0 %vm750_vm4, %v5090_v51 }
 0x198   : > { %4357 = vmatpush3.bf16.msra.mxu0 %v4354_v5  ;;  %4039 = vmatprep.mubr.msk.f32.mxu0 %vm750_vm4, %v5097_v56 }
 0x199   : > { %4359 = vmatprep.subr.bf16.mxu0 %v4358_v61 }
 0x19b   : > { %4040 = vmatmul.mubr.msk.f32.gmra.mrb[10].mxu0 %vm750_vm4, %v5102_v57 }
 0x19c   : > { %4361 = vmatpush3.bf16.msra.mxu0 %v4358_v61  ;;  %4050 = vmatprep.mubr.msk.f32.mxu0 %vm750_vm4, %v5109_v59 }
 0x19d   : > { %4387 = vmatprep.subr.bf16.mxu0 %v4386_v10 }
 0x19f   : > { %4051 = vmatmul.mubr.msk.f32.vlgmr.msra.gmra.mrb[8].mxu0 %vm750_vm4, %v5116_v62 }
 0x1a0   : > { %4053 = vmatprep.mubr.msk.f32.mxu0 %vm750_vm4, %v5124_v63  ;;  %4389 = vmatpush3.bf16.msra.mxu0 %v4386_v10 }
 0x1a1   : > { %4391 = vmatprep.subr.bf16.mxu0 %v4390_v13 }
 0x1a3   : > { %4054 = vmatmul.mubr.msk.f32.gmra.mrb[10].mxu0 %vm750_vm4, %v5136_v3 }
 0x1a4   : > { %4393 = vmatpush3.bf16.msra.mxu0 %v4390_v13 }
 0x262   : > { %v4094_v23 = vpop.f32.mrb[12].mxu1 }
 0x263   : > { %v1507_v24 = vadd.f32 %v4094_v23, %v1505_v22  ;;  %v1479_v25 = vpop.f32.mrb[13].mxu1 }
 0x264   : > { %v1506_v26 = vadd.f32 %v1505_v22, %v1479_v25 }
 0x265   : > { %v3727_v27 = vmul.f32 -1.442695, %v1507_v24 }
 0x266   : > { %v3726_v28 = vmul.f32 -1.442695, %v1506_v26  ;;  %v4097_v29 = vpop.f32.mrb[14].mxu1 }
 0x267   : > { %4713 = vpow2.f32 %v3727_v27  ;;  %v1509_v30 = vadd.f32 %v4097_v29, %v1505_v22  ;;  %v1489_v31 = vpop.f32.mrb[15].mxu1 }
 0x268   : > { %4715 = vpow2.f32 %v3726_v28  ;;  %v1508_v32 = vadd.f32 %v1505_v22, %v1489_v31 }
 0x269   : > { %v3729_v33 = vmul.f32 -1.442695, %v1509_v30 }
 0x26a   : > { %v3728_v34 = vmul.f32 -1.442695, %v1508_v32 }
 0x26b   : > { %4717 = vpow2.f32 %v3729_v33 }
 0x26c   : > { %4719 = vpow2.f32 %v3728_v34 }
 0x271   : > { %v4714_v35 = vpop.eup %4713 }
 0x272   : > { %v4716_v36 = vpop.eup %4715  ;;  %v1523_v44 = vadd.f32 1.0, %v4714_v35  ;;  %v5184_v48 = vpop.f32.mrb[8].mxu0 }
 0x273   : > { %v1522_v49 = vadd.f32 1.0, %v4716_v36  ;;  %v5186_v50 = vpop.f32.mrb[9].mxu0 }
 0x274   : > { %4721 = vrcp.f32 %v1523_v44 }
 0x275   : > { %v4718_v53 = vpop.eup %4717  ;;  %4723 = vrcp.f32 %v1522_v49 }
 0x276   : > { %v4720_v54 = vpop.eup %4719  ;;  %v1525_v55 = vadd.f32 1.0, %v4718_v53  ;;  %v5188_v60 = vpop.f32.mrb[10].mxu0 }
 0x277   : > { %v1524_v0 = vadd.f32 1.0, %v4720_v54  ;;  %v5190_v1 = vpop.f32.mrb[11].mxu0 }
 0x278   : > { %4725 = vrcp.f32 %v1525_v55 }
 0x279   : > { %4727 = vrcp.f32 %v1524_v0 }
 0x27e   : > { %v4722_v2 = vpop.eup %4721 }
 0x27f   : > { %v4724_v5 = vpop.eup %4723  ;;  %v1535_v7 = vmul.f32 %v4722_v2, %v5000_v38 }
 0x280   : > { %v1534_v6 = vmul.f32 %v4724_v5, %v4993_v37 }
 0x282   : > { %v4726_v61 = vpop.eup %4725  ;;  %4106 = vmatprep.mubr.msk.f32.mxu0 %vm750_vm4, %v1534_v6 }
 0x283   : > { %v4728_v8 = vpop.eup %4727  ;;  %4107 = vmatmul.mubr.msk.f32.vlgmr.msra.gmra.mrb[12].mxu0 %vm750_vm4, %v1535_v7  ;;  %v1537_v10 = vmul.f32 %v4726_v61, %v5014_v40  ;;  %v1991_v61 = vld [vmem:[%s5610_s7 + $0x8] sm:$0xff] }
 0x284   : > { %v1536_v9 = vmul.f32 %v4728_v8, %v5007_v39  ;;  %v1993_v8 = vld [vmem:[%s5610_s7 + $0x18] sm:$0xff] }
 0x286   : > { %4109 = vmatprep.mubr.msk.f32.mxu0 %vm750_vm4, %v1536_v9  ;;  %v4434_v9 = vpack.c.bf16 %v1993_v8, %v1991_v61 }
 0x287   : > { %4110 = vmatmul.mubr.msk.f32.gmra.mrb[14].mxu0 %vm750_vm4, %v1537_v10  ;;  %v1979_v10 = vld [vmem:[%s5609_s6 + $0x8] sm:$0xff] }
 0x288   : > { %4120 = vmatprep.mubr.msk.f32.mxu0 %vm750_vm4, %v5031_v47 }
 0x356   : > { %v4108_v11 = vpop.f32.mrb[12].mxu0 }
 0x357   : > { %1641 = vrot.lane.b32.xlu1 %v4108_v11, %s5618_s17  ;;  %v1616_v12 = vpop.f32.mrb[13].mxu0  ;;  %v1982_v11 = vld [vmem:[%s5609_s6 + $0x20] sm:$0xff] }
 0x358   : > { %1639 = vrot.lane.b32.xlu0 %v1616_v12, %s5618_s17  ;;  %v1990_v12 = vld [vmem:[%s5610_s7] sm:$0xff] }
 0x35a   : > { %v4111_v13 = vpop.f32.mrb[14].mxu0 }
 0x35b   : > { %1645 = vrot.lane.b32.xlu1 %v4111_v13, %s5618_s17  ;;  %v1626_v22 = vpop.f32.mrb[15].mxu0  ;;  %v4418_v13 = vpack.c.bf16 %v1982_v11, %v1979_v10  ;;  %v1948_v11 = vsub.s32 2, %v4955_v14 }
 0x35c   : > { %1643 = vrot.lane.b32.xlu0 %v1626_v22, %s5618_s17  ;;  %v1992_v22 = vld [vmem:[%s5610_s7 + $0x10] sm:$0xff] }
 0x35d   : > { %4419 = vmatprep.subr.bf16.mxu1 %v4418_v13 }
 0x3c9   : > { %v1642_v23 = vpop.permute.xlu1 %1641 }
 0x3ca   : > { %v1653_v24 = vadd.f32 %v1642_v23, %v5037_v52  ;;  %v1654_v25 = vadd.f32 %v5018_v41, %v1642_v23  ;;  %v1640_v26 = vpop.permute.xlu0 %1639  ;;  %v1978_v23 = vld [vmem:[%s5609_s6] sm:$0xff] }
 0x3cb   : > { %v1651_v27 = vadd.f32 %v1640_v26, %v5026_v46  ;;  %v1652_v28 = vadd.f32 %v1640_v26, %v5020_v42 }
 0x3cd   : > { %v4410_v29 = vpack.c.bf16 %v1654_v25, %v1652_v28  ;;  %v4642_v30 = vpack.i.bf16 %v1653_v24, %v1651_v27  ;;  %v1646_v31 = vpop.permute.xlu1 %1645  ;;  %v1981_v24 = vld [vmem:[%s5609_s6 + $0x18] sm:$0xff]  ;;  %v4436_v25 = vpack.c.bf16 %v1992_v22, %v1990_v12  ;;  %v1995_v27 = vld [vmem:[%s5610_s7 + $0x28] sm:$0xff] }
 0x3ce   : > { %v1657_v32 = vadd.f32 %v1646_v31, %v5046_v4  ;;  %v1658_v33 = vadd.f32 %v5022_v43, %v1646_v31  ;;  %v1644_v34 = vpop.permute.xlu0 %1643  ;;  %v4420_v26 = vpack.c.bf16 %v1981_v24, %v1978_v23  ;;  %v1997_v28 = vld [vmem:[%s5610_s7 + $0x38] sm:$0xff]  ;;  %v1988_v31 = vld [vmem:[%s5609_s6 + $0x50] sm:$0xff] }
 0x3cf   : > { %v1655_v35 = vadd.f32 %v1644_v34, %v5040_v58  ;;  %v1656_v36 = vadd.f32 %v1644_v34, %v5024_v45  ;;  %4633 = vrot.lane.b32.xlu0 %v4642_v30, %s4816_s18  ;;  %v1996_v34 = vld [vmem:[%s5610_s7 + $0x30] sm:$0xff] }
 0x3d0   : > { %4421 = vmatpush1.bf16.msra.mxu1 %v4420_v26 }
 0x3d1   : > { %v4414_v41 = vpack.c.bf16 %v1658_v33, %v1656_v36  ;;  %v4647_v52 = vpack.i.bf16 %v1657_v32, %v1655_v35  ;;  %v1994_v32 = vld [vmem:[%s5610_s7 + $0x20] sm:$0xff]  ;;  %v1984_v35 = vld [vmem:[%s5609_s6 + $0x30] sm:$0xff]  ;;  %v1987_v36 = vld [vmem:[%s5609_s6 + $0x48] sm:$0xff] }
 0x3d3   : > { %4643 = vrot.lane.b32.xlu0 %v4642_v30, %s5618_s17  ;;  %4638 = vrot.lane.b32.xlu1 %v4647_v52, %s4816_s18  ;;  %v1985_v30 = vld [vmem:[%s5609_s6 + $0x38] sm:$0xff] }
 0x3d4   : > { %v4422_v33 = vpack.c.bf16 %v1988_v31, %v1985_v30 }
 0x3d6   : > { %4423 = vmatprep.subr.bf16.mxu1 %v4422_v33 }
 0x3d7   : > { %4648 = vrot.lane.b32.xlu1 %v4647_v52, %s5618_s17  ;;  %v4424_v52 = vpack.c.bf16 %v1987_v36, %v1984_v35  ;;  %s5622_s17 = smov 96  }
 0x3d9   : > { %4425 = vmatpush1.bf16.msra.mxu1 %v4424_v52 }
 0x441   : > { %v4634_v42 = vpop.permute.xlu0 %4633 }
 0x442   : > { %v4636_v46 = vunpack.i.h.bf16 %v4634_v42  ;;  %v4635_v4 = vunpack.i.l.bf16 %v4634_v42  ;;  %v5289_v42 = vld [vmem:[#allocation2 + $0x20] sm:$0xff] }
 0x444   : > { %v4394_v44 = vpack.c.bf16 %v4636_v46, %v4635_v4  ;;  %v5294_v46 = vld [vmem:[#allocation2 + $0x28] sm:$0xff]  ;;  %v5299_v4 = vld [vmem:[#allocation2 + $0x30] sm:$0xff] }
 0x445   : > { %v4639_v43 = vpop.permute.xlu1 %4638  ;;  %v4644_v49 = vpop.permute.xlu0 %4643 }
 0x446   : > { %v4641_v53 = vunpack.i.h.bf16 %v4639_v43  ;;  %v4640_v58 = vunpack.i.l.bf16 %v4639_v43  ;;  %v4646_v54 = vunpack.i.h.bf16 %v4644_v49  ;;  %v4645_v45 = vunpack.i.l.bf16 %v4644_v49  ;;  %4395 = vmatprep.subr.bf16.mxu0 %v4394_v44  ;;  %v1983_v43 = vld [vmem:[%s5609_s6 + $0x28] sm:$0xff] }
 0x447   : > { %4397 = vmatpush3.bf16.msra.mxu0 %v4394_v44  ;;  %v1980_v44 = vld [vmem:[%s5609_s6 + $0x10] sm:$0xff] }
 0x448   : > { %v4398_v55 = vpack.c.bf16 %v4641_v53, %v4640_v58  ;;  %v4402_v2 = vpack.c.bf16 %v4646_v54, %v4645_v45  ;;  %v5307_v49 = vpack.c.bf16 %v1983_v43, %v1980_v44  ;;  %v5313_v53 = vld [vmem:[#allocation2 + $0x38] sm:$0xff]  ;;  %v1185_v58 = vsub.s32 0, %v4955_v14  ;;  %v1986_v43 = vld [vmem:[%s5609_s6 + $0x40] sm:$0xff] }
 0x449   : > { %v4649_v0 = vpop.permute.xlu1 %4648 }
 0x44a   : > { %v4651_v5 = vunpack.i.h.bf16 %v4649_v0  ;;  %v4650_v6 = vunpack.i.l.bf16 %v4649_v0  ;;  %4399 = vmatprep.subr.bf16.mxu0 %v4398_v55  ;;  %4427 = vmatprep.subr.bf16.mxu1 %v5307_v49  ;;  %v1186_v54 = vrot.slane %v5179_v21, %v1185_v58 }
 0x44b   : > { %4401 = vmatpush3.bf16.msra.mxu0 %v4398_v55 }
 0x44c   : > { %4403 = vmatprep.subr.bf16.mxu0 %v4402_v2  ;;  %v4406_v7 = vpack.c.bf16 %v4651_v5, %v4650_v6  ;;  %v1188_v45 = vadd.f32 %v5184_v48, %v1186_v54  ;;  %v1187_v55 = vadd.f32 %v1186_v54, %v5186_v50  ;;  %v1189_v6 = vadd.f32 %v1186_v54, %v5190_v1 }
 0x44e   : > { %4121 = vmatmul.mubr.msk.f32.vlgmr.msra.gmra.mrb[16].mxu0 %vm750_vm4, %v5058_v16  ;;  %v3711_v0 = vmul.f32 -1.442695, %v1188_v45  ;;  %v3710_v5 = vmul.f32 -1.442695, %v1187_v55  ;;  %v3712_v61 = vmul.f32 -1.442695, %v1189_v6 }
 0x44f   : > { %4405 = vmatpush3.bf16.msra.mxu0 %v4402_v2  ;;  %4123 = vmatprep.mubr.msk.f32.mxu0 %vm750_vm4, %v5063_v17  ;;  %v1190_v2 = vadd.f32 %v5188_v60, %v1186_v54  ;;  %v1949_v60 = vrot.slane %v5179_v21, %v1948_v11  ;;  %v1989_v54 = vld [vmem:[%s5609_s6 + $0x58] sm:$0xff] }
 0x450   : > { %4407 = vmatprep.subr.bf16.mxu0 %v4406_v7  ;;  %4729 = vpow2.f32 %v3711_v0 }
 0x451   : > { %4731 = vpow2.f32 %v3710_v5 }
 0x452   : > { %4124 = vmatmul.mubr.msk.f32.gmra.mrb[18].mxu0 %vm750_vm4, %v5074_v18 }
 0x453   : > { %4409 = vmatpush3.bf16.msra.mxu0 %v4406_v7  ;;  %4134 = vmatprep.mubr.msk.f32.mxu0 %vm750_vm4, %v5079_v19  ;;  %v3713_v7 = vmul.f32 -1.442695, %v1190_v2 }
 0x454   : > { %4411 = vmatprep.subr.bf16.mxu0 %v4410_v29 }
 0x455   : > { %4733 = vpow2.f32 %v3713_v7  ;;  %v4430_v7 = vpack.c.bf16 %v1989_v54, %v1986_v43 }
 0x456   : > { %4135 = vmatmul.mubr.msk.f32.vlgmr.msra.gmra.mrb[16].mxu0 %vm750_vm4, %v5090_v51  ;;  %4735 = vpow2.f32 %v3712_v61 }
 0x457   : > { %4413 = vmatpush3.bf16.msra.mxu0 %v4410_v29  ;;  %4137 = vmatprep.mubr.msk.f32.mxu0 %vm750_vm4, %v5097_v56  ;;  %v4438_v29 = vpack.c.bf16 %v1997_v28, %v1995_v27 }
 0x458   : > { %4415 = vmatprep.subr.bf16.mxu0 %v4414_v41 }
 0x45a   : > { %4138 = vmatmul.mubr.msk.f32.gmra.mrb[18].mxu0 %vm750_vm4, %v5102_v57  ;;  %v4730_v8 = vpop.eup %4729 }
 0x45b   : > { %4417 = vmatpush3.bf16.msra.mxu0 %v4414_v41  ;;  %4148 = vmatprep.mubr.msk.f32.mxu0 %vm750_vm4, %v5109_v59  ;;  %v4440_v41 = vpack.c.bf16 %v1996_v34, %v1994_v32  ;;  %v1204_v10 = vadd.f32 1.0, %v4730_v8 }
 0x45c   : > { %4435 = vmatprep.subr.bf16.mxu0 %v4434_v9  ;;  %v4732_v9 = vpop.eup %4731 }
 0x45d   : > { %v1203_v12 = vadd.f32 1.0, %v4732_v9  ;;  %4737 = vrcp.f32 %v1204_v10 }
 0x45e   : > { %4149 = vmatmul.mubr.msk.f32.vlgmr.msra.gmra.mrb[16].mxu0 %vm750_vm4, %v5116_v62 }
 0x45f   : > { %4151 = vmatprep.mubr.msk.f32.mxu0 %vm750_vm4, %v5124_v63  ;;  %4437 = vmatpush1.bf16.msra.mxu0 %v4436_v25  ;;  %v4734_v48 = vpop.eup %4733  ;;  %4739 = vrcp.f32 %v1203_v12 }
 0x460   : > { %4439 = vmatprep.subr.bf16.mxu0 %v4438_v29  ;;  %v4736_v50 = vpop.eup %4735  ;;  %v1206_v13 = vadd.f32 1.0, %v4734_v48 }
 0x461   : > { %v1205_v1 = vadd.f32 1.0, %v4736_v50 }
 0x462   : > { %4152 = vmatmul.mubr.msk.f32.gmra.mrb[18].mxu0 %vm750_vm4, %v5136_v3  ;;  %4741 = vrcp.f32 %v1206_v13 }
 0x463   : > { %2270 = vmatprep.mubr.f32.mxu0 %v4815_v15  ;;  %4441 = vmatpush1.bf16.msra.mxu0 %v4440_v41  ;;  %4743 = vrcp.f32 %v1205_v1 }
 0x466   : > { %3754 = vmatmul.mubr.msk.f32.vlgmr.msra.gmra.mrb[20].mxu0 %vm750_vm4, %v5289_v42 }
 0x467   : > { %2276 = vmatprep.mubr.f32.mxu0 %v4815_v15  ;;  %v4738_v30 = vpop.eup %4737 }
 0x468   : > { %v1959_v32 = vsub.f32 1.0, %v4738_v30 }
 0x469   : > { %v4740_v31 = vpop.eup %4739 }
 0x46a   : > { %3755 = vmatmul.mubr.msk.f32.gmra.mrb[22].mxu0 %vm750_vm4, %v5294_v46  ;;  %v1958_v33 = vsub.f32 1.0, %v4740_v31  ;;  %v1963_v41 = vmul.f32 %v1959_v32, %v5000_v38 }
 0x46b   : > { %2282 = vmatprep.mubr.f32.mxu0 %v4815_v15 }
 0x46c   : > { %v4742_v21 = vpop.eup %4741  ;;  %v1962_v45 = vmul.f32 %v1958_v33, %v4993_v37 }
 0x46d   : > { %v4744_v34 = vpop.eup %4743  ;;  %v1961_v44 = vsub.f32 1.0, %v4742_v21 }
 0x46e   : > { %3756 = vmatmul.mubr.msk.f32.gmra.mrb[24].mxu0 %vm750_vm4, %v5299_v4  ;;  %v1960_v0 = vsub.f32 1.0, %v4744_v34 }
 0x46f   : > { %2288 = vmatprep.mubr.f32.mxu0 %v4815_v15  ;;  %v1965_v38 = vmul.f32 %v1961_v44, %v5014_v40 }
 0x470   : > { %v1964_v9 = vmul.f32 %v1960_v0, %v5007_v39 }
 0x472   : > { %3757 = vmatmul.mubr.msk.f32.gmra.mrb[26].mxu0 %vm750_vm4, %v5313_v53 }
 0x473   : > { %4218 = vmatprep.mubr.msk.f32.mxu0 %vm750_vm4, %v5031_v47 }
 0x531   : > { %v4150_v22 = vpop.f32.mrb[16].mxu0 }
 0x532   : > { %v1951_v23 = vadd.f32 %v4150_v22, %v1949_v60  ;;  %v1923_v24 = vpop.f32.mrb[17].mxu0 }
 0x533   : > { %v1950_v25 = vadd.f32 %v1949_v60, %v1923_v24 }
 0x534   : > { %4745 = vtanh.f32 %v1951_v23 }
 0x535   : > { %4747 = vtanh.f32 %v1950_v25  ;;  %v4153_v26 = vpop.f32.mrb[18].mxu0 }
 0x536   : > { %v1953_v27 = vadd.f32 %v4153_v26, %v1949_v60  ;;  %v1933_v28 = vpop.f32.mrb[19].mxu0 }
 0x537   : > { %v1952_v29 = vadd.f32 %v1949_v60, %v1933_v28 }
 0x538   : > { %4749 = vtanh.f32 %v1953_v27 }
 0x539   : > { %4751 = vtanh.f32 %v1952_v29  ;;  %v2272_v39 = vpop.f32.mrb[20].mxu0 }
 0x53a   : > { %v2274_v40 = vpop.f32.mrb[21].mxu0 }
 0x53e   : > { %v4746_v35 = vpop.eup %4745 }
 0x53f   : > { %v4748_v36 = vpop.eup %4747  ;;  %v1967_v52 = vmul.f32 %v4746_v35, %v4738_v30 }
 0x540   : > { %v1966_v55 = vmul.f32 %v4748_v36, %v4740_v31 }
 0x541   : > { %v1971_v2 = vadd.f32 %v1967_v52, %v1963_v41 }
 0x542   : > { %v4750_v5 = vpop.eup %4749  ;;  %v1970_v6 = vadd.f32 %v1966_v55, %v1962_v45 }
 0x543   : > { %v4752_v61 = vpop.eup %4751  ;;  %1975 = vst.msk [vmem:[#allocation2 + $0x8] sm:$0xff] %vm750_vm4, %v1971_v2  ;;  %v1969_v8 = vmul.f32 %v4750_v5, %v4742_v21 }
 0x544   : > { %1974 = vst.msk [vmem:[#allocation2] sm:$0xff] %vm750_vm4, %v1970_v6  ;;  %3746 = vmatmul.mubr.msk.f32.vlgmr.msra.gmra.mrb[16].mxu1 %vm750_vm4, %v1970_v6  ;;  %v1968_v10 = vmul.f32 %v4752_v61, %v4744_v34 }
 0x545   : > { %2090 = vmatprep.mubr.f32.mxu1 %v4815_v15  ;;  %4429 = vmatpush3.bf16.msra.mxu1 %v5307_v49  ;;  %v1973_v37 = vadd.f32 %v1969_v8, %v1965_v38  ;;  %v2278_v49 = vpop.f32.mrb[22].mxu0 }
 0x546   : > { %v1972_v48 = vadd.f32 %v1968_v10, %v1964_v9  ;;  %4431 = vmatprep.subr.bf16.mxu1 %v4430_v7  ;;  %v2280_v12 = vpop.f32.mrb[23].mxu0 }
 0x547   : > { %1977 = vst.msk [vmem:[#allocation2 + $0x18] sm:$0xff] %vm750_vm4, %v1973_v37  ;;  %v2284_v50 = vpop.f32.mrb[24].mxu0 }
 0x548   : > { %3747 = vmatmul.mubr.msk.f32.gmra.mrb[18].mxu1 %vm750_vm4, %v1971_v2  ;;  %1976 = vst.msk [vmem:[#allocation2 + $0x10] sm:$0xff] %vm750_vm4, %v1972_v48  ;;  %v2286_v13 = vpop.f32.mrb[25].mxu0 }
 0x549   : > { %2096 = vmatprep.mubr.f32.mxu1 %v4815_v15  ;;  %4433 = vmatpush3.bf16.msra.mxu1 %v4430_v7 }
 0x54c   : > { %3748 = vmatmul.mubr.msk.f32.gmra.mrb[20].mxu1 %vm750_vm4, %v1972_v48 }
 0x54d   : > { %2102 = vmatprep.mubr.f32.mxu1 %v4815_v15  ;;  %v2290_v15 = vpop.f32.mrb[26].mxu0 }
 0x54e   : > { %v2292_v60 = vpop.f32.mrb[27].mxu0 }
 0x550   : > { %3749 = vmatmul.mubr.msk.f32.gmra.mrb[22].mxu1 %vm750_vm4, %v1973_v37 }
 0x551   : > { %4162 = vmatprep.mubr.msk.f32.mxu1 %vm750_vm4, %v1970_v6 }
 0x554   : > { %4163 = vmatmul.mubr.msk.f32.vlgmr.msra.gmra.mrb[24].mxu1 %vm750_vm4, %v1971_v2 }
 0x555   : > { %4165 = vmatprep.mubr.msk.f32.mxu1 %vm750_vm4, %v1972_v48 }
 0x558   : > { %4166 = vmatmul.mubr.msk.f32.gmra.mrb[26].mxu1 %vm750_vm4, %v1973_v37 }
 0x559   : > { %4176 = vmatprep.mubr.msk.f32.mxu1 %vm750_vm4, %v5031_v47 }
 0x617   : > { %v2086_v1 = vpop.f32.mrb[16].mxu1 }
 0x618   : > { %v2295_v22 = vadd.f32 %v2272_v39, %v2086_v1  ;;  %v5359_v23 = vpop.f32.mrb[17].mxu1 }
 0x619   : > { %v2299_v24 = vadd.f32 %v2274_v40, %v5359_v23 }
 0x61b   : > { %v2092_v25 = vpop.f32.mrb[18].mxu1 }
 0x61c   : > { %v2296_v26 = vadd.f32 %v2278_v49, %v2092_v25  ;;  %v5362_v27 = vpop.f32.mrb[19].mxu1 }
 0x61d   : > { %v2300_v47 = vadd.f32 %v2280_v12, %v5362_v27 }
 0x61e   : > { %v4652_v28 = vpack.i.bf16 %v2296_v26, %v2295_v22  ;;  %v5365_v29 = vpack.c.bf16 %v2296_v26, %v2295_v22 }
 0x61f   : > { %v4662_v30 = vpack.i.bf16 %v2300_v47, %v2299_v24  ;;  %v4466_v31 = vpack.c.bf16 %v2300_v47, %v2299_v24  ;;  %v2098_v32 = vpop.f32.mrb[20].mxu1 }
 0x620   : > { %v2297_v21 = vadd.f32 %v2284_v50, %v2098_v32  ;;  %4653 = vrot.lane.b32.xlu0 %v4652_v28, %s4816_s18  ;;  %v5368_v33 = vpop.f32.mrb[21].mxu1 }
 0x621   : > { %v2301_v34 = vadd.f32 %v2286_v13, %v5368_v33  ;;  %4467 = vmatprep.subr.bf16.mxu0 %v4466_v31 }
 0x622   : > { %4469 = vmatpush3.bf16.msra.mxu0 %v4466_v31 }
 0x623   : > { %v2104_v35 = vpop.f32.mrb[22].mxu1 }
 0x624   : > { %v2298_v36 = vadd.f32 %v2290_v15, %v2104_v35  ;;  %4663 = vrot.lane.b32.xlu0 %v4662_v30, %s5622_s17  ;;  %v5372_v41 = vpop.f32.mrb[23].mxu1 }
 0x625   : > { %v2302_v52 = vadd.f32 %v2292_v60, %v5372_v41 }
 0x626   : > { %v4657_v44 = vpack.i.bf16 %v2298_v36, %v2297_v21  ;;  %v5375_v43 = vpack.c.bf16 %v2298_v36, %v2297_v21 }
 0x627   : > { %v4667_v54 = vpack.i.bf16 %v2302_v52, %v2301_v34  ;;  %v4470_v45 = vpack.c.bf16 %v2302_v52, %v2301_v34  ;;  %v5377_v55 = vpop.f32.mrb[24].mxu1 }
 0x628   : > { %4673 = vrot.lane.b32.xlu0 %v4652_v28, %s5622_s17  ;;  %4658 = vrot.lane.b32.xlu1 %v4657_v44, %s4816_s18  ;;  %v5381_v0 = vpop.f32.mrb[25].mxu1 }
 0x629   : > { %4471 = vmatprep.subr.bf16.mxu0 %v4470_v45 }
 0x62a   : > { %4473 = vmatpush3.bf16.msra.mxu0 %v4470_v45 }
 0x62b   : > { %v5383_v2 = vpop.f32.mrb[26].mxu1 }
 0x62c   : > { %4683 = vrot.lane.b32.xlu0 %v4652_v28, %s5623_s27  ;;  %4668 = vrot.lane.b32.xlu1 %v4667_v54, %s5622_s17  ;;  %v5387_v5 = vpop.f32.mrb[27].mxu1 }
 0x62d   : > { %4219 = vmatmul.mubr.msk.f32.vlgmr.msra.gmra.mrb[28].mxu0 %vm750_vm4, %v5058_v16 }
 0x62e   : > { %4221 = vmatprep.mubr.msk.f32.mxu0 %vm750_vm4, %v5063_v17 }
 0x630   : > { %4678 = vrot.lane.b32.xlu1 %v4657_v44, %s5622_s17  ;;  %s5624_s17 = scalar_lea.vmem %s5616_s13, %s4902_s15 }
 0x631   : > { %4222 = vmatmul.mubr.msk.f32.gmra.mrb[30].mxu0 %vm750_vm4, %v5074_v18 }
 0x632   : > { %4232 = vmatprep.mubr.msk.f32.mxu0 %vm750_vm4, %v5079_v19 }
 0x634   : > { %4688 = vrot.lane.b32.xlu1 %v4657_v44, %s5623_s27 }
 0x692   : > { %v4654_v6 = vpop.permute.xlu0 %4653 }
 0x693   : > { %v4656_v7 = vunpack.i.h.bf16 %v4654_v6  ;;  %v4655_v61 = vunpack.i.l.bf16 %v4654_v6 }
 0x695   : > { %v4474_v38 = vpack.c.bf16 %v4656_v7, %v4655_v61 }
 0x696   : > { %v4664_v8 = vpop.permute.xlu0 %4663 }
 0x697   : > { %4475 = vmatprep.subr.bf16.mxu0 %v4474_v38  ;;  %v4666_v9 = vunpack.i.h.bf16 %v4664_v8  ;;  %v4665_v10 = vunpack.i.l.bf16 %v4664_v8 }
 0x698   : > { %4477 = vmatpush3.bf16.msra.mxu0 %v4474_v38 }
 0x699   : > { %v4482_v60 = vpack.c.bf16 %v4666_v9, %v4665_v10 }
 0x69a   : > { %v4674_v37 = vpop.permute.xlu0 %4673  ;;  %v4659_v48 = vpop.permute.xlu1 %4658 }
 0x69b   : > { %v4676_v39 = vunpack.i.h.bf16 %v4674_v37  ;;  %v4675_v40 = vunpack.i.l.bf16 %v4674_v37  ;;  %v4661_v49 = vunpack.i.h.bf16 %v4659_v48  ;;  %v4660_v12 = vunpack.i.l.bf16 %v4659_v48 }
 0x69d   : > { %v4442_v50 = vpack.c.bf16 %v4676_v39, %v4675_v40  ;;  %v4478_v13 = vpack.c.bf16 %v4661_v49, %v4660_v12 }
 0x69e   : > { %v4669_v15 = vpop.permute.xlu1 %4668  ;;  %v4684_v30 = vpop.permute.xlu0 %4683 }
 0x69f   : > { %v4671_v1 = vunpack.i.h.bf16 %v4669_v15  ;;  %v4670_v22 = vunpack.i.l.bf16 %v4669_v15  ;;  %4443 = vmatprep.subr.bf16.mxu1 %v4442_v50  ;;  %4479 = vmatprep.subr.bf16.mxu0 %v4478_v13  ;;  %v4686_v31 = vunpack.i.h.bf16 %v4684_v30  ;;  %v4685_v32 = vunpack.i.l.bf16 %v4684_v30 }
 0x6a0   : > { %4445 = vmatpush3.bf16.msra.mxu1 %v4442_v50  ;;  %4481 = vmatpush3.bf16.msra.mxu0 %v4478_v13 }
 0x6a1   : > { %4483 = vmatprep.subr.bf16.mxu0 %v4482_v60  ;;  %v4486_v25 = vpack.c.bf16 %v4671_v1, %v4670_v22  ;;  %v4458_v34 = vpack.c.bf16 %v4686_v31, %v4685_v32 }
 0x6a2   : > { %v4679_v24 = vpop.permute.xlu1 %4678 }
 0x6a3   : > { %v4681_v26 = vunpack.i.h.bf16 %v4679_v24  ;;  %v4680_v47 = vunpack.i.l.bf16 %v4679_v24  ;;  %4233 = vmatmul.mubr.msk.f32.vlgmr.msra.gmra.mrb[28].mxu0 %vm750_vm4, %v5090_v51 }
 0x6a4   : > { %4485 = vmatpush3.bf16.msra.mxu0 %v4482_v60  ;;  %4235 = vmatprep.mubr.msk.f32.mxu0 %vm750_vm4, %v5097_v56 }
 0x6a5   : > { %v4446_v28 = vpack.c.bf16 %v4681_v26, %v4680_v47  ;;  %4487 = vmatprep.subr.bf16.mxu0 %v4486_v25 }
 0x6a6   : > { %v4689_v21 = vpop.permute.xlu1 %4688 }
 0x6a7   : > { %4447 = vmatprep.subr.bf16.mxu1 %v4446_v28  ;;  %4236 = vmatmul.mubr.msk.f32.gmra.mrb[30].mxu0 %vm750_vm4, %v5102_v57  ;;  %v4691_v35 = vunpack.i.h.bf16 %v4689_v21  ;;  %v4690_v36 = vunpack.i.l.bf16 %v4689_v21 }
 0x6a8   : > { %4449 = vmatpush3.bf16.msra.mxu1 %v4446_v28  ;;  %4489 = vmatpush3.bf16.msra.mxu0 %v4486_v25  ;;  %v4793_v28 = vld [vmem:[%s5603_s0 + $0x20] sm:$0xff] }
 0x6a9   : > { %4451 = vmatprep.subr.bf16.mxu1 %v5365_v29  ;;  %4246 = vmatprep.mubr.msk.f32.mxu0 %vm750_vm4, %v5109_v59 }
 0x6ab   : > { %4247 = vmatmul.mubr.msk.f32.vlgmr.msra.gmra.mrb[28].mxu0 %vm750_vm4, %v5116_v62  ;;  %4177 = vmatmul.mubr.msk.f32.vlgmr.msra.gmra.mrb[28].mxu1 %vm750_vm4, %v5058_v16  ;;  %v4462_v16 = vpack.c.bf16 %v4691_v35, %v4690_v36 }
 0x6ac   : > { %4453 = vmatpush3.bf16.msra.mxu1 %v5365_v29  ;;  %4249 = vmatprep.mubr.msk.f32.mxu0 %vm750_vm4, %v5124_v63 }
 0x6ad   : > { %4455 = vmatprep.subr.bf16.mxu1 %v5375_v43  ;;  %4179 = vmatprep.mubr.msk.f32.mxu1 %vm750_vm4, %v5063_v17  ;;  %v1998_v17 = vld [vmem:[%s5611_s8] sm:$0xff] }
 0x6af   : > { %4250 = vmatmul.mubr.msk.f32.gmra.mrb[30].mxu0 %vm750_vm4, %v5136_v3  ;;  %4180 = vmatmul.mubr.msk.f32.gmra.mrb[30].mxu1 %vm750_vm4, %v5074_v18  ;;  %v1999_v18 = vld [vmem:[%s5611_s8 + $0x8] sm:$0xff] }
 0x6b0   : > { %4457 = vmatpush3.bf16.msra.mxu1 %v5375_v43  ;;  %4190 = vmatprep.mubr.msk.f32.mxu1 %vm750_vm4, %v5079_v19  ;;  %v4490_v19 = vpack.c.bf16 %v1999_v18, %v1998_v17 }
 0x6b1   : > { %4459 = vmatprep.subr.bf16.mxu1 %v4458_v34 }
 0x6b3   : > { %4191 = vmatmul.mubr.msk.f32.vlgmr.msra.gmra.mrb[28].mxu1 %vm750_vm4, %v5090_v51  ;;  %v2000_v51 = vld [vmem:[%s5611_s8 + $0x10] sm:$0xff] }
 0x6b4   : > { %4461 = vmatpush3.bf16.msra.mxu1 %v4458_v34  ;;  %4193 = vmatprep.mubr.msk.f32.mxu1 %vm750_vm4, %v5097_v56  ;;  %v2001_v56 = vld [vmem:[%s5611_s8 + $0x18] sm:$0xff] }
 0x6b5   : > { %4463 = vmatprep.subr.bf16.mxu1 %v4462_v16 }
 0x6b7   : > { %4194 = vmatmul.mubr.msk.f32.gmra.mrb[30].mxu1 %vm750_vm4, %v5102_v57  ;;  %v4494_v57 = vpack.c.bf16 %v2001_v56, %v2000_v51 }
 0x6b8   : > { %4465 = vmatpush3.bf16.msra.mxu1 %v4462_v16  ;;  %4204 = vmatprep.mubr.msk.f32.mxu1 %vm750_vm4, %v5109_v59  ;;  %v5454_v59 = vld [vmem:[%s5612_s9] sm:$0x7] }
 0x6b9   : > { %4491 = vmatprep.subr.bf16.mxu1 %v4490_v19 }
 0x6bb   : > { %4205 = vmatmul.mubr.msk.f32.vlgmr.msra.gmra.mrb[28].mxu1 %vm750_vm4, %v5116_v62  ;;  %v2912_v62 = vrot.slane %v5454_v59, %v1504_v20 }
 0x6bc   : > { %4207 = vmatprep.mubr.msk.f32.mxu1 %vm750_vm4, %v5124_v63  ;;  %4493 = vmatpush3.bf16.msra.mxu1 %v4490_v19 }
 0x6bd   : > { %4495 = vmatprep.subr.bf16.mxu1 %v4494_v57 }
 0x6bf   : > { %4208 = vmatmul.mubr.msk.f32.gmra.mrb[30].mxu1 %vm750_vm4, %v5136_v3 }
 0x6c0   : > { %4497 = vmatpush3.bf16.msra.mxu1 %v4494_v57 }
 0x77e   : > { %v4248_v63 = vpop.f32.mrb[28].mxu0 }
 0x77f   : > { %v2914_v3 = vadd.f32 %v4248_v63, %v2912_v62  ;;  %v2886_v29 = vpop.f32.mrb[29].mxu0 }
 0x780   : > { %v2913_v52 = vadd.f32 %v2912_v62, %v2886_v29 }
 0x781   : > { %v3787_v44 = vmul.f32 -1.442695, %v2914_v3 }
 0x782   : > { %v3786_v43 = vmul.f32 -1.442695, %v2913_v52  ;;  %v4251_v54 = vpop.f32.mrb[30].mxu0 }
 0x783   : > { %4753 = vpow2.f32 %v3787_v44  ;;  %v2916_v45 = vadd.f32 %v4251_v54, %v2912_v62  ;;  %v2896_v6 = vpop.f32.mrb[31].mxu0 }
 0x784   : > { %4755 = vpow2.f32 %v3786_v43  ;;  %v2915_v7 = vadd.f32 %v2912_v62, %v2896_v6 }
 0x785   : > { %v3789_v61 = vmul.f32 -1.442695, %v2916_v45 }
 0x786   : > { %v3788_v38 = vmul.f32 -1.442695, %v2915_v7 }
 0x787   : > { %4757 = vpow2.f32 %v3789_v61 }
 0x788   : > { %4759 = vpow2.f32 %v3788_v38 }
 0x78d   : > { %v4754_v8 = vpop.eup %4753 }
 0x78e   : > { %v4756_v9 = vpop.eup %4755  ;;  %v2930_v10 = vadd.f32 1.0, %v4754_v8  ;;  %v5459_v20 = vpop.f32.mrb[28].mxu1 }
 0x78f   : > { %v2929_v37 = vadd.f32 1.0, %v4756_v9  ;;  %v5461_v48 = vpop.f32.mrb[29].mxu1  ;;  %v4794_v9 = vld [vmem:[%s5603_s0 + $0x28] sm:$0xff] }
 0x790   : > { %4761 = vrcp.f32 %v2930_v10  ;;  %v4795_v10 = vld [vmem:[%s5603_s0 + $0x30] sm:$0xff] }
 0x791   : > { %v4758_v39 = vpop.eup %4757  ;;  %4763 = vrcp.f32 %v2929_v37  ;;  %v4796_v37 = vld [vmem:[%s5603_s0 + $0x38] sm:$0xff] }
 0x792   : > { %v4760_v40 = vpop.eup %4759  ;;  %v2932_v49 = vadd.f32 1.0, %v4758_v39  ;;  %v5463_v12 = vpop.f32.mrb[30].mxu1  ;;  %v4797_v39 = vld [vmem:[%s5603_s0] sm:$0xff] }
 0x793   : > { %v2931_v50 = vadd.f32 1.0, %v4760_v40  ;;  %v5465_v13 = vpop.f32.mrb[31].mxu1  ;;  %v4798_v40 = vld [vmem:[%s5603_s0 + $0x8] sm:$0xff] }
 0x794   : > { %4765 = vrcp.f32 %v2932_v49  ;;  %v4799_v49 = vld [vmem:[%s5603_s0 + $0x10] sm:$0xff] }
 0x795   : > { %4767 = vrcp.f32 %v2931_v50  ;;  %v4800_v50 = vld [vmem:[%s5603_s0 + $0x18] sm:$0xff] }
 0x79a   : > { %v4762_v15 = vpop.eup %4761 }
 0x79b   : > { %v4764_v60 = vpop.eup %4763  ;;  %v2942_v22 = vmul.f32 %v4762_v15, %v5294_v46  ;;  %v4801_v15 = vld [vmem:[%s5603_s0 + $0x40] sm:$0xff] }
 0x79c   : > { %v2941_v1 = vmul.f32 %v4764_v60, %v5289_v42  ;;  %v4802_v60 = vld [vmem:[%s5603_s0 + $0x48] sm:$0xff] }
 0x79e   : > { %v4766_v24 = vpop.eup %4765  ;;  %4260 = vmatprep.mubr.msk.f32.mxu1 %vm750_vm4, %v2941_v1  ;;  %v4803_v1 = vld [vmem:[%s5603_s0 + $0x50] sm:$0xff] }
 0x79f   : > { %v4768_v25 = vpop.eup %4767  ;;  %4261 = vmatmul.mubr.msk.f32.vlgmr.msra.gmra.mrb[32].mxu1 %vm750_vm4, %v2942_v22  ;;  %v2944_v47 = vmul.f32 %v4766_v24, %v5313_v53  ;;  %v4804_v22 = vld [vmem:[%s5603_s0 + $0x58] sm:$0xff]  ;;  %v3385_v24 = vld [vmem:[%s5613_s10] sm:$0xff] }
 0x7a0   : > { %v2943_v26 = vmul.f32 %v4768_v25, %v5299_v4  ;;  %v3386_v25 = vld [vmem:[%s5613_s10 + $0x8] sm:$0xff] }
 0x7a2   : > { %4263 = vmatprep.mubr.msk.f32.mxu1 %vm750_vm4, %v2943_v26  ;;  %v4522_v26 = vpack.c.bf16 %v3386_v25, %v3385_v24 }
 0x7a3   : > { %4264 = vmatmul.mubr.msk.f32.gmra.mrb[34].mxu1 %vm750_vm4, %v2944_v47  ;;  %v3387_v47 = vld [vmem:[%s5613_s10 + $0x10] sm:$0xff] }
 0x7a4   : > { %4274 = vmatprep.mubr.msk.f32.mxu1 %vm750_vm4, %v4793_v28  ;;  %4523 = vmatprep.subr.bf16.mxu0 %v4522_v26  ;;  %v3388_v28 = vld [vmem:[%s5613_s10 + $0x18] sm:$0xff] }
 0x7a5   : > { %4525 = vmatpush3.bf16.msra.mxu0 %v4522_v26  ;;  %v3811_v26 = vld [vmem:[%s5624_s17] ss:$0 sm:$0xff] }
 0x872   : > { %v4262_v30 = vpop.f32.mrb[32].mxu1 }
 0x873   : > { %3048 = vrot.lane.b32.xlu1 %v4262_v30, %s5623_s27  ;;  %v3023_v31 = vpop.f32.mrb[33].mxu1  ;;  %v4526_v30 = vpack.c.bf16 %v3388_v28, %v3387_v47 }
 0x874   : > { %3046 = vrot.lane.b32.xlu0 %v3023_v31, %s5623_s27  ;;  %v5552_v31 = vld [vmem:[%s4912_s22] sm:$0x3] }
 0x875   : > { %4527 = vmatprep.subr.bf16.mxu0 %v4526_v30 }
 0x876   : > { %v4265_v32 = vpop.f32.mrb[34].mxu1  ;;  %4529 = vmatpush3.bf16.msra.mxu0 %v4526_v30 }
 0x877   : > { %3052 = vrot.lane.b32.xlu1 %v4265_v32, %s5623_s27  ;;  %v3033_v21 = vpop.f32.mrb[35].mxu1  ;;  %4322 = vmatprep.subr.msk.mxu0 %vm569_vm3, %v5552_v31  ;;  %v2593_v32 = vrot.slane %v5454_v59, %v1185_v58 }
 0x878   : > { %3050 = vrot.lane.b32.xlu0 %v3033_v21, %s5623_s27 }
 0x879   : > { %v2595_v21 = vadd.f32 %v5459_v20, %v2593_v32 }
 0x8e5   : > { %v3049_v34 = vpop.permute.xlu1 %3048 }
 0x8e6   : > { %v3060_v35 = vadd.f32 %v3049_v34, %v5362_v27  ;;  %v3061_v36 = vadd.f32 %v5377_v55, %v3049_v34  ;;  %v3047_v16 = vpop.permute.xlu0 %3046  ;;  %v2594_v34 = vadd.f32 %v2593_v32, %v5461_v48 }
 0x8e7   : > { %v3058_v17 = vadd.f32 %v3047_v16, %v5359_v23  ;;  %v3059_v18 = vadd.f32 %v3047_v16, %v5381_v0 }
 0x8e8   : > { %v3770_v16 = vmul.f32 -1.442695, %v2594_v34 }
 0x8e9   : > { %v4514_v19 = vpack.c.bf16 %v3061_v36, %v3059_v18  ;;  %v4702_v51 = vpack.i.bf16 %v3060_v35, %v3058_v17  ;;  %v3053_v56 = vpop.permute.xlu1 %3052  ;;  %v3771_v35 = vmul.f32 -1.442695, %v2595_v21  ;;  %v2597_v36 = vadd.f32 %v5463_v12, %v2593_v32 }
 0x8ea   : > { %v3064_v57 = vadd.f32 %v3053_v56, %v5372_v41  ;;  %v3065_v62 = vadd.f32 %v5383_v2, %v3053_v56  ;;  %v3051_v63 = vpop.permute.xlu0 %3050  ;;  %v2596_v17 = vadd.f32 %v2593_v32, %v5465_v13  ;;  %v3356_v12 = vrot.slane %v5454_v59, %v1948_v11 }
 0x8eb   : > { %v3062_v3 = vadd.f32 %v3051_v63, %v5368_v33  ;;  %v3063_v29 = vadd.f32 %v3051_v63, %v5387_v5  ;;  %4693 = vrot.lane.b32.xlu0 %v4702_v51, %s4816_s18  ;;  %4769 = vpow2.f32 %v3771_v35  ;;  %v3773_v18 = vmul.f32 -1.442695, %v2597_v36 }
 0x8ec   : > { %4771 = vpow2.f32 %v3770_v16 }
 0x8ed   : > { %v4518_v27 = vpack.c.bf16 %v3065_v62, %v3063_v29  ;;  %v4707_v55 = vpack.i.bf16 %v3064_v57, %v3062_v3  ;;  %4773 = vpow2.f32 %v3773_v18 }
 0x8ef   : > { %4703 = vrot.lane.b32.xlu0 %v4702_v51, %s5623_s27  ;;  %4698 = vrot.lane.b32.xlu1 %v4707_v55, %s4816_s18 }
 0x8f3   : > { %4708 = vrot.lane.b32.xlu1 %v4707_v55, %s5623_s27 }
 0x8f5   : > { %v4770_v51 = vpop.eup %4769 }
 0x8f6   : > { %v4772_v56 = vpop.eup %4771  ;;  %v2611_v57 = vadd.f32 1.0, %v4770_v51 }
 0x8f7   : > { %v4774_v58 = vpop.eup %4773  ;;  %v2610_v62 = vadd.f32 1.0, %v4772_v56 }
 0x8f8   : > { %v2613_v48 = vadd.f32 1.0, %v4774_v58 }
 0x95d   : > { %v4694_v23 = vpop.permute.xlu0 %4693 }
 0x95e   : > { %v4696_v0 = vunpack.i.h.bf16 %v4694_v23  ;;  %v4695_v41 = vunpack.i.l.bf16 %v4694_v23 }
 0x960   : > { %v4498_v52 = vpack.c.bf16 %v4696_v0, %v4695_v41 }
 0x961   : > { %v4699_v2 = vpop.permute.xlu1 %4698  ;;  %v4704_v44 = vpop.permute.xlu0 %4703 }
 0x962   : > { %v4701_v43 = vunpack.i.h.bf16 %v4699_v2  ;;  %v4700_v33 = vunpack.i.l.bf16 %v4699_v2  ;;  %v4706_v54 = vunpack.i.h.bf16 %v4704_v44  ;;  %v4705_v5 = vunpack.i.l.bf16 %v4704_v44  ;;  %4499 = vmatprep.subr.bf16.mxu1 %v4498_v52 }
 0x963   : > { %4501 = vmatpush3.bf16.msra.mxu1 %v4498_v52 }
 0x964   : > { %v4502_v45 = vpack.c.bf16 %v4701_v43, %v4700_v33  ;;  %v4506_v7 = vpack.c.bf16 %v4706_v54, %v4705_v5 }
 0x965   : > { %v4709_v6 = vpop.permute.xlu1 %4708 }
 0x966   : > { %v4711_v61 = vunpack.i.h.bf16 %v4709_v6  ;;  %v4710_v38 = vunpack.i.l.bf16 %v4709_v6  ;;  %4503 = vmatprep.subr.bf16.mxu1 %v4502_v45 }
 0x967   : > { %4505 = vmatpush3.bf16.msra.mxu1 %v4502_v45 }
 0x968   : > { %4507 = vmatprep.subr.bf16.mxu1 %v4506_v7  ;;  %v4510_v8 = vpack.c.bf16 %v4711_v61, %v4710_v38 }
 0x96a   : > { %4275 = vmatmul.mubr.msk.f32.vlgmr.msra.gmra.mrb[36].mxu1 %vm750_vm4, %v4794_v9 }
 0x96b   : > { %4509 = vmatpush3.bf16.msra.mxu1 %v4506_v7  ;;  %4277 = vmatprep.mubr.msk.f32.mxu1 %vm750_vm4, %v4795_v10 }
 0x96c   : > { %4511 = vmatprep.subr.bf16.mxu1 %v4510_v8 }
 0x96e   : > { %4278 = vmatmul.mubr.msk.f32.gmra.mrb[38].mxu1 %vm750_vm4, %v4796_v37 }
 0x96f   : > { %4513 = vmatpush3.bf16.msra.mxu1 %v4510_v8  ;;  %4288 = vmatprep.mubr.msk.f32.mxu1 %vm750_vm4, %v4797_v39 }
 0x970   : > { %4515 = vmatprep.subr.bf16.mxu1 %v4514_v19 }
 0x972   : > { %4289 = vmatmul.mubr.msk.f32.vlgmr.msra.gmra.mrb[36].mxu1 %vm750_vm4, %v4798_v40 }
 0x973   : > { %4517 = vmatpush3.bf16.msra.mxu1 %v4514_v19  ;;  %4291 = vmatprep.mubr.msk.f32.mxu1 %vm750_vm4, %v4799_v49  ;;  %v3772_v19 = vmul.f32 -1.442695, %v2596_v17 }
 0x974   : > { %4519 = vmatprep.subr.bf16.mxu1 %v4518_v27 }
 0x975   : > { %4775 = vpow2.f32 %v3772_v19 }
 0x976   : > { %4292 = vmatmul.mubr.msk.f32.gmra.mrb[38].mxu1 %vm750_vm4, %v4800_v50  ;;  %4777 = vrcp.f32 %v2611_v57 }
 0x977   : > { %4521 = vmatpush3.bf16.msra.mxu1 %v4518_v27  ;;  %4302 = vmatprep.mubr.msk.f32.mxu1 %vm750_vm4, %v4801_v15  ;;  %4779 = vrcp.f32 %v2610_v62 }
 0x978   : > { %4781 = vrcp.f32 %v2613_v48 }
 0x97a   : > { %4303 = vmatmul.mubr.msk.f32.vlgmr.msra.gmra.mrb[36].mxu1 %vm750_vm4, %v4802_v60 }
 0x97b   : > { %4305 = vmatprep.mubr.msk.f32.mxu1 %vm750_vm4, %v4803_v1 }
 0x97e   : > { %4306 = vmatmul.mubr.msk.f32.gmra.mrb[38].mxu1 %vm750_vm4, %v4804_v22 }
 0x97f   : > { %v4776_v20 = vpop.eup %4775 }
 0x980   : > { %v2612_v13 = vadd.f32 1.0, %v4776_v20  ;;  %v4778_v52 = vpop.eup %4777 }
 0x981   : > { %v4780_v2 = vpop.eup %4779  ;;  %v3366_v14 = vsub.f32 1.0, %v4778_v52 }
 0x982   : > { %4783 = vrcp.f32 %v2612_v13  ;;  %v4782_v11 = vpop.eup %4781  ;;  %v3365_v59 = vsub.f32 1.0, %v4780_v2 }
 0x983   : > { %v3370_v54 = vmul.f32 %v3366_v14, %v5294_v46  ;;  %v3368_v45 = vsub.f32 1.0, %v4782_v11 }
 0x984   : > { %v3369_v6 = vmul.f32 %v3365_v59, %v5289_v42 }
 0x985   : > { %v3372_v37 = vmul.f32 %v3368_v45, %v5313_v53 }
 0x98c   : > { %v4784_v44 = vpop.eup %4783 }
 0x98d   : > { %v3367_v61 = vsub.f32 1.0, %v4784_v44 }
 0x98f   : > { %v3371_v46 = vmul.f32 %v3367_v61, %v5299_v4  ;;  %v3806_v4 = vld [vmem:[%s5614_s11] ss:$0 sm:$0xff] }
 0xa4d   : > { %v4304_v63 = vpop.f32.mrb[36].mxu1 }
 0xa4e   : > { %v3358_v3 = vadd.f32 %v4304_v63, %v3356_v12  ;;  %v3330_v29 = vpop.f32.mrb[37].mxu1 }
 0xa4f   : > { %v3357_v27 = vadd.f32 %v3356_v12, %v3330_v29 }
 0xa50   : > { %4785 = vtanh.f32 %v3358_v3 }
 0xa51   : > { %4787 = vtanh.f32 %v3357_v27  ;;  %v4307_v55 = vpop.f32.mrb[38].mxu1 }
 0xa52   : > { %v3360_v23 = vadd.f32 %v4307_v55, %v3356_v12  ;;  %v3340_v0 = vpop.f32.mrb[39].mxu1 }
 0xa53   : > { %v3359_v41 = vadd.f32 %v3356_v12, %v3340_v0 }
 0xa54   : > { %4789 = vtanh.f32 %v3360_v23 }
 0xa55   : > { %4791 = vtanh.f32 %v3359_v41 }
 0xa5a   : > { %v4786_v43 = vpop.eup %4785 }
 0xa5b   : > { %v4788_v33 = vpop.eup %4787  ;;  %v3374_v5 = vmul.f32 %v4786_v43, %v4778_v52 }
 0xa5c   : > { %v3373_v7 = vmul.f32 %v4788_v33, %v4780_v2 }
 0xa5d   : > { %v3378_v38 = vadd.f32 %v3374_v5, %v3370_v54 }
 0xa5e   : > { %v4790_v8 = vpop.eup %4789  ;;  %v3377_v9 = vadd.f32 %v3373_v7, %v3369_v6 }
 0xa5f   : > { %v4792_v10 = vpop.eup %4791  ;;  %3382 = vst.msk [vmem:[#allocation2 + $0x28] sm:$0xff] %vm750_vm4, %v3378_v38  ;;  %v3376_v39 = vmul.f32 %v4790_v8, %v4782_v11 }
 0xa60   : > { %3381 = vst.msk [vmem:[#allocation2 + $0x20] sm:$0xff] %vm750_vm4, %v3377_v9  ;;  %4316 = vmatprep.mubr.msk.f32.mxu0 %vm750_vm4, %v3377_v9  ;;  %v3375_v40 = vmul.f32 %v4792_v10, %v4784_v44 }
 0xa61   : > { %4317 = vmatmul.mubr.msk.f32.vlgmr.msra.gmra.mrb[32].mxu0 %vm750_vm4, %v3378_v38  ;;  %v3380_v42 = vadd.f32 %v3376_v39, %v3372_v37 }
 0xa62   : > { %v3379_v49 = vadd.f32 %v3375_v40, %v3371_v46  ;;  %4323 = vmatpush3.msk.msra.mxu0 %vm569_vm3, %v5552_v31 }
 0xa63   : > { %3384 = vst.msk [vmem:[#allocation2 + $0x38] sm:$0xff] %vm750_vm4, %v3380_v42 }
 0xa64   : > { %3383 = vst.msk [vmem:[#allocation2 + $0x30] sm:$0xff] %vm750_vm4, %v3379_v49  ;;  %4319 = vmatprep.mubr.msk.f32.mxu0 %vm750_vm4, %v3379_v49 }
 0xa65   : > { %4320 = vmatmul.mubr.msk.f32.gmra.mrb[34].mxu0 %vm750_vm4, %v3380_v42 }
 0xb34   : > { %v4318_v53 = vpop.f32.mrb[32].mxu0 }
 0xb35   : > { %v3480_v50 = vadd.f32 %v4318_v53, %v3806_v4  ;;  %v3474_v15 = vpop.f32.mrb[33].mxu0 }
 0xb36   : > { %v3475_v60 = vadd.f32 %v3806_v4, %v3474_v15 }
 0xb37   : > { %3494 = vst.msk [vmem:[#allocation3 + $0x8] sm:$0xff] %vm556_vm2, %v3480_v50 }
 0xb38   : > { %3493 = vst.msk [vmem:[#allocation3] sm:$0xff] %vm556_vm2, %v3475_v60  ;;  %v4321_v1 = vpop.f32.mrb[34].mxu0  ;;  %4324 = vmatprep.mubr.msk.f32.mxu0 %vm556_vm2, %v3475_v60 }
 0xb39   : > { %v3490_v22 = vadd.f32 %v4321_v1, %v3806_v4  ;;  %v3484_v24 = vpop.f32.mrb[35].mxu0  ;;  %4325 = vmatmul.mubr.msk.f32.vlgmr.msra.gmra.mrb[36].mxu0 %vm556_vm2, %v3480_v50 }
 0xb3a   : > { %v3485_v25 = vadd.f32 %v3806_v4, %v3484_v24 }
 0xb3b   : > { %3496 = vst.msk [vmem:[#allocation3 + $0x18] sm:$0xff] %vm556_vm2, %v3490_v22 }
 0xb3c   : > { %3495 = vst.msk [vmem:[#allocation3 + $0x10] sm:$0xff] %vm556_vm2, %v3485_v25  ;;  %4327 = vmatprep.mubr.msk.f32.mxu0 %vm556_vm2, %v3485_v25 }
 0xb3d   : > { %4328 = vmatmul.mubr.msk.f32.gmra.mrb[38].mxu0 %vm556_vm2, %v3490_v22 }
 0xc0c   : > { %v4326_v47 = vpop.f32.mrb[36].mxu0 }
 0xc0d   : > { %v3592_v28 = vadd.f32 %v4326_v47, %v3811_v26  ;;  %v3586_v30 = vpop.f32.mrb[37].mxu0 }
 0xc0e   : > { %v3587_v31 = vadd.f32 %v3811_v26, %v3586_v30 }
 0xc0f   : > { %3607 = vst.msk [vmem:[%s4918_s26 + $0x8] sm:$0xff] %vm3605_vm5, %v3592_v28 }
 0xc10   : > { %3606 = vst.msk [vmem:[%s4918_s26] sm:$0xff] %vm3605_vm5, %v3587_v31  ;;  %v4329_v32 = vpop.f32.mrb[38].mxu0 }
 0xc11   : > { %v3602_v21 = vadd.f32 %v4329_v32, %v3811_v26  ;;  %v3596_v34 = vpop.f32.mrb[39].mxu0 }
 0xc12   : > { %v3597_v35 = vadd.f32 %v3811_v26, %v3596_v34 }
 0xc13   : > { %3609 = vst.msk [vmem:[%s4918_s26 + $0x18] sm:$0xff] %vm3605_vm5, %v3602_v21 }
 0xc14   : > { %3608 = vst.msk [vmem:[%s4918_s26 + $0x10] sm:$0xff] %vm3605_vm5, %v3597_v35 }
 0xc15 PF: > { %s24_s29 = sadd.s32 1, %s4811_s29  }
 0xc16   : > { %p21_p5 = scmp.ge.s32.totalorder %s24_s29, 5  }
 0xc18   :  { %23 = sbr.rel (!%p21_p5) target bundleno = 1 (0x1), region = 114 }

</bundles_post_ra>
